<compile_context>
chip_gen: v6e
topology: v6e:2x2x1
jax: 0.10.0
libtpu: 0.0.40
codegen_flags: <defaults>
</compile_context>

<pallas_src>
import jax
import jax.numpy as jnp
from jax.experimental import pallas as pl
from jax.experimental.pallas import tpu as pltpu

# ---- module constants (from snn_gesture.py) ----
THRESH = 0.3
DECAY = 0.3
TIME_WINDOW = 15            # module always scales by this fixed constant
CFG_FC = [512, 512, 11]
IN_FEATURES = 32 * 32 * 2   # 2048
HIDDEN = CFG_FC[0]          # 512
NUM_OUT = CFG_FC[-1]        # 11
OUT_PAD = 128               # pad output features to a full lane tile


def _round_up(n, m):
    return (n + m - 1) // m * m


def _num_tensorcores():
    """2 on multi-TensorCore chips (v7x; v4/v5p megacore), else 1."""
    try:
        kind = jax.devices()[0].device_kind.lower()
    except Exception:
        return 1
    return 2 if any(tag in kind for tag in ("v7", "v4", "v5p")) else 1


def _pick_num_chunks(t):
    """3-5 time chunks for DMA/compute overlap; fall back to 1 if T is awkward."""
    for nc in (3, 5, 4, 2):
        if t % nc == 0:
            return nc
    return 1


def _snn_kernel(x_ref, w1_ref, b1_ref, w2_ref, b2_ref, out_ref,
                h1m_ref, h2m_ref, h2s_ref):
    """One (batch-slab, time-chunk) grid step.

    x_ref   : (1, 1, chunk*bt, F) bf16  -- this chunk's event frames (time-major)
    out_ref : (bt, OUT_PAD) f32         -- written on the last chunk only
    h1m/h2m : (bt, HIDDEN)/(bt, OUT_PAD) f32 membrane state carried across chunks
    h2s     : (bt, OUT_PAD) f32         -- running spike sum
    """
    c = pl.program_id(1)
    bt = out_ref.shape[0]
    chunk = x_ref.shape[2] // bt

    @pl.when(c == 0)
    def _init():
        h1m_ref[...] = jnp.zeros_like(h1m_ref)
        h2m_ref[...] = jnp.zeros_like(h2m_ref)
        h2s_ref[...] = jnp.zeros_like(h2s_ref)

    # ---- hoisted fc1 for the whole chunk: one (chunk*bt, F) @ (F, H) MXU matmul ----
    z1 = jnp.dot(x_ref[0, 0], w1_ref[...],
                 preferred_element_type=jnp.float32) + b1_ref[...]

    # ---- layer-1 recurrence: pure VPU, state in vregs, spikes collected ----
    # mem*decay*(1-spike) == where(mem > thresh, 0, mem)*decay  (spike is exact 0/1)
    h1_mem = h1m_ref[...]
    spk = []
    for s in range(chunk):                       # static trip count -> unrolled
        h1_mem = jnp.where(h1_mem > THRESH, 0.0, h1_mem) * DECAY \
            + z1[s * bt:(s + 1) * bt, :]
        spk.append((h1_mem > THRESH).astype(jnp.float32))
    h1m_ref[...] = h1_mem
    # 8-row f32 pieces concatenate tile-aligned; single cast to bf16 for the MXU.
    h1_spk = jnp.concatenate(spk, axis=0).astype(jnp.bfloat16)   # (chunk*bt, H)

    # ---- hoisted fc2: one (chunk*bt, H) @ (H, OUT_PAD) MXU matmul ----
    z2 = jnp.dot(h1_spk, w2_ref[...],
                 preferred_element_type=jnp.float32) + b2_ref[...]

    # ---- layer-2 recurrence + spike sum: pure VPU ----
    h2_mem = h2m_ref[...]
    h2_sum = h2s_ref[...]
    for s in range(chunk):
        h2_mem = jnp.where(h2_mem > THRESH, 0.0, h2_mem) * DECAY \
            + z2[s * bt:(s + 1) * bt, :]
        h2_sum = h2_sum + (h2_mem > THRESH).astype(jnp.float32)
    h2m_ref[...] = h2_mem
    h2s_ref[...] = h2_sum

    @pl.when(c == pl.num_programs(1) - 1)
    def _finalize():
        out_ref[...] = h2_sum * (1.0 / TIME_WINDOW)


def snn_forward(inp, w1, b1, w2, b2):
    """inp: [T, B, 2, 32, 32] float32 event frames. Returns [B, 11] float32.

    NOTE: like the PyTorch module, the output is the spike sum divided by the
    fixed constant time_window=15 regardless of T (normally T == 15).
    """
    T, B = inp.shape[0], inp.shape[1]
    F = IN_FEATURES
    x = inp.reshape(T, B, F).astype(jnp.float32)

    # Batch slabs: one per TensorCore on multi-core chips; a single slab on
    # v5e/v6e (splitting on a 1-TC chip only runs the serial recurrence twice).
    nb = _num_tensorcores() if _round_up(B, 8) >= 16 else 1
    bt = _round_up(-(-B // nb), 8)          # ceil(B / nb) rounded up to 8 sublanes
    b_pad = nb * bt
    if b_pad != B:
        x = jnp.pad(x, ((0, 0), (0, b_pad - B), (0, 0)))

    # Time-chunk axis so chunk c+1's x DMA overlaps chunk c's compute.
    nc = _pick_num_chunks(T)
    chunk = T // nc

    # (T, b_pad, F) -> (nb, NC, chunk*bt, F); row s*bt+r of chunk c of slab i is
    # time step c*chunk+s of batch row i*bt+r.  {0,1} events are exact in bf16.
    # (This reshape/pad is a host-side HBM copy, outside kernel timing.)
    x_slab = (x.reshape(nc, chunk, nb, bt, F)
                .transpose(2, 0, 1, 3, 4)
                .reshape(nb, nc, chunk * bt, F)
                .astype(jnp.bfloat16))

    # Weights as [in, out] (x @ W); bf16 operands, f32 accumulation / bias adds.
    w1_t = w1.T.astype(jnp.bfloat16)                                  # (2048, 512)
    b1_r = b1.reshape(1, HIDDEN).astype(jnp.float32)
    w2_t = jnp.zeros((HIDDEN, OUT_PAD), jnp.bfloat16).at[:, :NUM_OUT].set(
        w2.T.astype(jnp.bfloat16))                                    # (512, 128)
    b2_r = jnp.zeros((1, OUT_PAD), jnp.float32).at[:, :NUM_OUT].set(
        b2.astype(jnp.float32))

    flops = 2 * T * b_pad * (F * HIDDEN + HIDDEN * OUT_PAD)
    bytes_accessed = (x_slab.size * 2 + w1_t.size * 2 + w2_t.size * 2
                      + b1_r.size * 4 + b2_r.size * 4 + b_pad * OUT_PAD * 4)

    out_pad = pl.pallas_call(
        _snn_kernel,
        out_shape=jax.ShapeDtypeStruct((b_pad, OUT_PAD), jnp.float32),
        grid_spec=pltpu.PrefetchScalarGridSpec(
            num_scalar_prefetch=0,
            grid=(nb, nc),                           # (batch slab, time chunk)
            in_specs=[
                pl.BlockSpec((1, 1, chunk * bt, F), lambda i, c: (i, c, 0, 0)),  # x
                pl.BlockSpec((F, HIDDEN), lambda i, c: (0, 0)),        # W1 (bf16)
                pl.BlockSpec((1, HIDDEN), lambda i, c: (0, 0)),        # b1
                pl.BlockSpec((HIDDEN, OUT_PAD), lambda i, c: (0, 0)),  # W2 (padded)
                pl.BlockSpec((1, OUT_PAD), lambda i, c: (0, 0)),       # b2 (padded)
            ],
            out_specs=pl.BlockSpec((bt, OUT_PAD), lambda i, c: (i, 0)),
            scratch_shapes=[
                pltpu.VMEM((bt, HIDDEN), jnp.float32),   # h1 membrane (carried)
                pltpu.VMEM((bt, OUT_PAD), jnp.float32),  # h2 membrane (carried)
                pltpu.VMEM((bt, OUT_PAD), jnp.float32),  # h2 spike sum (carried)
            ],
        ),
        compiler_params=pltpu.CompilerParams(
            # slabs independent (megacore); chunk axis carries state -> arbitrary
            dimension_semantics=("parallel", "arbitrary"),
        ),
        cost_estimate=pl.CostEstimate(
            flops=flops, transcendentals=0, bytes_accessed=bytes_accessed),
    )(x_slab, w1_t, b1_r, w2_t, b2_r)

    return out_pad[:B, :NUM_OUT]


def snn_forward_ref(inp, w1, b1, w2, b2):
    """Pure-JAX reference with the same bf16-operand / f32-accumulate numerics."""
    T, B = inp.shape[0], inp.shape[1]
    x_all = inp.reshape(T, B, -1).astype(jnp.float32)
    w1b = w1.T.astype(jnp.bfloat16)
    w2b = w2.T.astype(jnp.bfloat16)
    h1_mem = h1_spk = jnp.zeros((B, HIDDEN), jnp.float32)
    h2_mem = h2_spk = jnp.zeros((B, NUM_OUT), jnp.float32)
    h2_sum = jnp.zeros((B, NUM_OUT), jnp.float32)
    for t in range(T):
        x = x_all[t].astype(jnp.bfloat16)
        z1 = jnp.dot(x, w1b, preferred_element_type=jnp.float32) + b1
        h1_mem = h1_mem * DECAY * (1.0 - h1_spk) + z1
        h1_spk = (h1_mem > THRESH).astype(jnp.float32)
        z2 = jnp.dot(h1_spk.astype(jnp.bfloat16), w2b,
                     preferred_element_type=jnp.float32) + b2
        h2_mem = h2_mem * DECAY * (1.0 - h2_spk) + z2
        h2_spk = (h2_mem > THRESH).astype(jnp.float32)
        h2_sum = h2_sum + h2_spk
    return h2_sum * (1.0 / TIME_WINDOW)


if __name__ == "__main__":
    key = jax.random.PRNGKey(0)
    k_in, k_w1, k_b1, k_w2, k_b2 = jax.random.split(key, 5)

    T = 15   # time_window (the module divides by this fixed constant)
    B = 8    # small batch (module default is 36; any batch works)

    # DVS-gesture style event frames: binary {0,1} spikes, NCHW per step.
    inp = (jax.random.uniform(k_in, (T, B, 2, 32, 32)) < 0.1).astype(jnp.float32)

    # Deterministic "torch.nn.Linear-like" init: U(-1/sqrt(fan_in), 1/sqrt(fan_in)).
    s1 = 1.0 / jnp.sqrt(jnp.float32(IN_FEATURES))
    s2 = 1.0 / jnp.sqrt(jnp.float32(HIDDEN))
    w1 = jax.random.uniform(k_w1, (HIDDEN, IN_FEATURES), jnp.float32, -s1, s1)
    b1 = jax.random.uniform(k_b1, (HIDDEN,), jnp.float32, -s1, s1)
    w2 = jax.random.uniform(k_w2, (NUM_OUT, HIDDEN), jnp.float32, -s2, s2)
    b2 = jax.random.uniform(k_b2, (NUM_OUT,), jnp.float32, -s2, s2)

    out = snn_forward(inp, w1, b1, w2, b2)
    out = jax.block_until_ready(out)

    ref = snn_forward_ref(inp, w1, b1, w2, b2)
    assert out.shape == (B, NUM_OUT)

    # The output is an integer spike count / 15: compare counts, allowing at most a
    # couple of near-threshold flips from MXU accumulation-order differences.
    spike_diff = jnp.abs(out - ref) * TIME_WINDOW
    max_flip = float(jnp.max(spike_diff))
    n_flips = int(jnp.sum(spike_diff > 0.5))
    assert max_flip <= 1.0 + 1e-3, f"spike counts differ by >1 (max={max_flip})"
    assert n_flips <= 2, f"too many spike-count mismatches: {n_flips}"

    print("KERNEL_OK")
</pallas_src>

<mosaic_0001>
module attributes {stable_mosaic.version = 11 : i64} {
  func.func @_snn_kernel(%arg0: i32, %arg1: i32, %arg2: memref<1x1x40x2048xbf16, #tpu.memory_space<vmem>>, %arg3: memref<2048x512xbf16, #tpu.memory_space<vmem>>, %arg4: memref<1x512xf32, #tpu.memory_space<vmem>>, %arg5: memref<512x128xbf16, #tpu.memory_space<vmem>>, %arg6: memref<1x128xf32, #tpu.memory_space<vmem>>, %arg7: memref<8x128xf32, #tpu.memory_space<vmem>>, %arg8: memref<8x512xf32, #tpu.memory_space<vmem>>, %arg9: memref<8x128xf32, #tpu.memory_space<vmem>>, %arg10: memref<8x128xf32, #tpu.memory_space<vmem>>) attributes {dimension_semantics = [#tpu.dimension_semantics<parallel>, #tpu.dimension_semantics<arbitrary>], iteration_bounds = array<i64: 1, 3>, scalar_prefetch = 0 : i64, scratch_operands = 3 : i64, tpu.core_type = #tpu.core_type<tc>, window_params = [{transform_indices = @transform_0, window_bounds = array<i64: 1, 1, 40, 2048>}, {pipeline_mode = #tpu.pipeline_mode<synchronous>, transform_indices = @transform_1, window_bounds = array<i64: 2048, 512>}, {pipeline_mode = #tpu.pipeline_mode<synchronous>, transform_indices = @transform_2, window_bounds = array<i64: 1, 512>}, {pipeline_mode = #tpu.pipeline_mode<synchronous>, transform_indices = @transform_3, window_bounds = array<i64: 512, 128>}, {pipeline_mode = #tpu.pipeline_mode<synchronous>, transform_indices = @transform_4, window_bounds = array<i64: 1, 128>}, {transform_indices = @transform_5, window_bounds = array<i64: 8, 128>}]} {
    %c0_i32 = arith.constant 0 : i32
    %0 = arith.cmpi eq, %arg1, %c0_i32 : i32
    %1 = arith.extui %0 : i1 to i32
    %c0_i32_0 = arith.constant 0 : i32
    %2 = arith.cmpi ne, %1, %c0_i32_0 : i32
    scf.if %2 {
      %cst_66 = arith.constant 0.000000e+00 : f32
      %151 = vector.broadcast %cst_66 : f32 to vector<8x512xf32>
      %c0_67 = arith.constant 0 : index
      %c0_68 = arith.constant 0 : index
      %152 = vector.load %arg8[%c0_67, %c0_68] : memref<8x512xf32, #tpu.memory_space<vmem>>, vector<8x512xf32>
      tpu.vector_store %arg8[%c0_67, %c0_68], %151 {strides = array<i32>} : memref<8x512xf32, #tpu.memory_space<vmem>>, vector<8x512xf32>,
      %cst_69 = arith.constant 0.000000e+00 : f32
      %153 = vector.broadcast %cst_69 : f32 to vector<8x128xf32>
      %c0_70 = arith.constant 0 : index
      %c0_71 = arith.constant 0 : index
      %154 = vector.load %arg9[%c0_70, %c0_71] : memref<8x128xf32, #tpu.memory_space<vmem>>, vector<8x128xf32>
      tpu.vector_store %arg9[%c0_70, %c0_71], %153 {strides = array<i32>} : memref<8x128xf32, #tpu.memory_space<vmem>>, vector<8x128xf32>,
      %cst_72 = arith.constant 0.000000e+00 : f32
      %155 = vector.broadcast %cst_72 : f32 to vector<8x128xf32>
      %c0_73 = arith.constant 0 : index
      %c0_74 = arith.constant 0 : index
      %156 = vector.load %arg10[%c0_73, %c0_74] : memref<8x128xf32, #tpu.memory_space<vmem>>, vector<8x128xf32>
      tpu.vector_store %arg10[%c0_73, %c0_74], %155 {strides = array<i32>} : memref<8x128xf32, #tpu.memory_space<vmem>>, vector<8x128xf32>,
    } else {
    }
    %c0 = arith.constant 0 : index
    %c0_1 = arith.constant 0 : index
    %c0_2 = arith.constant 0 : index
    %c0_3 = arith.constant 0 : index
    %3 = vector.load %arg2[%c0, %c0_1, %c0_2, %c0_3] : memref<1x1x40x2048xbf16, #tpu.memory_space<vmem>>, vector<1x1x40x2048xbf16>
    %4 = vector.shape_cast %3 : vector<1x1x40x2048xbf16> to vector<40x2048xbf16>
    %c0_4 = arith.constant 0 : index
    %c0_5 = arith.constant 0 : index
    %5 = vector.load %arg3[%c0_4, %c0_5] : memref<2048x512xbf16, #tpu.memory_space<vmem>>, vector<2048x512xbf16>
    %cst = arith.constant dense<0.000000e+00> : vector<40x512xf32>
    %6 = tpu.matmul %4, %5, %cst {dimension_numbers = #tpu.dot_dimension_numbers<[1], [0], [0], [1], [0, 0, 1, 1], [], []>} : vector<40x2048xbf16>, vector<2048x512xbf16>, vector<40x512xf32> -> vector<40x512xf32>
    %c0_6 = arith.constant 0 : index
    %c0_7 = arith.constant 0 : index
    %7 = vector.load %arg4[%c0_6, %c0_7] : memref<1x512xf32, #tpu.memory_space<vmem>>, vector<1x512xf32>
    %8 = vector.broadcast %7 : vector<1x512xf32> to vector<40x512xf32>
    %9 = arith.addf %6, %8 : vector<40x512xf32>
    %c0_8 = arith.constant 0 : index
    %c0_9 = arith.constant 0 : index
    %10 = vector.load %arg8[%c0_8, %c0_9] : memref<8x512xf32, #tpu.memory_space<vmem>>, vector<8x512xf32>
    %cst_10 = arith.constant 3.000000e-01 : f32
    %11 = vector.broadcast %cst_10 : f32 to vector<8x512xf32>
    %12 = arith.cmpf ogt, %10, %11 : vector<8x512xf32>
    %cst_11 = arith.constant 0.000000e+00 : f32
    %13 = vector.broadcast %cst_11 : f32 to vector<8x512xf32>
    %14 = arith.select %12, %13, %10 : vector<8x512xi1>, vector<8x512xf32>
    %cst_12 = arith.constant 3.000000e-01 : f32
    %15 = vector.broadcast %cst_12 : f32 to vector<8x512xf32>
    %16 = arith.mulf %14, %15 : vector<8x512xf32>
    %17 = vector.extract_strided_slice %9 {offsets = [0, 0], sizes = [8, 512], strides = [1, 1]} : vector<40x512xf32> to vector<8x512xf32>
    %18 = arith.addf %16, %17 : vector<8x512xf32>
    %cst_13 = arith.constant 3.000000e-01 : f32
    %19 = vector.broadcast %cst_13 : f32 to vector<8x512xf32>
    %20 = arith.cmpf ogt, %18, %19 : vector<8x512xf32>
    %21 = arith.extui %20 : vector<8x512xi1> to vector<8x512xi32>
    %22 = arith.sitofp %21 : vector<8x512xi32> to vector<8x512xf32>
    %cst_14 = arith.constant 3.000000e-01 : f32
    %23 = vector.broadcast %cst_14 : f32 to vector<8x512xf32>
    %24 = arith.cmpf ogt, %18, %23 : vector<8x512xf32>
    %cst_15 = arith.constant 0.000000e+00 : f32
    %25 = vector.broadcast %cst_15 : f32 to vector<8x512xf32>
    %26 = arith.select %24, %25, %18 : vector<8x512xi1>, vector<8x512xf32>
    %cst_16 = arith.constant 3.000000e-01 : f32
    %27 = vector.broadcast %cst_16 : f32 to vector<8x512xf32>
    %28 = arith.mulf %26, %27 : vector<8x512xf32>
    %29 = vector.extract_strided_slice %9 {offsets = [8, 0], sizes = [8, 512], strides = [1, 1]} : vector<40x512xf32> to vector<8x512xf32>
    %30 = arith.addf %28, %29 : vector<8x512xf32>
    %cst_17 = arith.constant 3.000000e-01 : f32
    %31 = vector.broadcast %cst_17 : f32 to vector<8x512xf32>
    %32 = arith.cmpf ogt, %30, %31 : vector<8x512xf32>
    %33 = arith.extui %32 : vector<8x512xi1> to vector<8x512xi32>
    %34 = arith.sitofp %33 : vector<8x512xi32> to vector<8x512xf32>
    %cst_18 = arith.constant 3.000000e-01 : f32
    %35 = vector.broadcast %cst_18 : f32 to vector<8x512xf32>
    %36 = arith.cmpf ogt, %30, %35 : vector<8x512xf32>
    %cst_19 = arith.constant 0.000000e+00 : f32
    %37 = vector.broadcast %cst_19 : f32 to vector<8x512xf32>
    %38 = arith.select %36, %37, %30 : vector<8x512xi1>, vector<8x512xf32>
    %cst_20 = arith.constant 3.000000e-01 : f32
    %39 = vector.broadcast %cst_20 : f32 to vector<8x512xf32>
    %40 = arith.mulf %38, %39 : vector<8x512xf32>
    %41 = vector.extract_strided_slice %9 {offsets = [16, 0], sizes = [8, 512], strides = [1, 1]} : vector<40x512xf32> to vector<8x512xf32>
    %42 = arith.addf %40, %41 : vector<8x512xf32>
    %cst_21 = arith.constant 3.000000e-01 : f32
    %43 = vector.broadcast %cst_21 : f32 to vector<8x512xf32>
    %44 = arith.cmpf ogt, %42, %43 : vector<8x512xf32>
    %45 = arith.extui %44 : vector<8x512xi1> to vector<8x512xi32>
    %46 = arith.sitofp %45 : vector<8x512xi32> to vector<8x512xf32>
    %cst_22 = arith.constant 3.000000e-01 : f32
    %47 = vector.broadcast %cst_22 : f32 to vector<8x512xf32>
    %48 = arith.cmpf ogt, %42, %47 : vector<8x512xf32>
    %cst_23 = arith.constant 0.000000e+00 : f32
    %49 = vector.broadcast %cst_23 : f32 to vector<8x512xf32>
    %50 = arith.select %48, %49, %42 : vector<8x512xi1>, vector<8x512xf32>
    %cst_24 = arith.constant 3.000000e-01 : f32
    %51 = vector.broadcast %cst_24 : f32 to vector<8x512xf32>
    %52 = arith.mulf %50, %51 : vector<8x512xf32>
    %53 = vector.extract_strided_slice %9 {offsets = [24, 0], sizes = [8, 512], strides = [1, 1]} : vector<40x512xf32> to vector<8x512xf32>
    %54 = arith.addf %52, %53 : vector<8x512xf32>
    %cst_25 = arith.constant 3.000000e-01 : f32
    %55 = vector.broadcast %cst_25 : f32 to vector<8x512xf32>
    %56 = arith.cmpf ogt, %54, %55 : vector<8x512xf32>
    %57 = arith.extui %56 : vector<8x512xi1> to vector<8x512xi32>
    %58 = arith.sitofp %57 : vector<8x512xi32> to vector<8x512xf32>
    %cst_26 = arith.constant 3.000000e-01 : f32
    %59 = vector.broadcast %cst_26 : f32 to vector<8x512xf32>
    %60 = arith.cmpf ogt, %54, %59 : vector<8x512xf32>
    %cst_27 = arith.constant 0.000000e+00 : f32
    %61 = vector.broadcast %cst_27 : f32 to vector<8x512xf32>
    %62 = arith.select %60, %61, %54 : vector<8x512xi1>, vector<8x512xf32>
    %cst_28 = arith.constant 3.000000e-01 : f32
    %63 = vector.broadcast %cst_28 : f32 to vector<8x512xf32>
    %64 = arith.mulf %62, %63 : vector<8x512xf32>
    %65 = vector.extract_strided_slice %9 {offsets = [32, 0], sizes = [8, 512], strides = [1, 1]} : vector<40x512xf32> to vector<8x512xf32>
    %66 = arith.addf %64, %65 : vector<8x512xf32>
    %cst_29 = arith.constant 3.000000e-01 : f32
    %67 = vector.broadcast %cst_29 : f32 to vector<8x512xf32>
    %68 = arith.cmpf ogt, %66, %67 : vector<8x512xf32>
    %69 = arith.extui %68 : vector<8x512xi1> to vector<8x512xi32>
    %70 = arith.sitofp %69 : vector<8x512xi32> to vector<8x512xf32>
    %c0_30 = arith.constant 0 : index
    %c0_31 = arith.constant 0 : index
    %71 = vector.load %arg8[%c0_30, %c0_31] : memref<8x512xf32, #tpu.memory_space<vmem>>, vector<8x512xf32>
    tpu.vector_store %arg8[%c0_30, %c0_31], %66 {strides = array<i32>} : memref<8x512xf32, #tpu.memory_space<vmem>>, vector<8x512xf32>,
    %72 = tpu.concatenate %22, %34, %46, %58, %70 in 0 : vector<8x512xf32>, vector<8x512xf32>, vector<8x512xf32>, vector<8x512xf32>, vector<8x512xf32> -> vector<40x512xf32>
    %73 = arith.truncf %72 : vector<40x512xf32> to vector<40x512xbf16>
    %c0_32 = arith.constant 0 : index
    %c0_33 = arith.constant 0 : index
    %74 = vector.load %arg5[%c0_32, %c0_33] : memref<512x128xbf16, #tpu.memory_space<vmem>>, vector<512x128xbf16>
    %cst_34 = arith.constant dense<0.000000e+00> : vector<40x128xf32>
    %75 = tpu.matmul %73, %74, %cst_34 {dimension_numbers = #tpu.dot_dimension_numbers<[1], [0], [0], [1], [0, 0, 1, 1], [], []>} : vector<40x512xbf16>, vector<512x128xbf16>, vector<40x128xf32> -> vector<40x128xf32>
    %c0_35 = arith.constant 0 : index
    %c0_36 = arith.constant 0 : index
    %76 = vector.load %arg6[%c0_35, %c0_36] : memref<1x128xf32, #tpu.memory_space<vmem>>, vector<1x128xf32>
    %77 = vector.broadcast %76 : vector<1x128xf32> to vector<40x128xf32>
    %78 = arith.addf %75, %77 : vector<40x128xf32>
    %c0_37 = arith.constant 0 : index
    %c0_38 = arith.constant 0 : index
    %79 = vector.load %arg9[%c0_37, %c0_38] : memref<8x128xf32, #tpu.memory_space<vmem>>, vector<8x128xf32>
    %c0_39 = arith.constant 0 : index
    %c0_40 = arith.constant 0 : index
    %80 = vector.load %arg10[%c0_39, %c0_40] : memref<8x128xf32, #tpu.memory_space<vmem>>, vector<8x128xf32>
    %cst_41 = arith.constant 3.000000e-01 : f32
    %81 = vector.broadcast %cst_41 : f32 to vector<8x128xf32>
    %82 = arith.cmpf ogt, %79, %81 : vector<8x128xf32>
    %cst_42 = arith.constant 0.000000e+00 : f32
    %83 = vector.broadcast %cst_42 : f32 to vector<8x128xf32>
    %84 = arith.select %82, %83, %79 : vector<8x128xi1>, vector<8x128xf32>
    %cst_43 = arith.constant 3.000000e-01 : f32
    %85 = vector.broadcast %cst_43 : f32 to vector<8x128xf32>
    %86 = arith.mulf %84, %85 : vector<8x128xf32>
    %87 = vector.extract_strided_slice %78 {offsets = [0, 0], sizes = [8, 128], strides = [1, 1]} : vector<40x128xf32> to vector<8x128xf32>
    %88 = arith.addf %86, %87 : vector<8x128xf32>
    %cst_44 = arith.constant 3.000000e-01 : f32
    %89 = vector.broadcast %cst_44 : f32 to vector<8x128xf32>
    %90 = arith.cmpf ogt, %88, %89 : vector<8x128xf32>
    %91 = arith.extui %90 : vector<8x128xi1> to vector<8x128xi32>
    %92 = arith.sitofp %91 : vector<8x128xi32> to vector<8x128xf32>
    %93 = arith.addf %80, %92 : vector<8x128xf32>
    %cst_45 = arith.constant 3.000000e-01 : f32
    %94 = vector.broadcast %cst_45 : f32 to vector<8x128xf32>
    %95 = arith.cmpf ogt, %88, %94 : vector<8x128xf32>
    %cst_46 = arith.constant 0.000000e+00 : f32
    %96 = vector.broadcast %cst_46 : f32 to vector<8x128xf32>
    %97 = arith.select %95, %96, %88 : vector<8x128xi1>, vector<8x128xf32>
    %cst_47 = arith.constant 3.000000e-01 : f32
    %98 = vector.broadcast %cst_47 : f32 to vector<8x128xf32>
    %99 = arith.mulf %97, %98 : vector<8x128xf32>
    %100 = vector.extract_strided_slice %78 {offsets = [8, 0], sizes = [8, 128], strides = [1, 1]} : vector<40x128xf32> to vector<8x128xf32>
    %101 = arith.addf %99, %100 : vector<8x128xf32>
    %cst_48 = arith.constant 3.000000e-01 : f32
    %102 = vector.broadcast %cst_48 : f32 to vector<8x128xf32>
    %103 = arith.cmpf ogt, %101, %102 : vector<8x128xf32>
    %104 = arith.extui %103 : vector<8x128xi1> to vector<8x128xi32>
    %105 = arith.sitofp %104 : vector<8x128xi32> to vector<8x128xf32>
    %106 = arith.addf %93, %105 : vector<8x128xf32>
    %cst_49 = arith.constant 3.000000e-01 : f32
    %107 = vector.broadcast %cst_49 : f32 to vector<8x128xf32>
    %108 = arith.cmpf ogt, %101, %107 : vector<8x128xf32>
    %cst_50 = arith.constant 0.000000e+00 : f32
    %109 = vector.broadcast %cst_50 : f32 to vector<8x128xf32>
    %110 = arith.select %108, %109, %101 : vector<8x128xi1>, vector<8x128xf32>
    %cst_51 = arith.constant 3.000000e-01 : f32
    %111 = vector.broadcast %cst_51 : f32 to vector<8x128xf32>
    %112 = arith.mulf %110, %111 : vector<8x128xf32>
    %113 = vector.extract_strided_slice %78 {offsets = [16, 0], sizes = [8, 128], strides = [1, 1]} : vector<40x128xf32> to vector<8x128xf32>
    %114 = arith.addf %112, %113 : vector<8x128xf32>
    %cst_52 = arith.constant 3.000000e-01 : f32
    %115 = vector.broadcast %cst_52 : f32 to vector<8x128xf32>
    %116 = arith.cmpf ogt, %114, %115 : vector<8x128xf32>
    %117 = arith.extui %116 : vector<8x128xi1> to vector<8x128xi32>
    %118 = arith.sitofp %117 : vector<8x128xi32> to vector<8x128xf32>
    %119 = arith.addf %106, %118 : vector<8x128xf32>
    %cst_53 = arith.constant 3.000000e-01 : f32
    %120 = vector.broadcast %cst_53 : f32 to vector<8x128xf32>
    %121 = arith.cmpf ogt, %114, %120 : vector<8x128xf32>
    %cst_54 = arith.constant 0.000000e+00 : f32
    %122 = vector.broadcast %cst_54 : f32 to vector<8x128xf32>
    %123 = arith.select %121, %122, %114 : vector<8x128xi1>, vector<8x128xf32>
    %cst_55 = arith.constant 3.000000e-01 : f32
    %124 = vector.broadcast %cst_55 : f32 to vector<8x128xf32>
    %125 = arith.mulf %123, %124 : vector<8x128xf32>
    %126 = vector.extract_strided_slice %78 {offsets = [24, 0], sizes = [8, 128], strides = [1, 1]} : vector<40x128xf32> to vector<8x128xf32>
    %127 = arith.addf %125, %126 : vector<8x128xf32>
    %cst_56 = arith.constant 3.000000e-01 : f32
    %128 = vector.broadcast %cst_56 : f32 to vector<8x128xf32>
    %129 = arith.cmpf ogt, %127, %128 : vector<8x128xf32>
    %130 = arith.extui %129 : vector<8x128xi1> to vector<8x128xi32>
    %131 = arith.sitofp %130 : vector<8x128xi32> to vector<8x128xf32>
    %132 = arith.addf %119, %131 : vector<8x128xf32>
    %cst_57 = arith.constant 3.000000e-01 : f32
    %133 = vector.broadcast %cst_57 : f32 to vector<8x128xf32>
    %134 = arith.cmpf ogt, %127, %133 : vector<8x128xf32>
    %cst_58 = arith.constant 0.000000e+00 : f32
    %135 = vector.broadcast %cst_58 : f32 to vector<8x128xf32>
    %136 = arith.select %134, %135, %127 : vector<8x128xi1>, vector<8x128xf32>
    %cst_59 = arith.constant 3.000000e-01 : f32
    %137 = vector.broadcast %cst_59 : f32 to vector<8x128xf32>
    %138 = arith.mulf %136, %137 : vector<8x128xf32>
    %139 = vector.extract_strided_slice %78 {offsets = [32, 0], sizes = [8, 128], strides = [1, 1]} : vector<40x128xf32> to vector<8x128xf32>
    %140 = arith.addf %138, %139 : vector<8x128xf32>
    %cst_60 = arith.constant 3.000000e-01 : f32
    %141 = vector.broadcast %cst_60 : f32 to vector<8x128xf32>
    %142 = arith.cmpf ogt, %140, %141 : vector<8x128xf32>
    %143 = arith.extui %142 : vector<8x128xi1> to vector<8x128xi32>
    %144 = arith.sitofp %143 : vector<8x128xi32> to vector<8x128xf32>
    %145 = arith.addf %132, %144 : vector<8x128xf32>
    %c0_61 = arith.constant 0 : index
    %c0_62 = arith.constant 0 : index
    %146 = vector.load %arg9[%c0_61, %c0_62] : memref<8x128xf32, #tpu.memory_space<vmem>>, vector<8x128xf32>
    tpu.vector_store %arg9[%c0_61, %c0_62], %140 {strides = array<i32>} : memref<8x128xf32, #tpu.memory_space<vmem>>, vector<8x128xf32>,
    %c0_63 = arith.constant 0 : index
    %c0_64 = arith.constant 0 : index
    %147 = vector.load %arg10[%c0_63, %c0_64] : memref<8x128xf32, #tpu.memory_space<vmem>>, vector<8x128xf32>
    tpu.vector_store %arg10[%c0_63, %c0_64], %145 {strides = array<i32>} : memref<8x128xf32, #tpu.memory_space<vmem>>, vector<8x128xf32>,
    %c2_i32 = arith.constant 2 : i32
    %148 = arith.cmpi eq, %arg1, %c2_i32 : i32
    %149 = arith.extui %148 : i1 to i32
    %c0_i32_65 = arith.constant 0 : i32
    %150 = arith.cmpi ne, %149, %c0_i32_65 : i32
    scf.if %150 {
      %cst_66 = arith.constant 0.0666666701 : f32
      %151 = vector.broadcast %cst_66 : f32 to vector<8x128xf32>
      %152 = arith.mulf %145, %151 : vector<8x128xf32>
      %c0_67 = arith.constant 0 : index
      %c0_68 = arith.constant 0 : index
      %153 = vector.load %arg7[%c0_67, %c0_68] : memref<8x128xf32, #tpu.memory_space<vmem>>, vector<8x128xf32>
      tpu.vector_store %arg7[%c0_67, %c0_68], %152 {strides = array<i32>} : memref<8x128xf32, #tpu.memory_space<vmem>>, vector<8x128xf32>,
    } else {
    }
    return
  }
  func.func @transform_0(%arg0: i32, %arg1: i32) -> (i32, i32, i32, i32) {
    %c0_i32 = arith.constant 0 : i32
    %c0_i32_0 = arith.constant 0 : i32
    %c0_i32_1 = arith.constant 0 : i32
    return %arg0, %arg1, %c0_i32, %c0_i32_0 : i32, i32, i32, i32
  }
  func.func @transform_1(%arg0: i32, %arg1: i32) -> (i32, i32) {
    %c0_i32 = arith.constant 0 : i32
    %c0_i32_0 = arith.constant 0 : i32
    %c0_i32_1 = arith.constant 0 : i32
    return %c0_i32, %c0_i32_0 : i32, i32
  }
  func.func @transform_2(%arg0: i32, %arg1: i32) -> (i32, i32) {
    %c0_i32 = arith.constant 0 : i32
    %c0_i32_0 = arith.constant 0 : i32
    %c0_i32_1 = arith.constant 0 : i32
    return %c0_i32, %c0_i32_0 : i32, i32
  }
  func.func @transform_3(%arg0: i32, %arg1: i32) -> (i32, i32) {
    %c0_i32 = arith.constant 0 : i32
    %c0_i32_0 = arith.constant 0 : i32
    %c0_i32_1 = arith.constant 0 : i32
    return %c0_i32, %c0_i32_0 : i32, i32
  }
  func.func @transform_4(%arg0: i32, %arg1: i32) -> (i32, i32) {
    %c0_i32 = arith.constant 0 : i32
    %c0_i32_0 = arith.constant 0 : i32
    %c0_i32_1 = arith.constant 0 : i32
    return %c0_i32, %c0_i32_0 : i32, i32
  }
  func.func @transform_5(%arg0: i32, %arg1: i32) -> (i32, i32) {
    %c0_i32 = arith.constant 0 : i32
    %c0_i32_0 = arith.constant 0 : i32
    return %arg0, %c0_i32 : i32, i32
  }
}

</mosaic_0001>

<bundles_post_ra>
// kernel: tpu_custom_call.1
= control target key start
LH: loop header
LB: loop body
LE: loop exit
PB: predicated region body
PF: predicated region fallthrough
CT: control target
= control target key end

     0   :  { %10 = vsyncpa [#allocation6], 0  ;;  %s7946_s0 = inlined_call_operand.hbm [shape: bf16[1,3,40,2048], index: 0, kind: input, shape index: {}]   ;;  %s7947_s1 = inlined_call_operand.hbm [shape: bf16[2048,512], index: 1, kind: input, shape index: {}]   ;;  %s7948_s2 = inlined_call_operand.hbm [shape: f32[1,512], index: 2, kind: input, shape index: {}]   ;;  %s7949_s3 = inlined_call_operand.hbm [shape: bf16[512,128], index: 3, kind: input, shape index: {}]   ;;  %s7950_s4 = inlined_call_operand.hbm [shape: f32[1,128], index: 4, kind: input, shape index: {}]   ;;  %s7951_s5 = inlined_call_operand.hbm [shape: f32[8,128], index: 5, kind: output, shape index: {}]  }
   0x1   :  { %12 = vsyncpa [#allocation6 + $0x1], 0 }
   0x2   :  { %13 = vsyncpa [#allocation9], 0 }
   0x3   :  { %14 = vsyncpa [#allocation12], 0 }
   0x4   :  { %15 = vsyncpa [#allocation7], 0  ;;  %s7243_s18 = smov 0   ;;  %s7245_s19 = smov 0  }
   0x5   :  { %s7247_s20 = smov 0   ;;  %s7249_s21 = smov 0  }
   0x6   :  { %s7251_s22 = smov 0   ;;  %s7253_s23 = smov 0  }
   0x7 LB: > { %s7955_s24 = sadd.s32 4294967295, %s7197_s23   ;;  %p55_p0 = scmp.ne.s32.totalorder %s7181_s19, %s7177_s18  ;;  %s7197_s23 = sphi %s7253_s23, %s21_s23   ;;  %s7193_s22 = sphi %s7251_s22, %s8021_s22   ;;  %s7189_s21 = sphi %s7249_s21, %s8020_s21   ;;  %s7185_s20 = sphi %s7247_s20, %s8019_s20   ;;  %s7181_s19 = sphi %s7245_s19, %s8018_s19   ;;  %s7177_s18 = sphi %s7243_s18, %s8017_s18  }
   0x8   : > { %p7275_p1 = scmp.eq.s32.totalorder %s7955_s24, 0  ;;  %p5320_p2 = scmp.ge.s32.totalorder %s7197_s23, 1 }
   0x9   : > { %p176_p3 = scmp.lt.s32.totalorder %s7197_s23, 4  ;;  %s7199_s28 = smov [#allocation8]  }
   0xa   : > { %s7971_s25 = scalar_select %p7275_p1, 1, 0 }
   0xb   : > { %p7283_p4 = por %p7275_p1, %p55_p0  ;;  %p7287_p5 = pnand %p5320_p2, %p176_p3 }
   0xc   : > { %s188_s29 = sshll.u32 %s7199_s28, 4  ;;  %s7200_s6 = smov [#allocation11]   ;;  %s189_s29 = int_to_ptr.vmem [resolvable:$true] %s188_s29 }
   0xd   : > { %s7972_s26 = scalar_select %p7283_p4, 1, 0 }
   0xe   : > { %p6073_p6 = pneg %p7287_p5  ;;  %s212_s7 = sshll.u32 %s7200_s6, 4  ;;  %s213_s7 = int_to_ptr.vmem [resolvable:$true] %s212_s7 }
   0xf   : > { %s6990_s8 = scalar_lea.vmem %s189_s29, 65536  ;;  %p6998_p12 = scmp.lt.s32.totalorder %s189_s29, %s189_s29 }
  0x10   : > { %p7295_p7 = pnand %p6073_p6, %p7275_p1  ;;  %p6991_p9 = scmp.ne.s32.totalorder %s189_s29, %s6990_s8 }
  0x11   : > { %p6999_p13 = scmp.lt.s32.totalorder %s6990_s8, %s6990_s8 }
  0x12   : > { %p6981_p8 = pneg %p7295_p7 }
  0x13   : > { %p7000_p0 = por %p6999_p13, %p6998_p12 }
  0x14   : > { %p6993_p10 = pnand %p6991_p9, %p6981_p8 }
  0x16   : > { %p6994_p11 = pneg %p6993_p10 }
  0x18   : > { %p7001_p2 = pnand %p7000_p0, %p6994_p11 }
  0x1a   : > { %7004 = shalt.err (!%p7001_p2)
}
  0x1b   : > { %s7201_s9 = smov 256   ;;  %s7202_s10 = smov 16  }
  0x1c   : > { %6076 = dma.hbm_to_vmem [thread:$0]  (!%p7295_p7), %s7947_s1, 65536, %s189_s29, [#allocation9], %s7201_s9, %s7201_s9, %s7202_s10  }
  0x1d   : > { %s7016_s13 = scalar_lea.vmem %s213_s7, 4096  ;;  %p7024_p10 = scmp.lt.s32.totalorder %s213_s7, %s213_s7 }
  0x1e   : > { %p7017_p3 = scmp.ne.s32.totalorder %s213_s7, %s7016_s13  ;;  %p7025_p1 = scmp.lt.s32.totalorder %s7016_s13, %s7016_s13 }
  0x20   : > { %p7019_p6 = pnand %p7017_p3, %p6981_p8  ;;  %p7026_p12 = por %p7025_p1, %p7024_p10 }
  0x22   : > { %p7020_p9 = pneg %p7019_p6 }
  0x24   : > { %p7027_p11 = pnand %p7026_p12, %p7020_p9 }
  0x26   : > { %7030 = shalt.err (!%p7027_p11)
}
  0x27   : > { %s7956_s14 = smov 64   ;;  %s7204_s15 = smov 4  }
  0x28   : > { %6082 = dma.hbm_to_vmem [thread:$0]  (!%p7295_p7), %s7949_s3, 4096, %s213_s7, [#allocation12], %s7956_s14, %s7956_s14, %s7204_s15  }
  0x29   : > { %s7205_s18 = smov [#allocation10]   ;;  %s7206_s29 = smov [#allocation13]  }
  0x2a   : > { %s202_s28 = sshll.u32 %s7205_s18, 4  ;;  %s226_s6 = sshll.u32 %s7206_s29, 4  ;;  %s203_s28 = int_to_ptr.vmem [resolvable:$true] %s202_s28  ;;  %s227_s6 = int_to_ptr.vmem [resolvable:$true] %s226_s6 }
  0x2b   : > { %s7042_s8 = scalar_lea.vmem %s203_s28, 64  ;;  %p7050_p2 = scmp.lt.s32.totalorder %s203_s28, %s203_s28 }
  0x2c   : > { %p7043_p1 = scmp.ne.s32.totalorder %s203_s28, %s7042_s8  ;;  %p7051_p3 = scmp.lt.s32.totalorder %s7042_s8, %s7042_s8 }
  0x2e   : > { %p7045_p13 = pnand %p7043_p1, %p6981_p8  ;;  %p7052_p6 = por %p7051_p3, %p7050_p2 }
  0x30   : > { %p7046_p0 = pneg %p7045_p13 }
  0x32   : > { %p7053_p9 = pnand %p7052_p6, %p7046_p0 }
  0x34   : > { %7056 = shalt.err (!%p7053_p9)
}
  0x35   : > { %6079 = dma.hbm_to_vmem [thread:$0]  (!%p7295_p7), %s7948_s2, 64, %s203_s28, [#allocation9]  }
  0x36   : > { %s7068_s10 = scalar_lea.vmem %s227_s6, 16  ;;  %s7075_s11 = scalar_lea.vmem %s227_s6, 32 }
  0x37   : > { %p7069_p10 = scmp.ne.s32.totalorder %s227_s6, %s7068_s10  ;;  %p7076_p1 = scmp.lt.s32.totalorder %s227_s6, %s227_s6 }
  0x38   : > { %p7077_p13 = scmp.lt.s32.totalorder %s7075_s11, %s7068_s10 }
  0x39   : > { %p7071_p12 = pnand %p7069_p10, %p6981_p8 }
  0x3a   : > { %p7078_p4 = por %p7077_p13, %p7076_p1 }
  0x3b   : > { %p7072_p11 = pneg %p7071_p12 }
  0x3d   : > { %p7079_p2 = pnand %p7078_p4, %p7072_p11 }
  0x3f   : > { %7082 = shalt.err (!%p7079_p2)
}
  0x40   : > { %6085 = dma.hbm_to_vmem [thread:$0]  (!%p7295_p7), %s7950_s4, 16, %s227_s6, [#allocation12]  }
  0x41   : > { %s30_s15 = sadd.s32 1, %s7193_s22  ;;  %s42_s16 = sadd.s32 1, %s7185_s20 }
  0x42   : > { %p31_p4 = scmp.ge.s32.totalorder %s30_s15, 3  ;;  %p49_p8 = scmp.ne.s32.totalorder %s7185_s20, %s7181_s19 }
  0x43   : > { %p50_p0 = scmp.eq.s32.totalorder %s7197_s23, 0  ;;  %p6094_p3 = scmp.lt.s32.totalorder %s7197_s23, 3 }
  0x44   : > { %s8023_s15 = smov (%p31_p4, %s30_s15), 0  ;;  %s237_s30 = sand.u32 1, %s7185_s20  }
  0x45   : > { %p51_p6 = por %p50_p0, %p49_p8  ;;  %s38_s17 = ssub.s32 %s7193_s22, %s8023_s15 }
  0x46   : > { %p40_p9 = scmp.eq.s32.totalorder %s38_s17, 0  ;;  %s6048_s18 = smul.u32 320, %s237_s30 }
  0x47   : > { %s6049_s28 = smul.u32 5120, %s7193_s22  ;;  %p7347_p10 = pnand %p6094_p3, %p51_p6 }
  0x48   : > { %s7352_s6 = scalar_select %p40_p9, %s7185_s20, %s42_s16  }
  0x49   : > { %s249_s9 = scalar_lea.hbm %s7946_s0, %s6049_s28  ;;  %s241_s10 = scalar_lea.vmem [#allocation5], %s6048_s18 }
  0x4a   : > { %s250_s11 = sshll.u32 %s241_s10, 4  ;;  %s238_s12 = scalar_lea.sflag [#allocation6], %s237_s30  ;;  %s251_s11 = int_to_ptr.vmem [resolvable:$true] %s250_s11 }
  0x4b   : > { %p7085_p7 = pneg %p7347_p10  ;;  %s7096_s13 = scalar_lea.vmem %s251_s11, 5120 }
  0x4c   : > { %p7097_p12 = scmp.ne.s32.totalorder %s251_s11, %s7096_s13  ;;  %s7207_s17 = smov [#allocation5]  }
  0x4d   : > { %s7101_s24 = sshll.u32 %s7207_s17, 4  ;;  %s7102_s24 = int_to_ptr.vmem [resolvable:$false] %s7101_s24 }
  0x4e   : > { %p7099_p11 = pnand %p7097_p12, %p7085_p7  ;;  %s7103_s14 = scalar_lea.vmem %s7102_s24, 10240 }
  0x4f   : > { %p7104_p13 = scmp.lt.s32.totalorder %s251_s11, %s7102_s24  ;;  %p7105_p2 = scmp.lt.s32.totalorder %s7103_s14, %s7096_s13 }
  0x50   : > { %p7100_p1 = pneg %p7099_p11 }
  0x51   : > { %p7106_p4 = por %p7105_p2, %p7104_p13 }
  0x53   : > { %p7107_p8 = pnand %p7106_p4, %p7100_p1 }
  0x55   : > { %7110 = shalt.err (!%p7107_p8)
}
  0x56   : > { %s7208_s16 = smov 1024   ;;  %s7976_s18 = smov 64  }
  0x57   : > { %6089 = dma.hbm_to_vmem [thread:$0]  (!%p7347_p10), %s249_s9, 5120, %s251_s11, %s238_s12, %s7208_s16, %s7208_s16, %s7976_s18  }
  0x58   : > { %262 = sbr.rel (%p7287_p5) target bundleno = 1085 (0x43d), region = 40 }
  0x5d   : > { %s264_s30 = sand.u32 1, %s7181_s19   ;;  %p7977_p0 = scmp.ne.s32.totalorder %s7972_s26, 0 }
  0x5e   : > { %s6050_s28 = smul.u32 320, %s264_s30  ;;  %s265_s8 = scalar_lea.sflag [#allocation6], %s264_s30 }
  0x60   : > { %s7365_s7 = scalar_lea.vmem [#allocation5], %s6050_s28 }
  0x61   : > { %7160 = dma.done.wait (%p7977_p0), %s265_s8, 5120  }
  0x62   : > { %7162 = vsyncadd (%p7977_p0), %s265_s8, 4294962176  ;;  %p7978_p3 = scmp.ne.s32.totalorder %s7971_s25, 0 }
  0x64   : > { %7164 = dma.done.wait (%p7978_p3), [#allocation9], 65600  }
  0x65   : > { %7166 = vsyncadd (%p7978_p3), [#allocation9], 4294901696 }
  0x66   : > { %7168 = dma.done.wait (%p7978_p3), [#allocation12], 4112  }
  0x67   : > { %7170 = vsyncadd (%p7978_p3), [#allocation12], 4294963184  ;;  %p5332_p5 = scmp.ne.s32.totalorder %s7189_s21, 0 }
  0x69   : > { %310 = sbr.rel (%p5332_p5) target bundleno = 114 (0x72), region = 64 }
  0x6e   : > { %v7209_v0 = vmov 0.0  }
  0x6f   : > { %311 = vst [vmem:[#allocation2 + $0x10] sm:$0xff] %v7209_v0  ;;  %312 = vst [vmem:[#allocation2] sm:$0xff] %v7209_v0 }
  0x70   : > { %313 = vst [vmem:[#allocation2 + $0x18] sm:$0xff] %v7209_v0  ;;  %314 = vst [vmem:[#allocation2 + $0x8] sm:$0xff] %v7209_v0 }
  0x71   : > { %315 = vst [vmem:[#allocation3] sm:$0xff] %v7209_v0  ;;  %316 = vst [vmem:[#allocation4] sm:$0xff] %v7209_v0 }
  0x72 PF: > { %v6162_v1 = vld [vmem:[#allocation8 + $0xe4] ss:$16 sps:$4 sm:$0xff]   ;;  %v6166_v3 = vld [vmem:[#allocation8 + $0xe0] ss:$16 sps:$4 sm:$0xff]   ;;  %v318_v51 = vld [vmem:[%s7365_s7 + $0x8] sm:$0xff]  ;;  %p5975_p6 = scmp.ne.s32.totalorder %s7189_s21, 2 }
  0x73   : > { %v6164_v2 = vld [vmem:[#allocation8 + $0x2e4] ss:$16 sps:$4 sm:$0xff]   ;;  %3667 = vmatprep.subr.bf16.mxu0 %v6162_v1  ;;  %v6167_v4 = vld [vmem:[#allocation8 + $0x2e0] ss:$16 sps:$4 sm:$0xff]   ;;  %v326_v52 = vld [vmem:[%s7365_s7 + $0x48] sm:$0xff] }
  0x74   : > { %3728 = vmatprep.subr.bf16.mxu1 %v6164_v2  ;;  %v6168_v5 = vld [vmem:[#allocation8 + $0xc4] ss:$16 sps:$4 sm:$0xff]   ;;  %3668 = vmatpush1.bf16.msra.mxu0 %v6166_v3  ;;  %v6172_v7 = vld [vmem:[#allocation8 + $0xc0] ss:$16 sps:$4 sm:$0xff]   ;;  %v7386_v56 = vcombine.high %v318_v51, %v326_v52 }
  0x75   : > { %3729 = vmatpush1.bf16.msra.mxu1 %v6167_v4  ;;  %v6170_v6 = vld [vmem:[#allocation8 + $0x2c4] ss:$16 sps:$4 sm:$0xff]   ;;  %3669 = vmatprep.subr.bf16.mxu0 %v6168_v5  ;;  %v6173_v8 = vld [vmem:[#allocation8 + $0x2c0] ss:$16 sps:$4 sm:$0xff]  }
  0x76   : > { %3730 = vmatprep.subr.bf16.mxu1 %v6170_v6  ;;  %v6174_v9 = vld [vmem:[#allocation8 + $0xa4] ss:$16 sps:$4 sm:$0xff]   ;;  %v6178_v11 = vld [vmem:[#allocation8 + $0xa0] ss:$16 sps:$4 sm:$0xff]   ;;  %3760 = vmatprep.mubr.bf16.mxu1 %v7386_v56 }
  0x77   : > { %v6176_v10 = vld [vmem:[#allocation8 + $0x2a4] ss:$16 sps:$4 sm:$0xff]   ;;  %v6179_v12 = vld [vmem:[#allocation8 + $0x2a0] ss:$16 sps:$4 sm:$0xff]  }
  0x78   : > { %3670 = vmatpush1.bf16.msra.mxu0 %v6172_v7  ;;  %v6180_v13 = vld [vmem:[#allocation8 + $0x84] ss:$16 sps:$4 sm:$0xff]   ;;  %v6184_v15 = vld [vmem:[#allocation8 + $0x80] ss:$16 sps:$4 sm:$0xff]  }
  0x79   : > { %3731 = vmatpush1.bf16.msra.mxu1 %v6173_v8  ;;  %3671 = vmatprep.subr.bf16.mxu0 %v6174_v9  ;;  %v6182_v14 = vld [vmem:[#allocation8 + $0x284] ss:$16 sps:$4 sm:$0xff]   ;;  %v6185_v16 = vld [vmem:[#allocation8 + $0x280] ss:$16 sps:$4 sm:$0xff]  }
  0x7a   : > { %3732 = vmatprep.subr.bf16.mxu1 %v6176_v10  ;;  %v6186_v17 = vld [vmem:[#allocation8 + $0x64] ss:$16 sps:$4 sm:$0xff]   ;;  %v6190_v19 = vld [vmem:[#allocation8 + $0x60] ss:$16 sps:$4 sm:$0xff]   ;;  %v7392_v10 = vcombine.low %v318_v51, %v326_v52 }
  0x7b   : > { %v6188_v18 = vld [vmem:[#allocation8 + $0x264] ss:$16 sps:$4 sm:$0xff]   ;;  %v6191_v20 = vld [vmem:[#allocation8 + $0x260] ss:$16 sps:$4 sm:$0xff]  }
  0x7c   : > { %3672 = vmatpush1.bf16.msra.mxu0 %v6178_v11  ;;  %v6192_v21 = vld [vmem:[#allocation8 + $0x44] ss:$16 sps:$4 sm:$0xff]   ;;  %v6196_v23 = vld [vmem:[#allocation8 + $0x40] ss:$16 sps:$4 sm:$0xff]  }
  0x7d   : > { %3733 = vmatpush1.bf16.msra.mxu1 %v6179_v12  ;;  %3673 = vmatprep.subr.bf16.mxu0 %v6180_v13  ;;  %v6194_v22 = vld [vmem:[#allocation8 + $0x244] ss:$16 sps:$4 sm:$0xff]   ;;  %v6197_v24 = vld [vmem:[#allocation8 + $0x240] ss:$16 sps:$4 sm:$0xff]  }
  0x7e   : > { %3734 = vmatprep.subr.bf16.mxu1 %v6182_v14  ;;  %v6198_v25 = vld [vmem:[#allocation8 + $0x24] ss:$16 sps:$4 sm:$0xff]   ;;  %v6202_v27 = vld [vmem:[#allocation8 + $0x20] ss:$16 sps:$4 sm:$0xff]  }
  0x7f   : > { %v6200_v26 = vld [vmem:[#allocation8 + $0x224] ss:$16 sps:$4 sm:$0xff]   ;;  %v6203_v28 = vld [vmem:[#allocation8 + $0x220] ss:$16 sps:$4 sm:$0xff]  }
  0x80   : > { %3674 = vmatpush1.bf16.msra.mxu0 %v6184_v15  ;;  %v6204_v29 = vld [vmem:[#allocation8 + $0x4] ss:$16 sps:$4 sm:$0xff]   ;;  %v6208_v31 = vld [vmem:[#allocation8] ss:$16 sps:$4 sm:$0xff]  }
  0x81   : > { %3735 = vmatpush1.bf16.msra.mxu1 %v6185_v16  ;;  %3675 = vmatprep.subr.bf16.mxu0 %v6186_v17  ;;  %v6206_v30 = vld [vmem:[#allocation8 + $0x204] ss:$16 sps:$4 sm:$0xff]   ;;  %v6209_v32 = vld [vmem:[#allocation8 + $0x200] ss:$16 sps:$4 sm:$0xff]  }
  0x82   : > { %3736 = vmatprep.subr.bf16.mxu1 %v6188_v18  ;;  %v6210_v33 = vld [vmem:[#allocation8 + $0x1e4] ss:$16 sps:$4 sm:$0xff]   ;;  %v6214_v35 = vld [vmem:[#allocation8 + $0x1e0] ss:$16 sps:$4 sm:$0xff]  }
  0x83   : > { %v6212_v34 = vld [vmem:[#allocation8 + $0x3e4] ss:$16 sps:$4 sm:$0xff]   ;;  %v6215_v36 = vld [vmem:[#allocation8 + $0x3e0] ss:$16 sps:$4 sm:$0xff]  }
  0x84   : > { %3676 = vmatpush1.bf16.msra.mxu0 %v6190_v19  ;;  %v6216_v37 = vld [vmem:[#allocation8 + $0x1c4] ss:$16 sps:$4 sm:$0xff]   ;;  %v6220_v39 = vld [vmem:[#allocation8 + $0x1c0] ss:$16 sps:$4 sm:$0xff]  }
  0x85   : > { %3737 = vmatpush1.bf16.msra.mxu1 %v6191_v20  ;;  %3677 = vmatprep.subr.bf16.mxu0 %v6192_v21  ;;  %v6218_v38 = vld [vmem:[#allocation8 + $0x3c4] ss:$16 sps:$4 sm:$0xff]   ;;  %v6221_v40 = vld [vmem:[#allocation8 + $0x3c0] ss:$16 sps:$4 sm:$0xff]  }
  0x86   : > { %3738 = vmatprep.subr.bf16.mxu1 %v6194_v22  ;;  %v6222_v41 = vld [vmem:[#allocation8 + $0x1a4] ss:$16 sps:$4 sm:$0xff]   ;;  %v6226_v43 = vld [vmem:[#allocation8 + $0x1a0] ss:$16 sps:$4 sm:$0xff]  }
  0x87   : > { %v6224_v42 = vld [vmem:[#allocation8 + $0x3a4] ss:$16 sps:$4 sm:$0xff]   ;;  %v6227_v44 = vld [vmem:[#allocation8 + $0x3a0] ss:$16 sps:$4 sm:$0xff]  }
  0x88   : > { %3678 = vmatpush1.bf16.msra.mxu0 %v6196_v23  ;;  %v6228_v45 = vld [vmem:[#allocation8 + $0x184] ss:$16 sps:$4 sm:$0xff]   ;;  %v6232_v47 = vld [vmem:[#allocation8 + $0x180] ss:$16 sps:$4 sm:$0xff]  }
  0x89   : > { %3739 = vmatpush1.bf16.msra.mxu1 %v6197_v24  ;;  %3679 = vmatprep.subr.bf16.mxu0 %v6198_v25  ;;  %v6230_v46 = vld [vmem:[#allocation8 + $0x384] ss:$16 sps:$4 sm:$0xff]   ;;  %v6233_v48 = vld [vmem:[#allocation8 + $0x380] ss:$16 sps:$4 sm:$0xff]  }
  0x8a   : > { %3740 = vmatprep.subr.bf16.mxu1 %v6200_v26  ;;  %v317_v49 = vld [vmem:[%s7365_s7] sm:$0xff]  ;;  %v334_v26 = vld [vmem:[%s7365_s7 + $0x88] sm:$0xff] }
  0x8b   : > { %v325_v50 = vld [vmem:[%s7365_s7 + $0x40] sm:$0xff] }
  0x8c   : > { %3680 = vmatpush1.bf16.msra.mxu0 %v6202_v27  ;;  %v6234_v53 = vld [vmem:[#allocation8 + $0x164] ss:$16 sps:$4 sm:$0xff]   ;;  %v7384_v54 = vcombine.high %v317_v49, %v325_v50  ;;  %v6238_v57 = vld [vmem:[#allocation8 + $0x160] ss:$16 sps:$4 sm:$0xff]   ;;  %v7390_v9 = vcombine.low %v317_v49, %v325_v50  ;;  %v342_v27 = vld [vmem:[%s7365_s7 + $0xc8] sm:$0xff] }
  0x8d   : > { %3741 = vmatpush1.bf16.msra.mxu1 %v6203_v28  ;;  %3681 = vmatprep.subr.bf16.mxu0 %v6204_v29  ;;  %v6236_v55 = vld [vmem:[#allocation8 + $0x364] ss:$16 sps:$4 sm:$0xff]   ;;  %v6239_v58 = vld [vmem:[#allocation8 + $0x360] ss:$16 sps:$4 sm:$0xff]  }
  0x8e   : > { %3742 = vmatprep.subr.bf16.mxu1 %v6206_v30  ;;  %3699 = vmatprep.mubr.bf16.mxu0 %v7384_v54  ;;  %v6240_v59 = vld [vmem:[#allocation8 + $0x144] ss:$16 sps:$4 sm:$0xff]   ;;  %v6244_v61 = vld [vmem:[#allocation8 + $0x140] ss:$16 sps:$4 sm:$0xff]  }
  0x8f   : > { %v6242_v60 = vld [vmem:[#allocation8 + $0x344] ss:$16 sps:$4 sm:$0xff]   ;;  %v6245_v62 = vld [vmem:[#allocation8 + $0x340] ss:$16 sps:$4 sm:$0xff]  }
  0x90   : > { %3682 = vmatpush1.bf16.msra.mxu0 %v6208_v31  ;;  %v6246_v63 = vld [vmem:[#allocation8 + $0x124] ss:$16 sps:$4 sm:$0xff]   ;;  %v6250_v1 = vld [vmem:[#allocation8 + $0x120] ss:$16 sps:$4 sm:$0xff]   ;;  %v7404_v31 = vcombine.high %v334_v26, %v342_v27 }
  0x91   : > { %3743 = vmatpush1.bf16.msra.mxu1 %v6209_v32  ;;  %3683 = vmatprep.subr.bf16.mxu0 %v6210_v33  ;;  %v6248_v0 = vld [vmem:[#allocation8 + $0x324] ss:$16 sps:$4 sm:$0xff]   ;;  %v6251_v2 = vld [vmem:[#allocation8 + $0x320] ss:$16 sps:$4 sm:$0xff]   ;;  %v7406_v32 = vcombine.low %v334_v26, %v342_v27 }
  0x92   : > { %3744 = vmatprep.subr.bf16.mxu1 %v6212_v34  ;;  %v6252_v3 = vld [vmem:[#allocation8 + $0x104] ss:$16 sps:$4 sm:$0xff]   ;;  %v6256_v5 = vld [vmem:[#allocation8 + $0x100] ss:$16 sps:$4 sm:$0xff]  }
  0x93   : > { %v6254_v4 = vld [vmem:[#allocation8 + $0x304] ss:$16 sps:$4 sm:$0xff]   ;;  %v6257_v6 = vld [vmem:[#allocation8 + $0x300] ss:$16 sps:$4 sm:$0xff]  }
  0x94   : > { %3684 = vmatpush2.bf16.msra.mxu0 %v6214_v35  ;;  %v6260_v7 = vld [vmem:[#allocation8 + $0x4e4] ss:$16 sps:$4 sm:$0xff]   ;;  %v6258_v11 = vld [vmem:[#allocation8 + $0x4e0] ss:$16 sps:$4 sm:$0xff]  }
  0x95   : > { %3745 = vmatpush2.bf16.msra.mxu1 %v6215_v36  ;;  %3685 = vmatprep.subr.bf16.mxu0 %v6216_v37  ;;  %v6263_v8 = vld [vmem:[#allocation8 + $0x6e4] ss:$16 sps:$4 sm:$0xff]   ;;  %v6261_v12 = vld [vmem:[#allocation8 + $0x6e0] ss:$16 sps:$4 sm:$0xff]  }
  0x96   : > { %3746 = vmatprep.subr.bf16.mxu1 %v6218_v38  ;;  %v6266_v13 = vld [vmem:[#allocation8 + $0x4c4] ss:$16 sps:$4 sm:$0xff]   ;;  %v6264_v15 = vld [vmem:[#allocation8 + $0x4c0] ss:$16 sps:$4 sm:$0xff]   ;;  %v350_v38 = vld [vmem:[%s7365_s7 + $0x108] sm:$0xff] }
  0x97   : > { %v6269_v14 = vld [vmem:[#allocation8 + $0x6c4] ss:$16 sps:$4 sm:$0xff]   ;;  %v6267_v16 = vld [vmem:[#allocation8 + $0x6c0] ss:$16 sps:$4 sm:$0xff]  }
  0x98   : > { %3686 = vmatpush2.bf16.msra.mxu0 %v6220_v39  ;;  %v6272_v17 = vld [vmem:[#allocation8 + $0x4a4] ss:$16 sps:$4 sm:$0xff]   ;;  %v6270_v19 = vld [vmem:[#allocation8 + $0x4a0] ss:$16 sps:$4 sm:$0xff]  }
  0x99   : > { %3747 = vmatpush2.bf16.msra.mxu1 %v6221_v40  ;;  %3687 = vmatprep.subr.bf16.mxu0 %v6222_v41  ;;  %v6275_v18 = vld [vmem:[#allocation8 + $0x6a4] ss:$16 sps:$4 sm:$0xff]   ;;  %v6273_v20 = vld [vmem:[#allocation8 + $0x6a0] ss:$16 sps:$4 sm:$0xff]  }
  0x9a   : > { %3748 = vmatprep.subr.bf16.mxu1 %v6224_v42  ;;  %v6278_v21 = vld [vmem:[#allocation8 + $0x484] ss:$16 sps:$4 sm:$0xff]   ;;  %v6276_v28 = vld [vmem:[#allocation8 + $0x480] ss:$16 sps:$4 sm:$0xff]   ;;  %v7416_v42 = vcombine.high %v350_v38, %v350_v38 }
  0x9b   : > { %v6281_v22 = vld [vmem:[#allocation8 + $0x684] ss:$16 sps:$4 sm:$0xff]   ;;  %v6279_v29 = vld [vmem:[#allocation8 + $0x680] ss:$16 sps:$4 sm:$0xff]  }
  0x9c   : > { %3688 = vmatpush2.bf16.msra.mxu0 %v6226_v43  ;;  %v333_v23 = vld [vmem:[%s7365_s7 + $0x80] sm:$0xff] }
  0x9d   : > { %3749 = vmatpush2.bf16.msra.mxu1 %v6227_v44  ;;  %3689 = vmatprep.subr.bf16.mxu0 %v6228_v45  ;;  %v341_v24 = vld [vmem:[%s7365_s7 + $0xc0] sm:$0xff]  ;;  %v7422_v44 = vcombine.low %v350_v38, %v350_v38 }
  0x9e   : > { %3750 = vmatprep.subr.bf16.mxu1 %v6230_v46  ;;  %v7398_v25 = vcombine.high %v333_v23, %v341_v24  ;;  %v7402_v30 = vcombine.low %v333_v23, %v341_v24  ;;  %v6284_v33 = vld [vmem:[#allocation8 + $0x464] ss:$16 sps:$4 sm:$0xff]   ;;  %v6282_v35 = vld [vmem:[#allocation8 + $0x460] ss:$16 sps:$4 sm:$0xff]  }
  0x9f   : > { %v6287_v34 = vld [vmem:[#allocation8 + $0x664] ss:$16 sps:$4 sm:$0xff]   ;;  %v6285_v36 = vld [vmem:[#allocation8 + $0x660] ss:$16 sps:$4 sm:$0xff]  }
  0xa0   : > { %3690 = vmatpush2.bf16.msra.mxu0 %v6232_v47  ;;  %v349_v37 = vld [vmem:[%s7365_s7 + $0x100] sm:$0xff] }
  0xa1   : > { %3751 = vmatpush2.bf16.msra.mxu1 %v6233_v48  ;;  %3691 = vmatprep.subr.bf16.mxu0 %v6234_v53  ;;  %v6290_v39 = vld [vmem:[#allocation8 + $0x444] ss:$16 sps:$4 sm:$0xff]   ;;  %v7414_v41 = vcombine.high %v349_v37, %v349_v37  ;;  %v7419_v43 = vcombine.low %v349_v37, %v349_v37  ;;  %v6288_v45 = vld [vmem:[#allocation8 + $0x440] ss:$16 sps:$4 sm:$0xff]  }
  0xa2   : > { %3752 = vmatprep.subr.bf16.mxu1 %v6236_v55  ;;  %v6293_v40 = vld [vmem:[#allocation8 + $0x644] ss:$16 sps:$4 sm:$0xff]   ;;  %v6291_v46 = vld [vmem:[#allocation8 + $0x640] ss:$16 sps:$4 sm:$0xff]  }
  0xa3   : > { %v6296_v47 = vld [vmem:[#allocation8 + $0x424] ss:$16 sps:$4 sm:$0xff]   ;;  %v6294_v49 = vld [vmem:[#allocation8 + $0x420] ss:$16 sps:$4 sm:$0xff]  }
  0xa4   : > { %3692 = vmatpush2.bf16.msra.mxu0 %v6238_v57  ;;  %v6299_v48 = vld [vmem:[#allocation8 + $0x624] ss:$16 sps:$4 sm:$0xff]   ;;  %v6297_v50 = vld [vmem:[#allocation8 + $0x620] ss:$16 sps:$4 sm:$0xff]   ;;  %v7433_v57 = vld [vmem:[%s7365_s7 + $0x18] sm:$0xff] }
  0xa5   : > { %3753 = vmatpush2.bf16.msra.mxu1 %v6239_v58  ;;  %3693 = vmatprep.subr.bf16.mxu0 %v6240_v59  ;;  %v6302_v51 = vld [vmem:[#allocation8 + $0x404] ss:$16 sps:$4 sm:$0xff]   ;;  %v7436_v58 = vld [vmem:[%s7365_s7 + $0x58] sm:$0xff]  ;;  %v6339_v23 = vld [vmem:[#allocation8 + $0x540] ss:$16 sps:$4 sm:$0xff]  }
  0xa6   : > { %3754 = vmatprep.subr.bf16.mxu1 %v6242_v60  ;;  %v6305_v52 = vld [vmem:[#allocation8 + $0x604] ss:$16 sps:$4 sm:$0xff]   ;;  %v7444_v60 = vcombine.high %v7433_v57, %v7436_v58  ;;  %v6342_v24 = vld [vmem:[#allocation8 + $0x740] ss:$16 sps:$4 sm:$0xff]  }
  0xa7   : > { %v7427_v53 = vld [vmem:[%s7365_s7 + $0x10] sm:$0xff] }
  0xa8   : > { %3694 = vmatpush2.bf16.msra.mxu0 %v6244_v61  ;;  %v7430_v55 = vld [vmem:[%s7365_s7 + $0x50] sm:$0xff] }
  0xa9   : > { %3755 = vmatpush2.bf16.msra.mxu1 %v6245_v62  ;;  %3695 = vmatprep.subr.bf16.mxu0 %v6246_v63  ;;  %v7440_v59 = vcombine.high %v7427_v53, %v7430_v55  ;;  %v6300_v61 = vld [vmem:[#allocation8 + $0x400] ss:$16 sps:$4 sm:$0xff]   ;;  %v6308_v63 = vld [vmem:[#allocation8 + $0x5e4] ss:$16 sps:$4 sm:$0xff]  }
  0xaa   : > { %3756 = vmatprep.subr.bf16.mxu1 %v6248_v0  ;;  %v6303_v62 = vld [vmem:[#allocation8 + $0x600] ss:$16 sps:$4 sm:$0xff]   ;;  %v6311_v0 = vld [vmem:[#allocation8 + $0x7e4] ss:$16 sps:$4 sm:$0xff]  }
  0xab   : > { %v6348_v26 = vld [vmem:[#allocation8 + $0x524] ss:$16 sps:$4 sm:$0xff]  }
  0xac   : > { %3696 = vmatpush2.bf16.msra.mxu0 %v6250_v1  ;;  %v6306_v1 = vld [vmem:[#allocation8 + $0x5e0] ss:$16 sps:$4 sm:$0xff]   ;;  %v6351_v27 = vld [vmem:[#allocation8 + $0x724] ss:$16 sps:$4 sm:$0xff]  }
  0xad   : > { %3757 = vmatpush2.bf16.msra.mxu1 %v6251_v2  ;;  %3697 = vmatprep.subr.bf16.mxu0 %v6252_v3  ;;  %v6309_v2 = vld [vmem:[#allocation8 + $0x7e0] ss:$16 sps:$4 sm:$0xff]   ;;  %v6314_v3 = vld [vmem:[#allocation8 + $0x5c4] ss:$16 sps:$4 sm:$0xff]  }
  0xae   : > { %3758 = vmatprep.subr.bf16.mxu1 %v6254_v4  ;;  %v6317_v4 = vld [vmem:[#allocation8 + $0x7c4] ss:$16 sps:$4 sm:$0xff]  }
  0xaf   : > { %v6360_v37 = vld [vmem:[#allocation8 + $0x8e4] ss:$16 sps:$4 sm:$0xff]  }
  0xb0   : > { %3698 = vmatpush2.bf16.msra.mxu0 %v6256_v5  ;;  %v6312_v5 = vld [vmem:[#allocation8 + $0x5c0] ss:$16 sps:$4 sm:$0xff]   ;;  %v6363_v38 = vld [vmem:[#allocation8 + $0xae4] ss:$16 sps:$4 sm:$0xff]  }
  0xb1   : > { %3759 = vmatpush2.bf16.msra.mxu1 %v6257_v6  ;;  %3789 = vmatprep.subr.bf16.mxu0 %v6260_v7  ;;  %v6315_v6 = vld [vmem:[#allocation8 + $0x7c0] ss:$16 sps:$4 sm:$0xff]   ;;  %v6320_v7 = vld [vmem:[#allocation8 + $0x5a4] ss:$16 sps:$4 sm:$0xff]  }
  0xb2   : > { %3850 = vmatprep.subr.bf16.mxu1 %v6263_v8  ;;  %v6323_v8 = vld [vmem:[#allocation8 + $0x7a4] ss:$16 sps:$4 sm:$0xff]  }
  0xb3   : > { %3700 = vmatmul.mubr.bf16.vlgmr.msra.gmra.mxu0 %v7390_v9 }
  0xb4   : > { %3761 = vmatmul.mubr.bf16.vlgmr.msra.gmra.mxu1 %v7392_v10  ;;  %3790 = vmatpush1.bf16.msra.mxu0 %v6258_v11  ;;  %v6318_v11 = vld [vmem:[#allocation8 + $0x5a0] ss:$16 sps:$4 sm:$0xff]  }
  0xb5   : > { %3851 = vmatpush1.bf16.msra.mxu1 %v6261_v12  ;;  %3791 = vmatprep.subr.bf16.mxu0 %v6266_v13  ;;  %v6321_v12 = vld [vmem:[#allocation8 + $0x7a0] ss:$16 sps:$4 sm:$0xff]   ;;  %v6326_v13 = vld [vmem:[#allocation8 + $0x584] ss:$16 sps:$4 sm:$0xff]  }
  0xb6   : > { %3852 = vmatprep.subr.bf16.mxu1 %v6269_v14  ;;  %3709 = vmatprep.mubr.bf16.mxu0 %v7398_v25  ;;  %v6329_v14 = vld [vmem:[#allocation8 + $0x784] ss:$16 sps:$4 sm:$0xff]  }
  0xb7   : > { %3770 = vmatprep.mubr.bf16.mxu1 %v7404_v31 }
  0xb8   : > { %3792 = vmatpush1.bf16.msra.mxu0 %v6264_v15  ;;  %v6324_v15 = vld [vmem:[#allocation8 + $0x580] ss:$16 sps:$4 sm:$0xff]  }
  0xb9   : > { %3853 = vmatpush1.bf16.msra.mxu1 %v6267_v16  ;;  %3793 = vmatprep.subr.bf16.mxu0 %v6272_v17  ;;  %v6327_v16 = vld [vmem:[#allocation8 + $0x780] ss:$16 sps:$4 sm:$0xff]   ;;  %v6332_v17 = vld [vmem:[#allocation8 + $0x564] ss:$16 sps:$4 sm:$0xff]  }
  0xba   : > { %3854 = vmatprep.subr.bf16.mxu1 %v6275_v18  ;;  %v6335_v18 = vld [vmem:[#allocation8 + $0x764] ss:$16 sps:$4 sm:$0xff]  }
  0xbb   : > { %3710 = vmatmul.mubr.bf16.gmra.mxu0 %v7402_v30 }
  0xbc   : > { %3794 = vmatpush1.bf16.msra.mxu0 %v6270_v19  ;;  %3771 = vmatmul.mubr.bf16.gmra.mxu1 %v7406_v32  ;;  %v6330_v19 = vld [vmem:[#allocation8 + $0x560] ss:$16 sps:$4 sm:$0xff]  }
  0xbd   : > { %3855 = vmatpush1.bf16.msra.mxu1 %v6273_v20  ;;  %3795 = vmatprep.subr.bf16.mxu0 %v6278_v21  ;;  %v6333_v20 = vld [vmem:[#allocation8 + $0x760] ss:$16 sps:$4 sm:$0xff]   ;;  %v6341_v21 = vld [vmem:[#allocation8 + $0x544] ss:$16 sps:$4 sm:$0xff]  }
  0xbe   : > { %3856 = vmatprep.subr.bf16.mxu1 %v6281_v22  ;;  %3719 = vmatprep.mubr.bf16.mxu0 %v7414_v41  ;;  %v6344_v22 = vld [vmem:[#allocation8 + $0x744] ss:$16 sps:$4 sm:$0xff]  }
  0xbf   : > { %3780 = vmatprep.mubr.bf16.mxu1 %v7416_v42 }
  0xc0   : > { %3796 = vmatpush1.bf16.msra.mxu0 %v6276_v28  ;;  %v6346_v28 = vld [vmem:[#allocation8 + $0x520] ss:$16 sps:$4 sm:$0xff]  }
  0xc1   : > { %3857 = vmatpush1.bf16.msra.mxu1 %v6279_v29  ;;  %3797 = vmatprep.subr.bf16.mxu0 %v6284_v33  ;;  %v6349_v29 = vld [vmem:[#allocation8 + $0x720] ss:$16 sps:$4 sm:$0xff]   ;;  %v6354_v33 = vld [vmem:[#allocation8 + $0x504] ss:$16 sps:$4 sm:$0xff]  }
  0xc2   : > { %3858 = vmatprep.subr.bf16.mxu1 %v6287_v34  ;;  %v6357_v34 = vld [vmem:[#allocation8 + $0x704] ss:$16 sps:$4 sm:$0xff]  }
  0xc3   : > { %3720 = vmatmul.mubr.bf16.gmra.mxu0 %v7419_v43 }
  0xc4   : > { %3798 = vmatpush1.bf16.msra.mxu0 %v6282_v35  ;;  %3781 = vmatmul.mubr.bf16.gmra.mxu1 %v7422_v44  ;;  %v6352_v35 = vld [vmem:[#allocation8 + $0x500] ss:$16 sps:$4 sm:$0xff]  }
  0xc5   : > { %3859 = vmatpush1.bf16.msra.mxu1 %v6285_v36  ;;  %3799 = vmatprep.subr.bf16.mxu0 %v6290_v39  ;;  %v6355_v36 = vld [vmem:[#allocation8 + $0x700] ss:$16 sps:$4 sm:$0xff]  }
  0xc6   : > { %3860 = vmatprep.subr.bf16.mxu1 %v6293_v40  ;;  %3821 = vmatprep.mubr.bf16.mxu0 %v7440_v59  ;;  %v6358_v39 = vld [vmem:[#allocation8 + $0x8e0] ss:$16 sps:$4 sm:$0xff]  }
  0xc7   : > { %3882 = vmatprep.mubr.bf16.mxu1 %v7444_v60  ;;  %v6361_v40 = vld [vmem:[#allocation8 + $0xae0] ss:$16 sps:$4 sm:$0xff]  }
  0xc8   : > { %3800 = vmatpush1.bf16.msra.mxu0 %v6288_v45  ;;  %v335_v45 = vld [vmem:[%s7365_s7 + $0x90] sm:$0xff] }
  0xc9   : > { %3861 = vmatpush1.bf16.msra.mxu1 %v6291_v46  ;;  %3801 = vmatprep.subr.bf16.mxu0 %v6296_v47  ;;  %v343_v46 = vld [vmem:[%s7365_s7 + $0xd0] sm:$0xff]  ;;  %v7452_v47 = vcombine.low %v7427_v53, %v7430_v55 }
  0xca   : > { %3862 = vmatprep.subr.bf16.mxu1 %v6299_v48  ;;  %v7456_v48 = vcombine.low %v7433_v57, %v7436_v58  ;;  %v6364_v53 = vld [vmem:[#allocation8 + $0x8c0] ss:$16 sps:$4 sm:$0xff]   ;;  %v6372_v57 = vld [vmem:[#allocation8 + $0x8a4] ss:$16 sps:$4 sm:$0xff]  }
  0xcb   : > { %v6367_v55 = vld [vmem:[#allocation8 + $0xac0] ss:$16 sps:$4 sm:$0xff]   ;;  %v6375_v58 = vld [vmem:[#allocation8 + $0xaa4] ss:$16 sps:$4 sm:$0xff]  }
  0xcc   : > { %3802 = vmatpush1.bf16.msra.mxu0 %v6294_v49  ;;  %v336_v49 = vld [vmem:[%s7365_s7 + $0x98] sm:$0xff] }
  0xcd   : > { %3863 = vmatpush1.bf16.msra.mxu1 %v6297_v50  ;;  %3803 = vmatprep.subr.bf16.mxu0 %v6302_v51  ;;  %v344_v50 = vld [vmem:[%s7365_s7 + $0xd8] sm:$0xff]  ;;  %v6366_v51 = vld [vmem:[#allocation8 + $0x8c4] ss:$16 sps:$4 sm:$0xff]  }
  0xce   : > { %3864 = vmatprep.subr.bf16.mxu1 %v6305_v52  ;;  %v6369_v52 = vld [vmem:[#allocation8 + $0xac4] ss:$16 sps:$4 sm:$0xff]  }
  0xd0   : > { %3804 = vmatpush1.bf16.msra.mxu0 %v6300_v61  ;;  %v7460_v61 = vcombine.high %v335_v45, %v343_v46 }
  0xd1   : > { %3865 = vmatpush1.bf16.msra.mxu1 %v6303_v62  ;;  %3805 = vmatprep.subr.bf16.mxu0 %v6308_v63  ;;  %v7462_v62 = vcombine.high %v336_v49, %v344_v50  ;;  %v6370_v63 = vld [vmem:[#allocation8 + $0x8a0] ss:$16 sps:$4 sm:$0xff]  }
  0xd2   : > { %3866 = vmatprep.subr.bf16.mxu1 %v6311_v0  ;;  %v7468_v0 = vcombine.low %v335_v45, %v343_v46  ;;  %v6412_v45 = vld [vmem:[#allocation8 + $0x9e4] ss:$16 sps:$4 sm:$0xff]  }
  0xd3   : > { %v6415_v46 = vld [vmem:[#allocation8 + $0xbe4] ss:$16 sps:$4 sm:$0xff]  }
  0xd4   : > { %3806 = vmatpush2.bf16.msra.mxu0 %v6306_v1  ;;  %v6373_v1 = vld [vmem:[#allocation8 + $0xaa0] ss:$16 sps:$4 sm:$0xff]  }
  0xd5   : > { %3867 = vmatpush2.bf16.msra.mxu1 %v6309_v2  ;;  %3807 = vmatprep.subr.bf16.mxu0 %v6314_v3  ;;  %v7470_v2 = vcombine.low %v336_v49, %v344_v50  ;;  %v351_v3 = vld [vmem:[%s7365_s7 + $0x110] sm:$0xff] }
  0xd6   : > { %3868 = vmatprep.subr.bf16.mxu1 %v6317_v4  ;;  %v352_v4 = vld [vmem:[%s7365_s7 + $0x118] sm:$0xff]  ;;  %v6410_v49 = vld [vmem:[#allocation8 + $0x9e0] ss:$16 sps:$4 sm:$0xff]  }
  0xd7   : > { %v6413_v50 = vld [vmem:[#allocation8 + $0xbe0] ss:$16 sps:$4 sm:$0xff]  }
  0xd8   : > { %3808 = vmatpush2.bf16.msra.mxu0 %v6312_v5  ;;  %v6378_v5 = vld [vmem:[#allocation8 + $0x884] ss:$16 sps:$4 sm:$0xff]  }
  0xd9   : > { %3869 = vmatpush2.bf16.msra.mxu1 %v6315_v6  ;;  %3809 = vmatprep.subr.bf16.mxu0 %v6320_v7  ;;  %v6381_v6 = vld [vmem:[#allocation8 + $0xa84] ss:$16 sps:$4 sm:$0xff]   ;;  %v7474_v7 = vcombine.high %v351_v3, %v351_v3 }
  0xda   : > { %3870 = vmatprep.subr.bf16.mxu1 %v6323_v8  ;;  %v7476_v8 = vcombine.high %v352_v4, %v352_v4 }
  0xdc   : > { %3810 = vmatpush2.bf16.msra.mxu0 %v6318_v11  ;;  %v6376_v11 = vld [vmem:[#allocation8 + $0x880] ss:$16 sps:$4 sm:$0xff]  }
  0xdd   : > { %3871 = vmatpush2.bf16.msra.mxu1 %v6321_v12  ;;  %3811 = vmatprep.subr.bf16.mxu0 %v6326_v13  ;;  %v6379_v12 = vld [vmem:[#allocation8 + $0xa80] ss:$16 sps:$4 sm:$0xff]   ;;  %v6386_v13 = vld [vmem:[#allocation8 + $0x864] ss:$16 sps:$4 sm:$0xff]  }
  0xde   : > { %3872 = vmatprep.subr.bf16.mxu1 %v6329_v14  ;;  %v6389_v14 = vld [vmem:[#allocation8 + $0xa64] ss:$16 sps:$4 sm:$0xff]  }
  0xe0   : > { %3812 = vmatpush2.bf16.msra.mxu0 %v6324_v15  ;;  %v7481_v15 = vld [vmem:[%s7365_s7 + $0x20] sm:$0xff] }
  0xe1   : > { %3873 = vmatpush2.bf16.msra.mxu1 %v6327_v16  ;;  %3813 = vmatprep.subr.bf16.mxu0 %v6332_v17  ;;  %v7484_v16 = vld [vmem:[%s7365_s7 + $0x60] sm:$0xff]  ;;  %v7489_v17 = vld [vmem:[%s7365_s7 + $0x28] sm:$0xff] }
  0xe2   : > { %3874 = vmatprep.subr.bf16.mxu1 %v6335_v18  ;;  %v7491_v18 = vcombine.low %v351_v3, %v351_v3  ;;  %v6430_v3 = vld [vmem:[#allocation8 + $0x984] ss:$16 sps:$4 sm:$0xff]  }
  0xe4   : > { %3814 = vmatpush2.bf16.msra.mxu0 %v6330_v19  ;;  %v7493_v19 = vcombine.low %v352_v4, %v352_v4  ;;  %v6433_v4 = vld [vmem:[#allocation8 + $0xb84] ss:$16 sps:$4 sm:$0xff]  }
  0xe5   : > { %3875 = vmatpush2.bf16.msra.mxu1 %v6333_v20  ;;  %3815 = vmatprep.subr.bf16.mxu0 %v6341_v21  ;;  %v7496_v20 = vld [vmem:[%s7365_s7 + $0x68] sm:$0xff]  ;;  %v6384_v21 = vld [vmem:[#allocation8 + $0x860] ss:$16 sps:$4 sm:$0xff]  }
  0xe6   : > { %3876 = vmatprep.subr.bf16.mxu1 %v6344_v22  ;;  %v6387_v22 = vld [vmem:[#allocation8 + $0xa60] ss:$16 sps:$4 sm:$0xff]  }
  0xe8   : > { %3816 = vmatpush2.bf16.msra.mxu0 %v6339_v23  ;;  %v6394_v23 = vld [vmem:[#allocation8 + $0x844] ss:$16 sps:$4 sm:$0xff]  }
  0xe9   : > { %3877 = vmatpush2.bf16.msra.mxu1 %v6342_v24  ;;  %3817 = vmatprep.subr.bf16.mxu0 %v6348_v26  ;;  %v6397_v24 = vld [vmem:[#allocation8 + $0xa44] ss:$16 sps:$4 sm:$0xff]   ;;  %v7500_v26 = vcombine.high %v7481_v15, %v7484_v16 }
  0xea   : > { %3878 = vmatprep.subr.bf16.mxu1 %v6351_v27  ;;  %v7504_v27 = vcombine.high %v7489_v17, %v7496_v20 }
  0xec   : > { %3818 = vmatpush2.bf16.msra.mxu0 %v6346_v28  ;;  %v6392_v28 = vld [vmem:[#allocation8 + $0x840] ss:$16 sps:$4 sm:$0xff]  }
  0xed   : > { %3879 = vmatpush2.bf16.msra.mxu1 %v6349_v29  ;;  %3819 = vmatprep.subr.bf16.mxu0 %v6354_v33  ;;  %v6395_v29 = vld [vmem:[#allocation8 + $0xa40] ss:$16 sps:$4 sm:$0xff]   ;;  %v6400_v33 = vld [vmem:[#allocation8 + $0x824] ss:$16 sps:$4 sm:$0xff]  }
  0xee   : > { %3880 = vmatprep.subr.bf16.mxu1 %v6357_v34  ;;  %v6403_v34 = vld [vmem:[#allocation8 + $0xa24] ss:$16 sps:$4 sm:$0xff]  }
  0xf0   : > { %3820 = vmatpush2.bf16.msra.mxu0 %v6352_v35  ;;  %v6398_v35 = vld [vmem:[#allocation8 + $0x820] ss:$16 sps:$4 sm:$0xff]  }
  0xf1   : > { %3881 = vmatpush2.bf16.msra.mxu1 %v6355_v36  ;;  %3911 = vmatprep.subr.bf16.mxu0 %v6360_v37  ;;  %v6401_v36 = vld [vmem:[#allocation8 + $0xa20] ss:$16 sps:$4 sm:$0xff]   ;;  %v6406_v37 = vld [vmem:[#allocation8 + $0x804] ss:$16 sps:$4 sm:$0xff]  }
  0xf2   : > { %3972 = vmatprep.subr.bf16.mxu1 %v6363_v38  ;;  %v6409_v38 = vld [vmem:[#allocation8 + $0xa04] ss:$16 sps:$4 sm:$0xff]  }
  0xf3   : > { %3822 = vmatmul.mubr.bf16.vlgmr.msra.gmra.mxu0 %v7452_v47 }
  0xf4   : > { %3883 = vmatmul.mubr.bf16.vlgmr.msra.gmra.mxu1 %v7456_v48  ;;  %3912 = vmatpush1.bf16.msra.mxu0 %v6358_v39  ;;  %v6404_v39 = vld [vmem:[#allocation8 + $0x800] ss:$16 sps:$4 sm:$0xff]  }
  0xf5   : > { %3973 = vmatpush1.bf16.msra.mxu1 %v6361_v40  ;;  %3913 = vmatprep.subr.bf16.mxu0 %v6366_v51  ;;  %v6407_v40 = vld [vmem:[#allocation8 + $0xa00] ss:$16 sps:$4 sm:$0xff]   ;;  %v6418_v51 = vld [vmem:[#allocation8 + $0x9c4] ss:$16 sps:$4 sm:$0xff]  }
  0xf6   : > { %3974 = vmatprep.subr.bf16.mxu1 %v6369_v52  ;;  %3831 = vmatprep.mubr.bf16.mxu0 %v7460_v61  ;;  %v6421_v52 = vld [vmem:[#allocation8 + $0xbc4] ss:$16 sps:$4 sm:$0xff]  }
  0xf7   : > { %3892 = vmatprep.mubr.bf16.mxu1 %v7462_v62 }
  0xf8   : > { %3914 = vmatpush1.bf16.msra.mxu0 %v6364_v53  ;;  %v6416_v53 = vld [vmem:[#allocation8 + $0x9c0] ss:$16 sps:$4 sm:$0xff]  }
  0xf9   : > { %3975 = vmatpush1.bf16.msra.mxu1 %v6367_v55  ;;  %3915 = vmatprep.subr.bf16.mxu0 %v6372_v57  ;;  %v6419_v55 = vld [vmem:[#allocation8 + $0xbc0] ss:$16 sps:$4 sm:$0xff]   ;;  %v6424_v57 = vld [vmem:[#allocation8 + $0x9a4] ss:$16 sps:$4 sm:$0xff]  }
  0xfa   : > { %3976 = vmatprep.subr.bf16.mxu1 %v6375_v58  ;;  %v6427_v58 = vld [vmem:[#allocation8 + $0xba4] ss:$16 sps:$4 sm:$0xff]  }
  0xfb   : > { %3832 = vmatmul.mubr.bf16.gmra.mxu0 %v7468_v0 }
  0xfc   : > { %3893 = vmatmul.mubr.bf16.gmra.mxu1 %v7470_v2  ;;  %3916 = vmatpush1.bf16.msra.mxu0 %v6370_v63  ;;  %v6422_v63 = vld [vmem:[#allocation8 + $0x9a0] ss:$16 sps:$4 sm:$0xff]  }
  0xfd   : > { %3977 = vmatpush1.bf16.msra.mxu1 %v6373_v1  ;;  %3917 = vmatprep.subr.bf16.mxu0 %v6378_v5  ;;  %v6425_v1 = vld [vmem:[#allocation8 + $0xba0] ss:$16 sps:$4 sm:$0xff]  }
  0xfe   : > { %3978 = vmatprep.subr.bf16.mxu1 %v6381_v6  ;;  %3841 = vmatprep.mubr.bf16.mxu0 %v7474_v7  ;;  %v6428_v5 = vld [vmem:[#allocation8 + $0x980] ss:$16 sps:$4 sm:$0xff]  }
  0xff   : > { %3902 = vmatprep.mubr.bf16.mxu1 %v7476_v8  ;;  %v6431_v6 = vld [vmem:[#allocation8 + $0xb80] ss:$16 sps:$4 sm:$0xff]  }
 0x100   : > { %3918 = vmatpush1.bf16.msra.mxu0 %v6376_v11  ;;  %v6436_v11 = vld [vmem:[#allocation8 + $0x964] ss:$16 sps:$4 sm:$0xff]  }
 0x101   : > { %3979 = vmatpush1.bf16.msra.mxu1 %v6379_v12  ;;  %3919 = vmatprep.subr.bf16.mxu0 %v6386_v13  ;;  %v6439_v12 = vld [vmem:[#allocation8 + $0xb64] ss:$16 sps:$4 sm:$0xff]   ;;  %v6434_v13 = vld [vmem:[#allocation8 + $0x960] ss:$16 sps:$4 sm:$0xff]  }
 0x102   : > { %3980 = vmatprep.subr.bf16.mxu1 %v6389_v14  ;;  %v6437_v14 = vld [vmem:[#allocation8 + $0xb60] ss:$16 sps:$4 sm:$0xff]  }
 0x103   : > { %3842 = vmatmul.mubr.bf16.gmra.mxu0 %v7491_v18 }
 0x104   : > { %3903 = vmatmul.mubr.bf16.gmra.mxu1 %v7493_v19  ;;  %3920 = vmatpush1.bf16.msra.mxu0 %v6384_v21  ;;  %v6442_v21 = vld [vmem:[#allocation8 + $0x944] ss:$16 sps:$4 sm:$0xff]  }
 0x105   : > { %3981 = vmatpush1.bf16.msra.mxu1 %v6387_v22  ;;  %3921 = vmatprep.subr.bf16.mxu0 %v6394_v23  ;;  %v6445_v22 = vld [vmem:[#allocation8 + $0xb44] ss:$16 sps:$4 sm:$0xff]   ;;  %v6440_v23 = vld [vmem:[#allocation8 + $0x940] ss:$16 sps:$4 sm:$0xff]  }
 0x106   : > { %3982 = vmatprep.subr.bf16.mxu1 %v6397_v24  ;;  %3943 = vmatprep.mubr.bf16.mxu0 %v7500_v26  ;;  %v6443_v24 = vld [vmem:[#allocation8 + $0xb40] ss:$16 sps:$4 sm:$0xff]  }
 0x107   : > { %4004 = vmatprep.mubr.bf16.mxu1 %v7504_v27 }
 0x108   : > { %3922 = vmatpush1.bf16.msra.mxu0 %v6392_v28  ;;  %v6448_v28 = vld [vmem:[#allocation8 + $0x924] ss:$16 sps:$4 sm:$0xff]  }
 0x109   : > { %3983 = vmatpush1.bf16.msra.mxu1 %v6395_v29  ;;  %3923 = vmatprep.subr.bf16.mxu0 %v6400_v33  ;;  %v6451_v29 = vld [vmem:[#allocation8 + $0xb24] ss:$16 sps:$4 sm:$0xff]   ;;  %v6446_v33 = vld [vmem:[#allocation8 + $0x920] ss:$16 sps:$4 sm:$0xff]  }
 0x10a   : > { %3984 = vmatprep.subr.bf16.mxu1 %v6403_v34  ;;  %v6449_v34 = vld [vmem:[#allocation8 + $0xb20] ss:$16 sps:$4 sm:$0xff]  }
 0x10c   : > { %3924 = vmatpush1.bf16.msra.mxu0 %v6398_v35  ;;  %v6454_v35 = vld [vmem:[#allocation8 + $0x904] ss:$16 sps:$4 sm:$0xff]  }
 0x10d   : > { %3985 = vmatpush1.bf16.msra.mxu1 %v6401_v36  ;;  %3925 = vmatprep.subr.bf16.mxu0 %v6406_v37  ;;  %v6457_v36 = vld [vmem:[#allocation8 + $0xb04] ss:$16 sps:$4 sm:$0xff]   ;;  %v6452_v37 = vld [vmem:[#allocation8 + $0x900] ss:$16 sps:$4 sm:$0xff]  }
 0x10e   : > { %3986 = vmatprep.subr.bf16.mxu1 %v6409_v38  ;;  %v6455_v38 = vld [vmem:[#allocation8 + $0xb00] ss:$16 sps:$4 sm:$0xff]  }
 0x110   : > { %3926 = vmatpush1.bf16.msra.mxu0 %v6404_v39  ;;  %v6460_v39 = vld [vmem:[#allocation8 + $0xce4] ss:$16 sps:$4 sm:$0xff]  }
 0x111   : > { %3987 = vmatpush1.bf16.msra.mxu1 %v6407_v40  ;;  %3927 = vmatprep.subr.bf16.mxu0 %v6412_v45  ;;  %v6463_v40 = vld [vmem:[#allocation8 + $0xee4] ss:$16 sps:$4 sm:$0xff]   ;;  %v6458_v45 = vld [vmem:[#allocation8 + $0xce0] ss:$16 sps:$4 sm:$0xff]  }
 0x112   : > { %3988 = vmatprep.subr.bf16.mxu1 %v6415_v46  ;;  %v337_v46 = vld [vmem:[%s7365_s7 + $0xa0] sm:$0xff] }
 0x114   : > { %3928 = vmatpush2.bf16.msra.mxu0 %v6410_v49  ;;  %v345_v49 = vld [vmem:[%s7365_s7 + $0xe0] sm:$0xff] }
 0x115   : > { %3989 = vmatpush2.bf16.msra.mxu1 %v6413_v50  ;;  %3929 = vmatprep.subr.bf16.mxu0 %v6418_v51  ;;  %v7514_v50 = vcombine.low %v7481_v15, %v7484_v16  ;;  %v7518_v51 = vcombine.low %v7489_v17, %v7496_v20  ;;  %v6464_v15 = vld [vmem:[#allocation8 + $0xcc0] ss:$16 sps:$4 sm:$0xff]   ;;  %v6472_v17 = vld [vmem:[#allocation8 + $0xca4] ss:$16 sps:$4 sm:$0xff]  }
 0x116   : > { %3990 = vmatprep.subr.bf16.mxu1 %v6421_v52  ;;  %v338_v52 = vld [vmem:[%s7365_s7 + $0xa8] sm:$0xff]  ;;  %v6467_v16 = vld [vmem:[#allocation8 + $0xec0] ss:$16 sps:$4 sm:$0xff]   ;;  %v6475_v20 = vld [vmem:[#allocation8 + $0xea4] ss:$16 sps:$4 sm:$0xff]  }
 0x118   : > { %3930 = vmatpush2.bf16.msra.mxu0 %v6416_v53  ;;  %v346_v53 = vld [vmem:[%s7365_s7 + $0xe8] sm:$0xff] }
 0x119   : > { %3991 = vmatpush2.bf16.msra.mxu1 %v6419_v55  ;;  %3931 = vmatprep.subr.bf16.mxu0 %v6424_v57  ;;  %v6461_v55 = vld [vmem:[#allocation8 + $0xee0] ss:$16 sps:$4 sm:$0xff]   ;;  %v6466_v57 = vld [vmem:[#allocation8 + $0xcc4] ss:$16 sps:$4 sm:$0xff]  }
 0x11a   : > { %3992 = vmatprep.subr.bf16.mxu1 %v6427_v58  ;;  %v6469_v58 = vld [vmem:[#allocation8 + $0xec4] ss:$16 sps:$4 sm:$0xff]  }
 0x11c   : > { %3932 = vmatpush2.bf16.msra.mxu0 %v6422_v63  ;;  %v7522_v63 = vcombine.high %v337_v46, %v345_v49 }
 0x11d   : > { %3993 = vmatpush2.bf16.msra.mxu1 %v6425_v1  ;;  %3933 = vmatprep.subr.bf16.mxu0 %v6430_v3  ;;  %v7524_v1 = vcombine.high %v338_v52, %v346_v53  ;;  %v6470_v3 = vld [vmem:[#allocation8 + $0xca0] ss:$16 sps:$4 sm:$0xff]  }
 0x11e   : > { %3994 = vmatprep.subr.bf16.mxu1 %v6433_v4  ;;  %v353_v4 = vld [vmem:[%s7365_s7 + $0x120] sm:$0xff] }
 0x120   : > { %3934 = vmatpush2.bf16.msra.mxu0 %v6428_v5  ;;  %v7531_v5 = vcombine.low %v337_v46, %v345_v49  ;;  %v6497_v46 = vld [vmem:[#allocation8 + $0xe44] ss:$16 sps:$4 sm:$0xff]  }
 0x121   : > { %3995 = vmatpush2.bf16.msra.mxu1 %v6431_v6  ;;  %3935 = vmatprep.subr.bf16.mxu0 %v6436_v11  ;;  %v7533_v6 = vcombine.low %v338_v52, %v346_v53  ;;  %v354_v11 = vld [vmem:[%s7365_s7 + $0x128] sm:$0xff]  ;;  %v6492_v53 = vld [vmem:[#allocation8 + $0xc40] ss:$16 sps:$4 sm:$0xff]  }
 0x122   : > { %3996 = vmatprep.subr.bf16.mxu1 %v6439_v12  ;;  %v6473_v12 = vld [vmem:[#allocation8 + $0xea0] ss:$16 sps:$4 sm:$0xff]  }
 0x124   : > { %3936 = vmatpush2.bf16.msra.mxu0 %v6434_v13  ;;  %v6478_v13 = vld [vmem:[#allocation8 + $0xc84] ss:$16 sps:$4 sm:$0xff]  }
 0x125   : > { %3997 = vmatpush2.bf16.msra.mxu1 %v6437_v14  ;;  %3937 = vmatprep.subr.bf16.mxu0 %v6442_v21  ;;  %v6481_v14 = vld [vmem:[#allocation8 + $0xe84] ss:$16 sps:$4 sm:$0xff]   ;;  %v6476_v21 = vld [vmem:[#allocation8 + $0xc80] ss:$16 sps:$4 sm:$0xff]  }
 0x126   : > { %3998 = vmatprep.subr.bf16.mxu1 %v6445_v22  ;;  %v7536_v22 = vcombine.high %v353_v4, %v353_v4 }
 0x128   : > { %3938 = vmatpush2.bf16.msra.mxu0 %v6440_v23  ;;  %v7538_v23 = vcombine.high %v354_v11, %v354_v11 }
 0x129   : > { %3999 = vmatpush2.bf16.msra.mxu1 %v6443_v24  ;;  %3939 = vmatprep.subr.bf16.mxu0 %v6448_v28  ;;  %v6479_v24 = vld [vmem:[#allocation8 + $0xe80] ss:$16 sps:$4 sm:$0xff]   ;;  %v6486_v28 = vld [vmem:[#allocation8 + $0xc64] ss:$16 sps:$4 sm:$0xff]  }
 0x12a   : > { %4000 = vmatprep.subr.bf16.mxu1 %v6451_v29  ;;  %v6489_v29 = vld [vmem:[#allocation8 + $0xe64] ss:$16 sps:$4 sm:$0xff]  }
 0x12c   : > { %3940 = vmatpush2.bf16.msra.mxu0 %v6446_v33  ;;  %v7543_v33 = vld [vmem:[%s7365_s7 + $0x30] sm:$0xff] }
 0x12d   : > { %4001 = vmatpush2.bf16.msra.mxu1 %v6449_v34  ;;  %3941 = vmatprep.subr.bf16.mxu0 %v6454_v35  ;;  %v6484_v34 = vld [vmem:[#allocation8 + $0xc60] ss:$16 sps:$4 sm:$0xff]  }
 0x12e   : > { %4002 = vmatprep.subr.bf16.mxu1 %v6457_v36  ;;  %v7548_v35 = vld [vmem:[%s7365_s7 + $0x70] sm:$0xff]  ;;  %v7551_v36 = vld [vmem:[%s7365_s7 + $0x38] sm:$0xff] }
 0x12f   : > { %v7562_v49 = vcombine.high %v7543_v33, %v7548_v35 }
 0x130   : > { %3942 = vmatpush2.bf16.msra.mxu0 %v6452_v37  ;;  %v7553_v37 = vcombine.low %v353_v4, %v353_v4  ;;  %v6507_v4 = vld [vmem:[#allocation8 + $0xe00] ss:$16 sps:$4 sm:$0xff]  }
 0x131   : > { %4003 = vmatpush2.bf16.msra.mxu1 %v6455_v38  ;;  %4033 = vmatprep.subr.bf16.mxu0 %v6460_v39  ;;  %v7555_v38 = vcombine.low %v354_v11, %v354_v11  ;;  %v7558_v39 = vld [vmem:[%s7365_s7 + $0x78] sm:$0xff]  ;;  %7979 = vst [vmem:[#allocation19_spill] sm:$0xff] %v7562_v49  ;;  %v6512_v11 = vld [vmem:[#allocation8 + $0xde4] ss:$16 sps:$4 sm:$0xff]  }
 0x132   : > { %4094 = vmatprep.subr.bf16.mxu1 %v6463_v40  ;;  %v6487_v40 = vld [vmem:[#allocation8 + $0xe60] ss:$16 sps:$4 sm:$0xff]   ;;  %v7566_v52 = vcombine.high %v7551_v36, %v7558_v39 }
 0x133   : > { %3944 = vmatmul.mubr.bf16.vlgmr.msra.gmra.mxu0 %v7514_v50 }
 0x134   : > { %4005 = vmatmul.mubr.bf16.vlgmr.msra.gmra.mxu1 %v7518_v51  ;;  %4034 = vmatpush1.bf16.msra.mxu0 %v6458_v45  ;;  %v6494_v45 = vld [vmem:[#allocation8 + $0xc44] ss:$16 sps:$4 sm:$0xff]   ;;  %7980 = vst [vmem:[#allocation20_spill] sm:$0xff] %v7566_v52 }
 0x135   : > { %4095 = vmatpush1.bf16.msra.mxu1 %v6461_v55  ;;  %4035 = vmatprep.subr.bf16.mxu0 %v6466_v57  ;;  %v6495_v55 = vld [vmem:[#allocation8 + $0xe40] ss:$16 sps:$4 sm:$0xff]   ;;  %v6500_v57 = vld [vmem:[#allocation8 + $0xc24] ss:$16 sps:$4 sm:$0xff]  }
 0x136   : > { %4096 = vmatprep.subr.bf16.mxu1 %v6469_v58  ;;  %3953 = vmatprep.mubr.bf16.mxu0 %v7522_v63  ;;  %v6503_v58 = vld [vmem:[#allocation8 + $0xe24] ss:$16 sps:$4 sm:$0xff]  }
 0x137   : > { %4014 = vmatprep.mubr.bf16.mxu1 %v7524_v1 }
 0x138   : > { %4036 = vmatpush1.bf16.msra.mxu0 %v6464_v15  ;;  %v6498_v15 = vld [vmem:[#allocation8 + $0xc20] ss:$16 sps:$4 sm:$0xff]  }
 0x139   : > { %4097 = vmatpush1.bf16.msra.mxu1 %v6467_v16  ;;  %4037 = vmatprep.subr.bf16.mxu0 %v6472_v17  ;;  %v6501_v16 = vld [vmem:[#allocation8 + $0xe20] ss:$16 sps:$4 sm:$0xff]   ;;  %v6506_v17 = vld [vmem:[#allocation8 + $0xc04] ss:$16 sps:$4 sm:$0xff]  }
 0x13a   : > { %4098 = vmatprep.subr.bf16.mxu1 %v6475_v20  ;;  %v6509_v20 = vld [vmem:[#allocation8 + $0xe04] ss:$16 sps:$4 sm:$0xff]  }
 0x13b   : > { %3954 = vmatmul.mubr.bf16.gmra.mxu0 %v7531_v5 }
 0x13c   : > { %4015 = vmatmul.mubr.bf16.gmra.mxu1 %v7533_v6  ;;  %4038 = vmatpush1.bf16.msra.mxu0 %v6470_v3  ;;  %v6504_v3 = vld [vmem:[#allocation8 + $0xc00] ss:$16 sps:$4 sm:$0xff]  }
 0x13d   : > { %4099 = vmatpush1.bf16.msra.mxu1 %v6473_v12  ;;  %4039 = vmatprep.subr.bf16.mxu0 %v6478_v13  ;;  %v6515_v12 = vld [vmem:[#allocation8 + $0xfe4] ss:$16 sps:$4 sm:$0xff]   ;;  %v6510_v13 = vld [vmem:[#allocation8 + $0xde0] ss:$16 sps:$4 sm:$0xff]  }
 0x13e   : > { %4100 = vmatprep.subr.bf16.mxu1 %v6481_v14  ;;  %3963 = vmatprep.mubr.bf16.mxu0 %v7536_v22  ;;  %v6513_v14 = vld [vmem:[#allocation8 + $0xfe0] ss:$16 sps:$4 sm:$0xff]  }
 0x13f   : > { %4024 = vmatprep.mubr.bf16.mxu1 %v7538_v23 }
 0x140   : > { %4040 = vmatpush1.bf16.msra.mxu0 %v6476_v21  ;;  %v6518_v21 = vld [vmem:[#allocation8 + $0xdc4] ss:$16 sps:$4 sm:$0xff]  }
 0x141   : > { %4101 = vmatpush1.bf16.msra.mxu1 %v6479_v24  ;;  %4041 = vmatprep.subr.bf16.mxu0 %v6486_v28  ;;  %v6521_v24 = vld [vmem:[#allocation8 + $0xfc4] ss:$16 sps:$4 sm:$0xff]   ;;  %v6516_v28 = vld [vmem:[#allocation8 + $0xdc0] ss:$16 sps:$4 sm:$0xff]  }
 0x142   : > { %4102 = vmatprep.subr.bf16.mxu1 %v6489_v29  ;;  %v6519_v29 = vld [vmem:[#allocation8 + $0xfc0] ss:$16 sps:$4 sm:$0xff]  }
 0x143   : > { %3964 = vmatmul.mubr.bf16.gmra.mxu0 %v7553_v37 }
 0x144   : > { %4025 = vmatmul.mubr.bf16.gmra.mxu1 %v7555_v38  ;;  %4042 = vmatpush1.bf16.msra.mxu0 %v6484_v34  ;;  %v6524_v34 = vld [vmem:[#allocation8 + $0xda4] ss:$16 sps:$4 sm:$0xff]  }
 0x145   : > { %4103 = vmatpush1.bf16.msra.mxu1 %v6487_v40  ;;  %4043 = vmatprep.subr.bf16.mxu0 %v6494_v45  ;;  %v6527_v40 = vld [vmem:[#allocation8 + $0xfa4] ss:$16 sps:$4 sm:$0xff]   ;;  %v6522_v45 = vld [vmem:[#allocation8 + $0xda0] ss:$16 sps:$4 sm:$0xff]  }
 0x146   : > { %4104 = vmatprep.subr.bf16.mxu1 %v6497_v46  ;;  %4065 = vmatprep.mubr.bf16.mxu0 %v7562_v49  ;;  %v6525_v46 = vld [vmem:[#allocation8 + $0xfa0] ss:$16 sps:$4 sm:$0xff]  }
 0x147   : > { %4126 = vmatprep.mubr.bf16.mxu1 %v7566_v52 }
 0x148   : > { %4044 = vmatpush1.bf16.msra.mxu0 %v6492_v53  ;;  %v6530_v53 = vld [vmem:[#allocation8 + $0xd84] ss:$16 sps:$4 sm:$0xff]  }
 0x149   : > { %4105 = vmatpush1.bf16.msra.mxu1 %v6495_v55  ;;  %4045 = vmatprep.subr.bf16.mxu0 %v6500_v57  ;;  %v6533_v55 = vld [vmem:[#allocation8 + $0xf84] ss:$16 sps:$4 sm:$0xff]   ;;  %v6528_v57 = vld [vmem:[#allocation8 + $0xd80] ss:$16 sps:$4 sm:$0xff]  }
 0x14a   : > { %4106 = vmatprep.subr.bf16.mxu1 %v6503_v58  ;;  %v6531_v58 = vld [vmem:[#allocation8 + $0xf80] ss:$16 sps:$4 sm:$0xff]  }
 0x14c   : > { %4046 = vmatpush1.bf16.msra.mxu0 %v6498_v15  ;;  %v6536_v15 = vld [vmem:[#allocation8 + $0xd64] ss:$16 sps:$4 sm:$0xff]  }
 0x14d   : > { %4107 = vmatpush1.bf16.msra.mxu1 %v6501_v16  ;;  %4047 = vmatprep.subr.bf16.mxu0 %v6506_v17  ;;  %v6539_v16 = vld [vmem:[#allocation8 + $0xf64] ss:$16 sps:$4 sm:$0xff]   ;;  %v6534_v17 = vld [vmem:[#allocation8 + $0xd60] ss:$16 sps:$4 sm:$0xff]  }
 0x14e   : > { %4108 = vmatprep.subr.bf16.mxu1 %v6509_v20  ;;  %v6537_v20 = vld [vmem:[#allocation8 + $0xf60] ss:$16 sps:$4 sm:$0xff]  }
 0x150   : > { %4048 = vmatpush1.bf16.msra.mxu0 %v6504_v3  ;;  %v6542_v3 = vld [vmem:[#allocation8 + $0xd44] ss:$16 sps:$4 sm:$0xff]  }
 0x151   : > { %4109 = vmatpush1.bf16.msra.mxu1 %v6507_v4  ;;  %4049 = vmatprep.subr.bf16.mxu0 %v6512_v11  ;;  %v6545_v4 = vld [vmem:[#allocation8 + $0xf44] ss:$16 sps:$4 sm:$0xff]   ;;  %v6540_v11 = vld [vmem:[#allocation8 + $0xd40] ss:$16 sps:$4 sm:$0xff]  }
 0x152   : > { %4110 = vmatprep.subr.bf16.mxu1 %v6515_v12  ;;  %v6543_v12 = vld [vmem:[#allocation8 + $0xf40] ss:$16 sps:$4 sm:$0xff]  }
 0x154   : > { %4050 = vmatpush2.bf16.msra.mxu0 %v6510_v13  ;;  %v871_v13 = vlaneseq }
 0x155   : > { %4111 = vmatpush2.bf16.msra.mxu1 %v6513_v14  ;;  %4051 = vmatprep.subr.bf16.mxu0 %v6518_v21  ;;  %v6548_v14 = vld [vmem:[#allocation8 + $0xd24] ss:$16 sps:$4 sm:$0xff]  }
 0x156   : > { %4112 = vmatprep.subr.bf16.mxu1 %v6521_v24  ;;  %v6551_v21 = vld [vmem:[#allocation8 + $0xf24] ss:$16 sps:$4 sm:$0xff]   ;;  %v6546_v24 = vld [vmem:[#allocation8 + $0xd20] ss:$16 sps:$4 sm:$0xff]  }
 0x158   : > { %4052 = vmatpush2.bf16.msra.mxu0 %v6516_v28  ;;  %v6549_v28 = vld [vmem:[#allocation8 + $0xf20] ss:$16 sps:$4 sm:$0xff]  }
 0x159   : > { %4113 = vmatpush2.bf16.msra.mxu1 %v6519_v29  ;;  %4053 = vmatprep.subr.bf16.mxu0 %v6524_v34  ;;  %v7572_v29 = vshrl.u32 %v871_v13, 7  ;;  %v6554_v34 = vld [vmem:[#allocation8 + $0xd04] ss:$16 sps:$4 sm:$0xff]  }
 0x15a   : > { %4114 = vmatprep.subr.bf16.mxu1 %v6527_v40  ;;  %v6557_v40 = vld [vmem:[#allocation8 + $0xf04] ss:$16 sps:$4 sm:$0xff]  }
 0x15b   : > { %7981 = vst [vmem:[#allocation21_spill] sm:$0xff] %v7572_v29 }
 0x15c   : > { %4054 = vmatpush2.bf16.msra.mxu0 %v6522_v45  ;;  %v6552_v45 = vld [vmem:[#allocation8 + $0xd00] ss:$16 sps:$4 sm:$0xff]  }
 0x15d   : > { %4115 = vmatpush2.bf16.msra.mxu1 %v6525_v46  ;;  %4055 = vmatprep.subr.bf16.mxu0 %v6530_v53  ;;  %v6555_v46 = vld [vmem:[#allocation8 + $0xf00] ss:$16 sps:$4 sm:$0xff]  }
 0x15e   : > { %4116 = vmatprep.subr.bf16.mxu1 %v6533_v55  ;;  %v869_v53 = vld [vmem:[#allocation10] sm:$0xf]  ;;  %v873_v55 = vsub.s32 0, %v7572_v29 }
 0x160   : > { %4056 = vmatpush2.bf16.msra.mxu0 %v6528_v57  ;;  %v6560_v57 = vld [vmem:[#allocation8 + $0xec] ss:$16 sps:$4 sm:$0xff]   ;;  %v7588_v13 = vrot.slane %v869_v53, %v873_v55 }
 0x161   : > { %4117 = vmatpush2.bf16.msra.mxu1 %v6531_v58  ;;  %4057 = vmatprep.subr.bf16.mxu0 %v6536_v15  ;;  %v6563_v58 = vld [vmem:[#allocation8 + $0x2ec] ss:$16 sps:$4 sm:$0xff]   ;;  %v339_v15 = vld [vmem:[%s7365_s7 + $0xb0] sm:$0xff] }
 0x162   : > { %4118 = vmatprep.subr.bf16.mxu1 %v6539_v16  ;;  %v6558_v16 = vld [vmem:[#allocation8 + $0xe8] ss:$16 sps:$4 sm:$0xff]   ;;  %v6572_v55 = vld [vmem:[#allocation8 + $0xac] ss:$16 sps:$4 sm:$0xff]  }
 0x164   : > { %4058 = vmatpush2.bf16.msra.mxu0 %v6534_v17  ;;  %v877_v17 = vsub.s32 1, %v7572_v29 }
 0x165   : > { %4119 = vmatpush2.bf16.msra.mxu1 %v6537_v20  ;;  %4059 = vmatprep.subr.bf16.mxu0 %v6542_v3  ;;  %v347_v20 = vld [vmem:[%s7365_s7 + $0xf0] sm:$0xff]  ;;  %v340_v3 = vld [vmem:[%s7365_s7 + $0xb8] sm:$0xff] }
 0x166   : > { %4120 = vmatprep.subr.bf16.mxu1 %v6545_v4  ;;  %v7581_v4 = vcombine.low %v7543_v33, %v7548_v35 }
 0x168   : > { %4060 = vmatpush2.bf16.msra.mxu0 %v6540_v11  ;;  %7982 = vst [vmem:[#allocation22_spill] sm:$0xff] %v7581_v4  ;;  %v7585_v11 = vcombine.low %v7551_v36, %v7558_v39  ;;  %v6564_v36 = vld [vmem:[#allocation8 + $0xc8] ss:$16 sps:$4 sm:$0xff]  }
 0x169   : > { %4121 = vmatpush2.bf16.msra.mxu1 %v6543_v12  ;;  %4061 = vmatprep.subr.bf16.mxu0 %v6548_v14  ;;  %v348_v12 = vld [vmem:[%s7365_s7 + $0xf8] sm:$0xff] }
 0x16a   : > { %4122 = vmatprep.subr.bf16.mxu1 %v6551_v21  ;;  %7983 = vst [vmem:[#allocation23_spill] sm:$0xff] %v7585_v11  ;;  %v6561_v14 = vld [vmem:[#allocation8 + $0x2e8] ss:$16 sps:$4 sm:$0xff]   ;;  %v6566_v21 = vld [vmem:[#allocation8 + $0xcc] ss:$16 sps:$4 sm:$0xff]   ;;  %v7594_v33 = vcombine.high %v340_v3, %v348_v12  ;;  %v7607_v29 = vcombine.low %v340_v3, %v348_v12 }
 0x16c   : > { %4062 = vmatpush2.bf16.msra.mxu0 %v6546_v24  ;;  %v6569_v24 = vld [vmem:[#allocation8 + $0x2cc] ss:$16 sps:$4 sm:$0xff]   ;;  %7985 = vst [vmem:[#allocation25_spill] sm:$0xff] %v7594_v33  ;;  %7987 = vst [vmem:[#allocation27_spill] sm:$0xff] %v7607_v29 }
 0x16d   : > { %4123 = vmatpush2.bf16.msra.mxu1 %v6549_v28  ;;  %4063 = vmatprep.subr.bf16.mxu0 %v6554_v34  ;;  %v7590_v28 = vrot.slane %v869_v53, %v877_v17  ;;  %v7592_v34 = vcombine.high %v339_v15, %v347_v20 }
 0x16e   : > { %4124 = vmatprep.subr.bf16.mxu1 %v6557_v40 }
 0x16f   : > { %7984 = vst [vmem:[#allocation24_spill] sm:$0xff] %v7592_v34 }
 0x170   : > { %4064 = vmatpush2.bf16.msra.mxu0 %v6552_v45  ;;  %v6567_v45 = vld [vmem:[#allocation8 + $0x2c8] ss:$16 sps:$4 sm:$0xff]  }
 0x171   : > { %4125 = vmatpush2.bf16.msra.mxu1 %v6555_v46  ;;  %4155 = vmatprep.subr.bf16.mxu0 %v6560_v57  ;;  %v6575_v57 = vld [vmem:[#allocation8 + $0x2ac] ss:$16 sps:$4 sm:$0xff]  }
 0x172   : > { %4216 = vmatprep.subr.bf16.mxu1 %v6563_v58 }
 0x173   : > { %v3701_v35 = vpop.f32.mrf.mxu0  ;;  %4066 = vmatmul.mubr.bf16.vlgmr.msra.gmra.mxu0 %v7581_v4  ;;  %v7605_v4 = vcombine.low %v339_v15, %v347_v20 }
 0x174   : > { %v3762_v40 = vpop.f32.mrf.mxu1  ;;  %4127 = vmatmul.mubr.bf16.vlgmr.msra.gmra.mxu1 %v7585_v11  ;;  %v3702_v39 = vadd.f32 %v3701_v35, %v7588_v13  ;;  %4156 = vmatpush1.bf16.msra.mxu0 %v6558_v16  ;;  %v6570_v11 = vld [vmem:[#allocation8 + $0xa8] ss:$16 sps:$4 sm:$0xff]   ;;  %v355_v35 = vld [vmem:[%s7365_s7 + $0x130] sm:$0xff] }
 0x175   : > { %4217 = vmatpush1.bf16.msra.mxu1 %v6561_v14  ;;  %v3703_v46 = vpop.f32.mrf.mxu0  ;;  %4157 = vmatprep.subr.bf16.mxu0 %v6566_v21  ;;  %7986 = vst [vmem:[#allocation26_spill] sm:$0xff] %v7605_v4  ;;  %v356_v21 = vld [vmem:[%s7365_s7 + $0x138] sm:$0xff]  ;;  %v7616_v20 = vcombine.high %v355_v35, %v355_v35 }
 0x176   : > { %v3764_v53 = vpop.f32.mrf.mxu1  ;;  %4218 = vmatprep.subr.bf16.mxu1 %v6569_v24  ;;  %v7599_v58 = vadd.f32 %v3762_v40, %v3702_v39  ;;  %v3704_v17 = vadd.f32 %v3703_v46, %v7590_v28  ;;  %4075 = vmatprep.mubr.bf16.mxu0 %v7592_v34  ;;  %v6573_v39 = vld [vmem:[#allocation8 + $0x2a8] ss:$16 sps:$4 sm:$0xff]   ;;  %v6578_v34 = vld [vmem:[#allocation8 + $0x8c] ss:$16 sps:$4 sm:$0xff]   ;;  %v7618_v3 = vcombine.high %v356_v21, %v356_v21 }
 0x177   : > { %4136 = vmatprep.mubr.bf16.mxu1 %v7594_v33  ;;  %v3705_v16 = vpop.f32.mrf.mxu0  ;;  %v6581_v33 = vld [vmem:[#allocation8 + $0x28c] ss:$16 sps:$4 sm:$0xff]   ;;  %7988 = vst [vmem:[#allocation28_spill] sm:$0xff] %v7616_v20 }
 0x178   : > { %v3766_v14 = vpop.f32.mrf.mxu1  ;;  %v7610_v24 = vadd.f32 %v3764_v53, %v3704_v17  ;;  %v3706_v40 = vadd.f32 %v3705_v16, %v7588_v13  ;;  %4158 = vmatpush1.bf16.msra.mxu0 %v6564_v36  ;;  %7989 = vst [vmem:[#allocation29_spill] sm:$0xff] %v7618_v3  ;;  %v6576_v36 = vld [vmem:[#allocation8 + $0x88] ss:$16 sps:$4 sm:$0xff]   ;;  %v7626_v17 = vcombine.low %v355_v35, %v355_v35 }
 0x179   : > { %4219 = vmatpush1.bf16.msra.mxu1 %v6567_v45  ;;  %v3707_v46 = vpop.f32.mrf.mxu0  ;;  %4159 = vmatprep.subr.bf16.mxu0 %v6572_v55  ;;  %v6579_v53 = vld [vmem:[#allocation8 + $0x288] ss:$16 sps:$4 sm:$0xff]   ;;  %v6586_v55 = vld [vmem:[#allocation8 + $0x6c] ss:$16 sps:$4 sm:$0xff]  }
 0x17a   : > { %4220 = vmatprep.subr.bf16.mxu1 %v6575_v57  ;;  %v7613_v52 = vadd.f32 %v3766_v14, %v3706_v40  ;;  %v3708_v15 = vadd.f32 %v3707_v46, %v7590_v28  ;;  %v3768_v12 = vpop.f32.mrf.mxu1  ;;  %v6589_v57 = vld [vmem:[#allocation8 + $0x26c] ss:$16 sps:$4 sm:$0xff]   ;;  %7990 = vst [vmem:[#allocation30_spill] sm:$0xff] %v7626_v17  ;;  %v6584_v16 = vld [vmem:[#allocation8 + $0x68] ss:$16 sps:$4 sm:$0xff]   ;;  %v7628_v14 = vcombine.low %v356_v21, %v356_v21 }
 0x17b   : > { %4076 = vmatmul.mubr.bf16.gmra.mxu0 %v7605_v4  ;;  %v3711_v40 = vpop.f32.mrf.mxu0  ;;  %v6592_v21 = vld [vmem:[#allocation8 + $0x48] ss:$16 sps:$4 sm:$0xff]  }
 0x17c   : > { %4137 = vmatmul.mubr.bf16.gmra.mxu1 %v7607_v29  ;;  %v7622_v45 = vadd.f32 %v3768_v12, %v3708_v15  ;;  %4160 = vmatpush1.bf16.msra.mxu0 %v6570_v11  ;;  %7991 = vst [vmem:[#allocation31_spill] sm:$0xff] %v7628_v14  ;;  %v3772_v46 = vpop.f32.mrf.mxu1  ;;  %v6587_v11 = vld [vmem:[#allocation8 + $0x268] ss:$16 sps:$4 sm:$0xff]  }
 0x17d   : > { %4221 = vmatpush1.bf16.msra.mxu1 %v6573_v39  ;;  %4161 = vmatprep.subr.bf16.mxu0 %v6578_v34  ;;  %v3712_v39 = vadd.f32 %v3711_v40, %v7588_v13  ;;  %v6594_v34 = vld [vmem:[#allocation8 + $0x4c] ss:$16 sps:$4 sm:$0xff]   ;;  %v3713_v15 = vpop.f32.mrf.mxu0  ;;  %v6595_v40 = vld [vmem:[#allocation8 + $0x248] ss:$16 sps:$4 sm:$0xff]  }
 0x17e   : > { %4222 = vmatprep.subr.bf16.mxu1 %v6581_v33  ;;  %4085 = vmatprep.mubr.bf16.mxu0 %v7616_v20  ;;  %v6597_v33 = vld [vmem:[#allocation8 + $0x24c] ss:$16 sps:$4 sm:$0xff]   ;;  %v3774_v12 = vpop.f32.mrf.mxu1 }
 0x17f   : > { %4146 = vmatprep.mubr.bf16.mxu1 %v7618_v3  ;;  %v3714_v3 = vadd.f32 %v3713_v15, %v7590_v28  ;;  %v7632_v35 = vadd.f32 %v3772_v46, %v3712_v39  ;;  %v6600_v20 = vld [vmem:[#allocation8 + $0x2c] ss:$16 sps:$4 sm:$0xff]  }
 0x180   : > { %4162 = vmatpush1.bf16.msra.mxu0 %v6576_v36  ;;  %v3715_v36 = vpop.f32.mrf.mxu0  ;;  %v6603_v15 = vld [vmem:[#allocation8 + $0x22c] ss:$16 sps:$4 sm:$0xff]  }
 0x181   : > { %4223 = vmatpush1.bf16.msra.mxu1 %v6579_v53  ;;  %4163 = vmatprep.subr.bf16.mxu0 %v6586_v55  ;;  %v3776_v53 = vpop.f32.mrf.mxu1  ;;  %v3716_v55 = vadd.f32 %v3715_v36, %v7588_v13  ;;  %v6609_v36 = vld [vmem:[#allocation8 + $0x20c] ss:$16 sps:$4 sm:$0xff]  }
 0x182   : > { %4224 = vmatprep.subr.bf16.mxu1 %v6589_v57  ;;  %v7637_v57 = vadd.f32 %v3774_v12, %v3714_v3  ;;  %v3717_v46 = vpop.f32.mrf.mxu0  ;;  %v6601_v3 = vld [vmem:[#allocation8 + $0x228] ss:$16 sps:$4 sm:$0xff]   ;;  %v6606_v12 = vld [vmem:[#allocation8 + $0xc] ss:$16 sps:$4 sm:$0xff]  }
 0x183   : > { %4086 = vmatmul.mubr.bf16.gmra.mxu0 %v7626_v17  ;;  %v3778_v39 = vpop.f32.mrf.mxu1  ;;  %v3718_v17 = vadd.f32 %v3717_v46, %v7590_v28  ;;  %v7640_v29 = vadd.f32 %v3776_v53, %v3716_v55 }
 0x184   : > { %4147 = vmatmul.mubr.bf16.gmra.mxu1 %v7628_v14  ;;  %4164 = vmatpush1.bf16.msra.mxu0 %v6584_v16  ;;  %v6598_v16 = vld [vmem:[#allocation8 + $0x28] ss:$16 sps:$4 sm:$0xff]  }
 0x185   : > { %4225 = vmatpush1.bf16.msra.mxu1 %v6587_v11  ;;  %4165 = vmatprep.subr.bf16.mxu0 %v6594_v34  ;;  %v3721_v11 = vpop.f32.mrf.mxu0  ;;  %v3782_v14 = vpop.f32.mrf.mxu1 }
 0x186   : > { %4226 = vmatprep.subr.bf16.mxu1 %v6597_v33  ;;  %4187 = vmatprep.mubr.bf16.mxu0 %v7384_v54  ;;  %v3722_v34 = vadd.f32 %v3721_v11, %v7588_v13  ;;  %v7645_v33 = vadd.f32 %v3778_v39, %v3718_v17  ;;  %v6612_v13 = vld [vmem:[#allocation8 + $0x1ec] ss:$16 sps:$4 sm:$0xff]   ;;  %v6610_v39 = vld [vmem:[#allocation8 + $0x1e8] ss:$16 sps:$4 sm:$0xff]  }
 0x187   : > { %4248 = vmatprep.mubr.bf16.mxu1 %v7386_v56  ;;  %v3723_v53 = vpop.f32.mrf.mxu0  ;;  %v3784_v55 = vpop.f32.mrf.mxu1  ;;  %v6604_v56 = vld [vmem:[#allocation8 + $0x8] ss:$16 sps:$4 sm:$0xff]   ;;  %v6624_v11 = vld [vmem:[#allocation8 + $0x1ac] ss:$16 sps:$4 sm:$0xff]  }
 0x188   : > { %4166 = vmatpush1.bf16.msra.mxu0 %v6592_v21  ;;  %v3724_v54 = vadd.f32 %v3723_v53, %v7590_v28  ;;  %v7648_v46 = vadd.f32 %v3782_v14, %v3722_v34  ;;  %v6607_v21 = vld [vmem:[#allocation8 + $0x208] ss:$16 sps:$4 sm:$0xff]   ;;  %v6618_v14 = vld [vmem:[#allocation8 + $0x1cc] ss:$16 sps:$4 sm:$0xff]  }
 0x189   : > { %4227 = vmatpush1.bf16.msra.mxu1 %v6595_v40  ;;  %4167 = vmatprep.subr.bf16.mxu0 %v6600_v20  ;;  %v3725_v4 = vpop.f32.mrf.mxu0  ;;  %v3786_v49 = vpop.f32.mrf.mxu1  ;;  %v6615_v20 = vld [vmem:[#allocation8 + $0x3ec] ss:$16 sps:$4 sm:$0xff]   ;;  %v6613_v28 = vld [vmem:[#allocation8 + $0x3e8] ss:$16 sps:$4 sm:$0xff]  }
 0x18a   : > { %4228 = vmatprep.subr.bf16.mxu1 %v6603_v15  ;;  %v7650_v40 = vadd.f32 %v3784_v55, %v3724_v54  ;;  %v6621_v4 = vld [vmem:[#allocation8 + $0x3cc] ss:$16 sps:$4 sm:$0xff]   ;;  %v6616_v49 = vld [vmem:[#allocation8 + $0x1c8] ss:$16 sps:$4 sm:$0xff]  }
 0x18b   : > { %v3726_v17 = vpop.f32.mrf.mxu0  ;;  %v3787_v15 = vpop.f32.mrf.mxu1  ;;  %v6622_v34 = vld [vmem:[#allocation8 + $0x1a8] ss:$16 sps:$4 sm:$0xff]   ;;  %v6633_v53 = vld [vmem:[#allocation8 + $0x38c] ss:$16 sps:$4 sm:$0xff]  }
 0x18c   : > { %4168 = vmatpush1.bf16.msra.mxu0 %v6598_v16  ;;  %v6619_v16 = vld [vmem:[#allocation8 + $0x3c8] ss:$16 sps:$4 sm:$0xff]   ;;  %v6642_v17 = vld [vmem:[#allocation8 + $0x14c] ss:$16 sps:$4 sm:$0xff]  }
 0x18d   : > { %4229 = vmatpush1.bf16.msra.mxu1 %v6601_v3  ;;  %4169 = vmatprep.subr.bf16.mxu0 %v6606_v12  ;;  %v6627_v3 = vld [vmem:[#allocation8 + $0x3ac] ss:$16 sps:$4 sm:$0xff]   ;;  %v6625_v12 = vld [vmem:[#allocation8 + $0x3a8] ss:$16 sps:$4 sm:$0xff]  }
 0x18e   : > { %4230 = vmatprep.subr.bf16.mxu1 %v6609_v36  ;;  %v6630_v36 = vld [vmem:[#allocation8 + $0x18c] ss:$16 sps:$4 sm:$0xff]   ;;  %v6628_v55 = vld [vmem:[#allocation8 + $0x188] ss:$16 sps:$4 sm:$0xff]  }
 0x18f   : > { %v6631_v54 = vld [vmem:[#allocation8 + $0x388] ss:$16 sps:$4 sm:$0xff]   ;;  %v6645_v15 = vld [vmem:[#allocation8 + $0x34c] ss:$16 sps:$4 sm:$0xff]  }
 0x190   : > { %4170 = vmatpush1.bf16.msra.mxu0 %v6604_v56  ;;  %v6636_v56 = vld [vmem:[#allocation8 + $0x16c] ss:$16 sps:$4 sm:$0xff]  }
 0x191   : > { %4231 = vmatpush1.bf16.msra.mxu1 %v6607_v21  ;;  %4171 = vmatprep.subr.bf16.mxu0 %v6612_v13  ;;  %v6639_v21 = vld [vmem:[#allocation8 + $0x36c] ss:$16 sps:$4 sm:$0xff]   ;;  %v6634_v13 = vld [vmem:[#allocation8 + $0x168] ss:$16 sps:$4 sm:$0xff]  }
 0x192   : > { %4232 = vmatprep.subr.bf16.mxu1 %v6615_v20  ;;  %v6637_v20 = vld [vmem:[#allocation8 + $0x368] ss:$16 sps:$4 sm:$0xff]  }
 0x194   : > { %4172 = vmatpush2.bf16.msra.mxu0 %v6610_v39  ;;  %v6640_v39 = vld [vmem:[#allocation8 + $0x148] ss:$16 sps:$4 sm:$0xff]  }
 0x195   : > { %4233 = vmatpush2.bf16.msra.mxu1 %v6613_v28  ;;  %4173 = vmatprep.subr.bf16.mxu0 %v6618_v14  ;;  %v6643_v28 = vld [vmem:[#allocation8 + $0x348] ss:$16 sps:$4 sm:$0xff]   ;;  %v6648_v14 = vld [vmem:[#allocation8 + $0x12c] ss:$16 sps:$4 sm:$0xff]  }
 0x196   : > { %4234 = vmatprep.subr.bf16.mxu1 %v6621_v4  ;;  %v6651_v4 = vld [vmem:[#allocation8 + $0x32c] ss:$16 sps:$4 sm:$0xff]  }
 0x198   : > { %4174 = vmatpush2.bf16.msra.mxu0 %v6616_v49  ;;  %v6646_v49 = vld [vmem:[#allocation8 + $0x128] ss:$16 sps:$4 sm:$0xff]  }
 0x199   : > { %4235 = vmatpush2.bf16.msra.mxu1 %v6619_v16  ;;  %4175 = vmatprep.subr.bf16.mxu0 %v6624_v11  ;;  %v6649_v16 = vld [vmem:[#allocation8 + $0x328] ss:$16 sps:$4 sm:$0xff]   ;;  %v6654_v11 = vld [vmem:[#allocation8 + $0x10c] ss:$16 sps:$4 sm:$0xff]  }
 0x19a   : > { %4236 = vmatprep.subr.bf16.mxu1 %v6627_v3  ;;  %v6657_v3 = vld [vmem:[#allocation8 + $0x30c] ss:$16 sps:$4 sm:$0xff]  }
 0x19c   : > { %4176 = vmatpush2.bf16.msra.mxu0 %v6622_v34  ;;  %v6652_v34 = vld [vmem:[#allocation8 + $0x108] ss:$16 sps:$4 sm:$0xff]  }
 0x19d   : > { %4237 = vmatpush2.bf16.msra.mxu1 %v6625_v12  ;;  %4177 = vmatprep.subr.bf16.mxu0 %v6630_v36  ;;  %v6655_v12 = vld [vmem:[#allocation8 + $0x308] ss:$16 sps:$4 sm:$0xff]   ;;  %v6660_v36 = vld [vmem:[#allocation8 + $0x4ec] ss:$16 sps:$4 sm:$0xff]  }
 0x19e   : > { %4238 = vmatprep.subr.bf16.mxu1 %v6633_v53  ;;  %v6663_v53 = vld [vmem:[#allocation8 + $0x6ec] ss:$16 sps:$4 sm:$0xff]  }
 0x1a0   : > { %4178 = vmatpush2.bf16.msra.mxu0 %v6628_v55  ;;  %v6658_v55 = vld [vmem:[#allocation8 + $0x4e8] ss:$16 sps:$4 sm:$0xff]  }
 0x1a1   : > { %4239 = vmatpush2.bf16.msra.mxu1 %v6631_v54  ;;  %4179 = vmatprep.subr.bf16.mxu0 %v6636_v56  ;;  %v6661_v54 = vld [vmem:[#allocation8 + $0x6e8] ss:$16 sps:$4 sm:$0xff]   ;;  %v6666_v56 = vld [vmem:[#allocation8 + $0x4cc] ss:$16 sps:$4 sm:$0xff]  }
 0x1a2   : > { %4240 = vmatprep.subr.bf16.mxu1 %v6639_v21  ;;  %v6669_v21 = vld [vmem:[#allocation8 + $0x6cc] ss:$16 sps:$4 sm:$0xff]  }
 0x1a4   : > { %4180 = vmatpush2.bf16.msra.mxu0 %v6634_v13  ;;  %v6664_v13 = vld [vmem:[#allocation8 + $0x4c8] ss:$16 sps:$4 sm:$0xff]  }
 0x1a5   : > { %4241 = vmatpush2.bf16.msra.mxu1 %v6637_v20  ;;  %4181 = vmatprep.subr.bf16.mxu0 %v6642_v17 }
 0x1a6   : > { %4242 = vmatprep.subr.bf16.mxu1 %v6645_v15  ;;  %v6667_v15 = vld [vmem:[#allocation8 + $0x6c8] ss:$16 sps:$4 sm:$0xff]  }
 0x1a8   : > { %4182 = vmatpush2.bf16.msra.mxu0 %v6640_v39 }
 0x1a9   : > { %4243 = vmatpush2.bf16.msra.mxu1 %v6643_v28  ;;  %4183 = vmatprep.subr.bf16.mxu0 %v6648_v14 }
 0x1aa   : > { %4244 = vmatprep.subr.bf16.mxu1 %v6651_v4  ;;  %v6672_v4 = vld [vmem:[#allocation8 + $0x4ac] ss:$16 sps:$4 sm:$0xff]  }
 0x1ac   : > { %4184 = vmatpush2.bf16.msra.mxu0 %v6646_v49  ;;  %v6675_v49 = vld [vmem:[#allocation8 + $0x6ac] ss:$16 sps:$4 sm:$0xff]  }
 0x1ad   : > { %4245 = vmatpush2.bf16.msra.mxu1 %v6649_v16  ;;  %4185 = vmatprep.subr.bf16.mxu0 %v6654_v11 }
 0x1ae   : > { %4246 = vmatprep.subr.bf16.mxu1 %v6657_v3  ;;  %v6670_v3 = vld [vmem:[#allocation8 + $0x4a8] ss:$16 sps:$4 sm:$0xff]  }
 0x1b0   : > { %4186 = vmatpush2.bf16.msra.mxu0 %v6652_v34 }
 0x1b1   : > { %4247 = vmatpush2.bf16.msra.mxu1 %v6655_v12  ;;  %4277 = vmatprep.subr.bf16.mxu0 %v6660_v36 }
 0x1b2   : > { %4338 = vmatprep.subr.bf16.mxu1 %v6663_v53 }
 0x1b3   : > { %v3823_v20 = vpop.f32.mrf.mxu0  ;;  %4188 = vmatmul.mubr.bf16.vlgmr.msra.gmra.mxu0 %v7390_v9 }
 0x1b4   : > { %v3884_v17 = vpop.f32.mrf.mxu1  ;;  %4249 = vmatmul.mubr.bf16.vlgmr.msra.gmra.mxu1 %v7392_v10  ;;  %v3824_v39 = vadd.f32 %v3823_v20, %v7599_v58  ;;  %4278 = vmatpush1.bf16.msra.mxu0 %v6658_v55  ;;  %v6673_v58 = vld [vmem:[#allocation8 + $0x6a8] ss:$16 sps:$4 sm:$0xff]   ;;  %v6678_v55 = vld [vmem:[#allocation8 + $0x48c] ss:$16 sps:$4 sm:$0xff]  }
 0x1b5   : > { %4339 = vmatpush1.bf16.msra.mxu1 %v6661_v54  ;;  %v3825_v28 = vpop.f32.mrf.mxu0  ;;  %4279 = vmatprep.subr.bf16.mxu0 %v6666_v56  ;;  %v6679_v56 = vld [vmem:[#allocation8 + $0x688] ss:$16 sps:$4 sm:$0xff]  }
 0x1b6   : > { %v3886_v14 = vpop.f32.mrf.mxu1  ;;  %4340 = vmatprep.subr.bf16.mxu1 %v6669_v21  ;;  %v7655_v16 = vadd.f32 %v3884_v17, %v3824_v39  ;;  %v3826_v11 = vadd.f32 %v3825_v28, %v7610_v24  ;;  %4197 = vmatprep.mubr.bf16.mxu0 %v7398_v25  ;;  %v6681_v24 = vld [vmem:[#allocation8 + $0x68c] ss:$16 sps:$4 sm:$0xff]  }
 0x1b7   : > { %4258 = vmatprep.mubr.bf16.mxu1 %v7404_v31  ;;  %v3827_v9 = vpop.f32.mrf.mxu0  ;;  %v6676_v31 = vld [vmem:[#allocation8 + $0x488] ss:$16 sps:$4 sm:$0xff]   ;;  %v6684_v39 = vld [vmem:[#allocation8 + $0x46c] ss:$16 sps:$4 sm:$0xff]  }
 0x1b8   : > { %v3888_v10 = vpop.f32.mrf.mxu1  ;;  %v7660_v34 = vadd.f32 %v3886_v14, %v3826_v11  ;;  %v3828_v12 = vadd.f32 %v3827_v9, %v7613_v52  ;;  %4280 = vmatpush1.bf16.msra.mxu0 %v6664_v13 }
 0x1b9   : > { %4341 = vmatpush1.bf16.msra.mxu1 %v6667_v15  ;;  %v3829_v36 = vpop.f32.mrf.mxu0  ;;  %4281 = vmatprep.subr.bf16.mxu0 %v6672_v4  ;;  %v6682_v4 = vld [vmem:[#allocation8 + $0x468] ss:$16 sps:$4 sm:$0xff]  }
 0x1ba   : > { %v3890_v53 = vpop.f32.mrf.mxu1  ;;  %4342 = vmatprep.subr.bf16.mxu1 %v6675_v49  ;;  %v7663_v54 = vadd.f32 %v3888_v10, %v3828_v12  ;;  %v3830_v25 = vadd.f32 %v3829_v36, %v7622_v45  ;;  %v6687_v45 = vld [vmem:[#allocation8 + $0x66c] ss:$16 sps:$4 sm:$0xff]  }
 0x1bb   : > { %v3833_v21 = vpop.f32.mrf.mxu0  ;;  %4198 = vmatmul.mubr.bf16.gmra.mxu0 %v7402_v30  ;;  %v6685_v30 = vld [vmem:[#allocation8 + $0x668] ss:$16 sps:$4 sm:$0xff]   ;;  %v6693_v10 = vld [vmem:[#allocation8 + $0x64c] ss:$16 sps:$4 sm:$0xff]  }
 0x1bc   : > { %v3894_v20 = vpop.f32.mrf.mxu1  ;;  %4259 = vmatmul.mubr.bf16.gmra.mxu1 %v7406_v32  ;;  %v7668_v52 = vadd.f32 %v3890_v53, %v3830_v25  ;;  %v3834_v13 = vadd.f32 %v3833_v21, %v7632_v35  ;;  %4282 = vmatpush1.bf16.msra.mxu0 %v6670_v3 }
 0x1bd   : > { %4343 = vmatpush1.bf16.msra.mxu1 %v6673_v58  ;;  %v3835_v17 = vpop.f32.mrf.mxu0  ;;  %4283 = vmatprep.subr.bf16.mxu0 %v6678_v55 }
 0x1be   : > { %v3896_v15 = vpop.f32.mrf.mxu1  ;;  %4344 = vmatprep.subr.bf16.mxu1 %v6681_v24  ;;  %v3836_v28 = vadd.f32 %v3835_v17, %v7637_v57  ;;  %v7672_v14 = vadd.f32 %v3894_v20, %v3834_v13  ;;  %4207 = vmatprep.mubr.bf16.mxu0 %v7414_v41  ;;  %v6690_v57 = vld [vmem:[#allocation8 + $0x44c] ss:$16 sps:$4 sm:$0xff]   ;;  %v6688_v41 = vld [vmem:[#allocation8 + $0x448] ss:$16 sps:$4 sm:$0xff]  }
 0x1bf   : > { %4268 = vmatprep.mubr.bf16.mxu1 %v7416_v42  ;;  %v3837_v32 = vpop.f32.mrf.mxu0  ;;  %v6691_v42 = vld [vmem:[#allocation8 + $0x648] ss:$16 sps:$4 sm:$0xff]   ;;  %v6702_v17 = vld [vmem:[#allocation8 + $0x40c] ss:$16 sps:$4 sm:$0xff]  }
 0x1c0   : > { %v3898_v35 = vpop.f32.mrf.mxu1  ;;  %v3838_v49 = vadd.f32 %v3837_v32, %v7640_v29  ;;  %v7677_v11 = vadd.f32 %v3896_v15, %v3836_v28  ;;  %4284 = vmatpush1.bf16.msra.mxu0 %v6676_v31  ;;  %v6699_v31 = vld [vmem:[#allocation8 + $0x62c] ss:$16 sps:$4 sm:$0xff]   ;;  %v6694_v20 = vld [vmem:[#allocation8 + $0x428] ss:$16 sps:$4 sm:$0xff]  }
 0x1c1   : > { %4345 = vmatpush1.bf16.msra.mxu1 %v6679_v56  ;;  %v3839_v3 = vpop.f32.mrf.mxu0  ;;  %4285 = vmatprep.subr.bf16.mxu0 %v6684_v39  ;;  %v6705_v15 = vld [vmem:[#allocation8 + $0x60c] ss:$16 sps:$4 sm:$0xff]   ;;  %v6703_v28 = vld [vmem:[#allocation8 + $0x608] ss:$16 sps:$4 sm:$0xff]  }
 0x1c2   : > { %v3900_v9 = vpop.f32.mrf.mxu1  ;;  %4346 = vmatprep.subr.bf16.mxu1 %v6687_v45  ;;  %v3840_v58 = vadd.f32 %v3839_v3, %v7645_v33  ;;  %v7680_v12 = vadd.f32 %v3898_v35, %v3838_v49  ;;  %v6696_v33 = vld [vmem:[#allocation8 + $0x42c] ss:$16 sps:$4 sm:$0xff]   ;;  %v6700_v45 = vld [vmem:[#allocation8 + $0x408] ss:$16 sps:$4 sm:$0xff]  }
 0x1c3   : > { %v3843_v36 = vpop.f32.mrf.mxu0  ;;  %4208 = vmatmul.mubr.bf16.gmra.mxu0 %v7419_v43  ;;  %v6697_v43 = vld [vmem:[#allocation8 + $0x628] ss:$16 sps:$4 sm:$0xff]   ;;  %v6714_v32 = vld [vmem:[#allocation8 + $0x5cc] ss:$16 sps:$4 sm:$0xff]  }
 0x1c4   : > { %v3904_v53 = vpop.f32.mrf.mxu1  ;;  %4269 = vmatmul.mubr.bf16.gmra.mxu1 %v7422_v44  ;;  %v3844_v29 = vadd.f32 %v3843_v36, %v7648_v46  ;;  %v7685_v55 = vadd.f32 %v3900_v9, %v3840_v58  ;;  %4286 = vmatpush1.bf16.msra.mxu0 %v6682_v4  ;;  %v6706_v4 = vld [vmem:[#allocation8 + $0x5e8] ss:$16 sps:$4 sm:$0xff]   ;;  %v6717_v35 = vld [vmem:[#allocation8 + $0x7cc] ss:$16 sps:$4 sm:$0xff]  }
 0x1c5   : > { %4347 = vmatpush1.bf16.msra.mxu1 %v6685_v30  ;;  %v3845_v24 = vpop.f32.mrf.mxu0  ;;  %4287 = vmatprep.subr.bf16.mxu0 %v6690_v57  ;;  %v6709_v30 = vld [vmem:[#allocation8 + $0x7e8] ss:$16 sps:$4 sm:$0xff]   ;;  %v6720_v9 = vld [vmem:[#allocation8 + $0x5ac] ss:$16 sps:$4 sm:$0xff]  }
 0x1c6   : > { %v3906_v25 = vpop.f32.mrf.mxu1  ;;  %4348 = vmatprep.subr.bf16.mxu1 %v6693_v10  ;;  %v3846_v56 = vadd.f32 %v3845_v24, %v7650_v40  ;;  %v7688_v21 = vadd.f32 %v3904_v53, %v3844_v29  ;;  %4309 = vmatprep.mubr.bf16.mxu0 %v7440_v59  ;;  %v6708_v59 = vld [vmem:[#allocation8 + $0x5ec] ss:$16 sps:$4 sm:$0xff]   ;;  %v6712_v49 = vld [vmem:[#allocation8 + $0x5c8] ss:$16 sps:$4 sm:$0xff]  }
 0x1c7   : > { %4370 = vmatprep.mubr.bf16.mxu1 %v7444_v60  ;;  %v3847_v44 = vpop.f32.mrf.mxu0  ;;  %v6711_v60 = vld [vmem:[#allocation8 + $0x7ec] ss:$16 sps:$4 sm:$0xff]   ;;  %v6715_v3 = vld [vmem:[#allocation8 + $0x7c8] ss:$16 sps:$4 sm:$0xff]  }
 0x1c8   : > { %v3908_v46 = vpop.f32.mrf.mxu1  ;;  %v7692_v13 = vadd.f32 %v3906_v25, %v3846_v56  ;;  %4288 = vmatpush1.bf16.msra.mxu0 %v6688_v41  ;;  %v6723_v57 = vld [vmem:[#allocation8 + $0x7ac] ss:$16 sps:$4 sm:$0xff]   ;;  %v6718_v10 = vld [vmem:[#allocation8 + $0x5a8] ss:$16 sps:$4 sm:$0xff]  }
 0x1c9   : > { %4349 = vmatpush1.bf16.msra.mxu1 %v6691_v42  ;;  %4289 = vmatprep.subr.bf16.mxu0 %v6696_v33  ;;  %v3848_v39 = vpop.f32.mrf.mxu0  ;;  %v6721_v58 = vld [vmem:[#allocation8 + $0x7a8] ss:$16 sps:$4 sm:$0xff]   ;;  %v6726_v41 = vld [vmem:[#allocation8 + $0x58c] ss:$16 sps:$4 sm:$0xff]  }
 0x1ca   : > { %4350 = vmatprep.subr.bf16.mxu1 %v6699_v31  ;;  %v3909_v40 = vpop.f32.mrf.mxu1  ;;  %v6729_v42 = vld [vmem:[#allocation8 + $0x78c] ss:$16 sps:$4 sm:$0xff]   ;;  %v6724_v36 = vld [vmem:[#allocation8 + $0x588] ss:$16 sps:$4 sm:$0xff]  }
 0x1cb   : > { %v6727_v53 = vld [vmem:[#allocation8 + $0x788] ss:$16 sps:$4 sm:$0xff]   ;;  %v6732_v29 = vld [vmem:[#allocation8 + $0x56c] ss:$16 sps:$4 sm:$0xff]  }
 0x1cc   : > { %4290 = vmatpush1.bf16.msra.mxu0 %v6694_v20  ;;  %v6735_v24 = vld [vmem:[#allocation8 + $0x76c] ss:$16 sps:$4 sm:$0xff]   ;;  %v6730_v25 = vld [vmem:[#allocation8 + $0x568] ss:$16 sps:$4 sm:$0xff]  }
 0x1cd   : > { %4351 = vmatpush1.bf16.msra.mxu1 %v6697_v43  ;;  %4291 = vmatprep.subr.bf16.mxu0 %v6702_v17  ;;  %v6733_v33 = vld [vmem:[#allocation8 + $0x768] ss:$16 sps:$4 sm:$0xff]   ;;  %v6738_v31 = vld [vmem:[#allocation8 + $0x54c] ss:$16 sps:$4 sm:$0xff]  }
 0x1ce   : > { %4352 = vmatprep.subr.bf16.mxu1 %v6705_v15  ;;  %v6741_v56 = vld [vmem:[#allocation8 + $0x74c] ss:$16 sps:$4 sm:$0xff]   ;;  %v6736_v20 = vld [vmem:[#allocation8 + $0x548] ss:$16 sps:$4 sm:$0xff]  }
 0x1cf   : > { %v6739_v43 = vld [vmem:[#allocation8 + $0x748] ss:$16 sps:$4 sm:$0xff]   ;;  %v6744_v44 = vld [vmem:[#allocation8 + $0x52c] ss:$16 sps:$4 sm:$0xff]  }
 0x1d0   : > { %4292 = vmatpush1.bf16.msra.mxu0 %v6700_v45  ;;  %v6747_v46 = vld [vmem:[#allocation8 + $0x72c] ss:$16 sps:$4 sm:$0xff]   ;;  %v6742_v17 = vld [vmem:[#allocation8 + $0x528] ss:$16 sps:$4 sm:$0xff]  }
 0x1d1   : > { %4353 = vmatpush1.bf16.msra.mxu1 %v6703_v28  ;;  %4293 = vmatprep.subr.bf16.mxu0 %v6708_v59  ;;  %v6745_v15 = vld [vmem:[#allocation8 + $0x728] ss:$16 sps:$4 sm:$0xff]   ;;  %v6750_v39 = vld [vmem:[#allocation8 + $0x50c] ss:$16 sps:$4 sm:$0xff]  }
 0x1d2   : > { %4354 = vmatprep.subr.bf16.mxu1 %v6711_v60  ;;  %v6753_v40 = vld [vmem:[#allocation8 + $0x70c] ss:$16 sps:$4 sm:$0xff]   ;;  %v6748_v45 = vld [vmem:[#allocation8 + $0x508] ss:$16 sps:$4 sm:$0xff]  }
 0x1d3   : > { %v6751_v28 = vld [vmem:[#allocation8 + $0x708] ss:$16 sps:$4 sm:$0xff]   ;;  %v6756_v59 = vld [vmem:[#allocation8 + $0x8ec] ss:$16 sps:$4 sm:$0xff]  }
 0x1d4   : > { %4294 = vmatpush2.bf16.msra.mxu0 %v6706_v4  ;;  %v6759_v60 = vld [vmem:[#allocation8 + $0xaec] ss:$16 sps:$4 sm:$0xff]   ;;  %v6754_v4 = vld [vmem:[#allocation8 + $0x8e8] ss:$16 sps:$4 sm:$0xff]  }
 0x1d5   : > { %4355 = vmatpush2.bf16.msra.mxu1 %v6709_v30  ;;  %4295 = vmatprep.subr.bf16.mxu0 %v6714_v32  ;;  %v6757_v30 = vld [vmem:[#allocation8 + $0xae8] ss:$16 sps:$4 sm:$0xff]   ;;  %v6762_v32 = vld [vmem:[#allocation8 + $0x8cc] ss:$16 sps:$4 sm:$0xff]  }
 0x1d6   : > { %4356 = vmatprep.subr.bf16.mxu1 %v6717_v35  ;;  %v6765_v35 = vld [vmem:[#allocation8 + $0xacc] ss:$16 sps:$4 sm:$0xff]  }
 0x1d8   : > { %4296 = vmatpush2.bf16.msra.mxu0 %v6712_v49 }
 0x1d9   : > { %4357 = vmatpush2.bf16.msra.mxu1 %v6715_v3  ;;  %4297 = vmatprep.subr.bf16.mxu0 %v6720_v9  ;;  %v6760_v9 = vld [vmem:[#allocation8 + $0x8c8] ss:$16 sps:$4 sm:$0xff]  }
 0x1da   : > { %4358 = vmatprep.subr.bf16.mxu1 %v6723_v57  ;;  %v6763_v57 = vld [vmem:[#allocation8 + $0xac8] ss:$16 sps:$4 sm:$0xff]  }
 0x1dc   : > { %4298 = vmatpush2.bf16.msra.mxu0 %v6718_v10 }
 0x1dd   : > { %4359 = vmatpush2.bf16.msra.mxu1 %v6721_v58  ;;  %4299 = vmatprep.subr.bf16.mxu0 %v6726_v41  ;;  %v6768_v41 = vld [vmem:[#allocation8 + $0x8ac] ss:$16 sps:$4 sm:$0xff]  }
 0x1de   : > { %4360 = vmatprep.subr.bf16.mxu1 %v6729_v42  ;;  %v6771_v42 = vld [vmem:[#allocation8 + $0xaac] ss:$16 sps:$4 sm:$0xff]  }
 0x1e0   : > { %4300 = vmatpush2.bf16.msra.mxu0 %v6724_v36 }
 0x1e1   : > { %4361 = vmatpush2.bf16.msra.mxu1 %v6727_v53  ;;  %4301 = vmatprep.subr.bf16.mxu0 %v6732_v29  ;;  %v6766_v53 = vld [vmem:[#allocation8 + $0x8a8] ss:$16 sps:$4 sm:$0xff]  }
 0x1e2   : > { %4362 = vmatprep.subr.bf16.mxu1 %v6735_v24  ;;  %v6769_v29 = vld [vmem:[#allocation8 + $0xaa8] ss:$16 sps:$4 sm:$0xff]  }
 0x1e4   : > { %4302 = vmatpush2.bf16.msra.mxu0 %v6730_v25 }
 0x1e5   : > { %4363 = vmatpush2.bf16.msra.mxu1 %v6733_v33  ;;  %4303 = vmatprep.subr.bf16.mxu0 %v6738_v31  ;;  %v6774_v33 = vld [vmem:[#allocation8 + $0x88c] ss:$16 sps:$4 sm:$0xff]  }
 0x1e6   : > { %4364 = vmatprep.subr.bf16.mxu1 %v6741_v56  ;;  %v6777_v31 = vld [vmem:[#allocation8 + $0xa8c] ss:$16 sps:$4 sm:$0xff]  }
 0x1e8   : > { %4304 = vmatpush2.bf16.msra.mxu0 %v6736_v20 }
 0x1e9   : > { %4365 = vmatpush2.bf16.msra.mxu1 %v6739_v43  ;;  %4305 = vmatprep.subr.bf16.mxu0 %v6744_v44  ;;  %v6772_v44 = vld [vmem:[#allocation8 + $0x888] ss:$16 sps:$4 sm:$0xff]  }
 0x1ea   : > { %4366 = vmatprep.subr.bf16.mxu1 %v6747_v46  ;;  %v6775_v46 = vld [vmem:[#allocation8 + $0xa88] ss:$16 sps:$4 sm:$0xff]  }
 0x1ec   : > { %4306 = vmatpush2.bf16.msra.mxu0 %v6742_v17 }
 0x1ed   : > { %4367 = vmatpush2.bf16.msra.mxu1 %v6745_v15  ;;  %4307 = vmatprep.subr.bf16.mxu0 %v6750_v39  ;;  %v6780_v39 = vld [vmem:[#allocation8 + $0x86c] ss:$16 sps:$4 sm:$0xff]  }
 0x1ee   : > { %4368 = vmatprep.subr.bf16.mxu1 %v6753_v40 }
 0x1f0   : > { %4308 = vmatpush2.bf16.msra.mxu0 %v6748_v45 }
 0x1f1   : > { %4369 = vmatpush2.bf16.msra.mxu1 %v6751_v28  ;;  %4399 = vmatprep.subr.bf16.mxu0 %v6756_v59  ;;  %v6778_v59 = vld [vmem:[#allocation8 + $0x868] ss:$16 sps:$4 sm:$0xff]  }
 0x1f2   : > { %4460 = vmatprep.subr.bf16.mxu1 %v6759_v60  ;;  %v6781_v60 = vld [vmem:[#allocation8 + $0xa68] ss:$16 sps:$4 sm:$0xff]  }
 0x1f3   : > { %v7694_v49 = vpop.f32.mrf.mxu0  ;;  %4310 = vmatmul.mubr.bf16.vlgmr.msra.gmra.mxu0 %v7452_v47 }
 0x1f4   : > { %v7696_v3 = vpop.f32.mrf.mxu1  ;;  %4371 = vmatmul.mubr.bf16.vlgmr.msra.gmra.mxu1 %v7456_v48  ;;  %4400 = vmatpush1.bf16.msra.mxu0 %v6754_v4 }
 0x1f5   : > { %4461 = vmatpush1.bf16.msra.mxu1 %v6757_v30  ;;  %v7700_v10 = vpop.f32.mrf.mxu0  ;;  %4401 = vmatprep.subr.bf16.mxu0 %v6762_v32  ;;  %v6789_v32 = vld [vmem:[#allocation8 + $0xa4c] ss:$16 sps:$4 sm:$0xff]  }
 0x1f6   : > { %v7702_v58 = vpop.f32.mrf.mxu1  ;;  %4462 = vmatprep.subr.bf16.mxu1 %v6765_v35  ;;  %4319 = vmatprep.mubr.bf16.mxu0 %v7460_v61 }
 0x1f7   : > { %4380 = vmatprep.mubr.bf16.mxu1 %v7462_v62  ;;  %v3949_v36 = vpop.f32.mrf.mxu0 }
 0x1f8   : > { %v4010_v47 = vpop.f32.mrf.mxu1  ;;  %v3950_v48 = vadd.f32 %v3949_v36, %v7663_v54  ;;  %4402 = vmatpush1.bf16.msra.mxu0 %v6760_v9 }
 0x1f9   : > { %4463 = vmatpush1.bf16.msra.mxu1 %v6763_v57  ;;  %v3951_v24 = vpop.f32.mrf.mxu0  ;;  %4403 = vmatprep.subr.bf16.mxu0 %v6768_v41  ;;  %v6784_v41 = vld [vmem:[#allocation8 + $0x848] ss:$16 sps:$4 sm:$0xff]  }
 0x1fa   : > { %v4012_v25 = vpop.f32.mrf.mxu1  ;;  %4464 = vmatprep.subr.bf16.mxu1 %v6771_v42  ;;  %v7707_v56 = vadd.f32 %v4010_v47, %v3950_v48  ;;  %v3952_v61 = vadd.f32 %v3951_v24, %v7668_v52  ;;  %v6783_v52 = vld [vmem:[#allocation8 + $0xa6c] ss:$16 sps:$4 sm:$0xff]   ;;  %v6787_v42 = vld [vmem:[#allocation8 + $0xa48] ss:$16 sps:$4 sm:$0xff]  }
 0x1fb   : > { %v3955_v20 = vpop.f32.mrf.mxu0  ;;  %4320 = vmatmul.mubr.bf16.gmra.mxu0 %v7468_v0  ;;  %v6795_v48 = vld [vmem:[#allocation8 + $0xa2c] ss:$16 sps:$4 sm:$0xff]   ;;  %v6790_v24 = vld [vmem:[#allocation8 + $0x828] ss:$16 sps:$4 sm:$0xff]  }
 0x1fc   : > { %v4016_v62 = vpop.f32.mrf.mxu1  ;;  %4381 = vmatmul.mubr.bf16.gmra.mxu1 %v7470_v2  ;;  %v7712_v54 = vadd.f32 %v4012_v25, %v3952_v61  ;;  %v3956_v43 = vadd.f32 %v3955_v20, %v7672_v14  ;;  %4404 = vmatpush1.bf16.msra.mxu0 %v6766_v53  ;;  %v6793_v25 = vld [vmem:[#allocation8 + $0xa28] ss:$16 sps:$4 sm:$0xff]  }
 0x1fd   : > { %4465 = vmatpush1.bf16.msra.mxu1 %v6769_v29  ;;  %v3957_v17 = vpop.f32.mrf.mxu0  ;;  %4405 = vmatprep.subr.bf16.mxu0 %v6774_v33  ;;  %v6798_v33 = vld [vmem:[#allocation8 + $0x80c] ss:$16 sps:$4 sm:$0xff]   ;;  %v6796_v20 = vld [vmem:[#allocation8 + $0x808] ss:$16 sps:$4 sm:$0xff]  }
 0x1fe   : > { %v4018_v15 = vpop.f32.mrf.mxu1  ;;  %4466 = vmatprep.subr.bf16.mxu1 %v6777_v31  ;;  %v3958_v40 = vadd.f32 %v3957_v17, %v7677_v11  ;;  %v7716_v0 = vadd.f32 %v4016_v62, %v3956_v43  ;;  %4329 = vmatprep.mubr.bf16.mxu0 %v7474_v7  ;;  %v6786_v11 = vld [vmem:[#allocation8 + $0x84c] ss:$16 sps:$4 sm:$0xff]   ;;  %v6802_v43 = vld [vmem:[#allocation8 + $0x9e8] ss:$16 sps:$4 sm:$0xff]  }
 0x1ff   : > { %4390 = vmatprep.mubr.bf16.mxu1 %v7476_v8  ;;  %v3959_v2 = vpop.f32.mrf.mxu0  ;;  %v6801_v31 = vld [vmem:[#allocation8 + $0xa0c] ss:$16 sps:$4 sm:$0xff]  }
 0x200   : > { %v4020_v14 = vpop.f32.mrf.mxu1  ;;  %v3960_v45 = vadd.f32 %v3959_v2, %v7680_v12  ;;  %v7721_v28 = vadd.f32 %v4018_v15, %v3958_v40  ;;  %4406 = vmatpush1.bf16.msra.mxu0 %v6772_v44  ;;  %v6807_v62 = vld [vmem:[#allocation8 + $0xbec] ss:$16 sps:$4 sm:$0xff]   ;;  %v6805_v44 = vld [vmem:[#allocation8 + $0xbe8] ss:$16 sps:$4 sm:$0xff]  }
 0x201   : > { %4467 = vmatpush1.bf16.msra.mxu1 %v6775_v46  ;;  %v3961_v4 = vpop.f32.mrf.mxu0  ;;  %4407 = vmatprep.subr.bf16.mxu0 %v6780_v39  ;;  %v6810_v46 = vld [vmem:[#allocation8 + $0x9cc] ss:$16 sps:$4 sm:$0xff]   ;;  %v6808_v15 = vld [vmem:[#allocation8 + $0x9c8] ss:$16 sps:$4 sm:$0xff]  }
 0x202   : > { %v4022_v30 = vpop.f32.mrf.mxu1  ;;  %4468 = vmatprep.subr.bf16.mxu1 %v6783_v52  ;;  %v3962_v7 = vadd.f32 %v3961_v4, %v7685_v55  ;;  %v7724_v35 = vadd.f32 %v4020_v14, %v3960_v45  ;;  %v6792_v55 = vld [vmem:[#allocation8 + $0x82c] ss:$16 sps:$4 sm:$0xff]   ;;  %v6811_v39 = vld [vmem:[#allocation8 + $0xbc8] ss:$16 sps:$4 sm:$0xff]  }
 0x203   : > { %v3965_v8 = vpop.f32.mrf.mxu0  ;;  %4330 = vmatmul.mubr.bf16.gmra.mxu0 %v7491_v18  ;;  %v6813_v17 = vld [vmem:[#allocation8 + $0xbcc] ss:$16 sps:$4 sm:$0xff]   ;;  %v6814_v2 = vld [vmem:[#allocation8 + $0x9a8] ss:$16 sps:$4 sm:$0xff]  }
 0x204   : > { %v4026_v12 = vpop.f32.mrf.mxu1  ;;  %4391 = vmatmul.mubr.bf16.gmra.mxu1 %v7493_v19  ;;  %v3966_v9 = vadd.f32 %v3965_v8, %v7688_v21  ;;  %v7729_v57 = vadd.f32 %v4022_v30, %v3962_v7  ;;  %4408 = vmatpush1.bf16.msra.mxu0 %v6778_v59  ;;  %v6816_v52 = vld [vmem:[#allocation8 + $0x9ac] ss:$16 sps:$4 sm:$0xff]   ;;  %v6817_v14 = vld [vmem:[#allocation8 + $0xba8] ss:$16 sps:$4 sm:$0xff]  }
 0x205   : > { %4469 = vmatpush1.bf16.msra.mxu1 %v6781_v60  ;;  %v3967_v36 = vpop.f32.mrf.mxu0  ;;  %4409 = vmatprep.subr.bf16.mxu0 %v6786_v11  ;;  %v6819_v40 = vld [vmem:[#allocation8 + $0xbac] ss:$16 sps:$4 sm:$0xff]   ;;  %v6820_v60 = vld [vmem:[#allocation8 + $0x988] ss:$16 sps:$4 sm:$0xff]  }
 0x206   : > { %v4028_v47 = vpop.f32.mrf.mxu1  ;;  %4470 = vmatprep.subr.bf16.mxu1 %v6789_v32  ;;  %v3968_v53 = vadd.f32 %v3967_v36, %v7692_v13  ;;  %v7732_v18 = vadd.f32 %v4026_v12, %v3966_v9  ;;  %4431 = vmatprep.mubr.bf16.mxu0 %v7500_v26  ;;  %v6799_v26 = vld [vmem:[#allocation8 + $0xa08] ss:$16 sps:$4 sm:$0xff]   ;;  %v6822_v45 = vld [vmem:[#allocation8 + $0x98c] ss:$16 sps:$4 sm:$0xff]  }
 0x207   : > { %4492 = vmatprep.mubr.bf16.mxu1 %v7504_v27  ;;  %v3969_v19 = vpop.f32.mrf.mxu0  ;;  %v6804_v27 = vld [vmem:[#allocation8 + $0x9ec] ss:$16 sps:$4 sm:$0xff]   ;;  %v6823_v4 = vld [vmem:[#allocation8 + $0xb88] ss:$16 sps:$4 sm:$0xff]  }
 0x208   : > { %v4030_v21 = vpop.f32.mrf.mxu1  ;;  %v7736_v29 = vadd.f32 %v4028_v47, %v3968_v53  ;;  %4410 = vmatpush1.bf16.msra.mxu0 %v6784_v41  ;;  %v6825_v59 = vld [vmem:[#allocation8 + $0xb8c] ss:$16 sps:$4 sm:$0xff]   ;;  %v6826_v32 = vld [vmem:[#allocation8 + $0x968] ss:$16 sps:$4 sm:$0xff]   ;;  %v4643_v19 = vld [vmem:[#allocation2 + $0x10] sm:$0xff] }
 0x209   : > { %4471 = vmatpush1.bf16.msra.mxu1 %v6787_v42  ;;  %4411 = vmatprep.subr.bf16.mxu0 %v6792_v55  ;;  %v3970_v61 = vpop.f32.mrf.mxu0  ;;  %v6828_v30 = vld [vmem:[#allocation8 + $0x96c] ss:$16 sps:$4 sm:$0xff]   ;;  %v6829_v7 = vld [vmem:[#allocation8 + $0xb68] ss:$16 sps:$4 sm:$0xff]   ;;  %vm4647_vm0 = vcmp.gt.f32.partialorder %v4643_v19, 0.3 }
 0x20a   : > { %4472 = vmatprep.subr.bf16.mxu1 %v6795_v48  ;;  %v4031_v13 = vpop.f32.mrf.mxu1  ;;  %v6831_v11 = vld [vmem:[#allocation8 + $0xb6c] ss:$16 sps:$4 sm:$0xff]   ;;  %v6832_v9 = vld [vmem:[#allocation8 + $0x948] ss:$16 sps:$4 sm:$0xff]   ;;  %v3946_v61 = vadd.f32 %v7694_v49, %v7655_v16 }
 0x20b   : > { %v6834_v8 = vld [vmem:[#allocation8 + $0x94c] ss:$16 sps:$4 sm:$0xff]   ;;  %v6835_v41 = vld [vmem:[#allocation8 + $0xb48] ss:$16 sps:$4 sm:$0xff]   ;;  %v3948_v13 = vadd.f32 %v7700_v10, %v7660_v34 }
 0x20c   : > { %4412 = vmatpush1.bf16.msra.mxu0 %v6790_v24  ;;  %v6837_v12 = vld [vmem:[#allocation8 + $0xb4c] ss:$16 sps:$4 sm:$0xff]   ;;  %v6838_v47 = vld [vmem:[#allocation8 + $0x928] ss:$16 sps:$4 sm:$0xff]  }
 0x20d   : > { %4473 = vmatpush1.bf16.msra.mxu1 %v6793_v25  ;;  %4413 = vmatprep.subr.bf16.mxu0 %v6798_v33  ;;  %v6840_v42 = vld [vmem:[#allocation8 + $0x92c] ss:$16 sps:$4 sm:$0xff]   ;;  %v6841_v55 = vld [vmem:[#allocation8 + $0xb28] ss:$16 sps:$4 sm:$0xff]   ;;  %v4009_v34 = vadd.f32 %v7702_v58, %v3948_v13 }
 0x20e   : > { %4474 = vmatprep.subr.bf16.mxu1 %v6801_v31  ;;  %v6843_v36 = vld [vmem:[#allocation8 + $0xb2c] ss:$16 sps:$4 sm:$0xff]   ;;  %v6844_v21 = vld [vmem:[#allocation8 + $0x908] ss:$16 sps:$4 sm:$0xff]   ;;  %v4644_v31 = vld [vmem:[#allocation2] sm:$0xff] }
 0x20f   : > { %v6846_v48 = vld [vmem:[#allocation8 + $0x90c] ss:$16 sps:$4 sm:$0xff]   ;;  %v6847_v24 = vld [vmem:[#allocation8 + $0xb08] ss:$16 sps:$4 sm:$0xff]   ;;  %vm4648_vm1 = vcmp.gt.f32.partialorder %v4644_v31, 0.3 }
 0x210   : > { %4414 = vmatpush1.bf16.msra.mxu0 %v6796_v20  ;;  %v6849_v53 = vld [vmem:[#allocation8 + $0xb0c] ss:$16 sps:$4 sm:$0xff]   ;;  %v6850_v20 = vld [vmem:[#allocation8 + $0xce8] ss:$16 sps:$4 sm:$0xff]   ;;  %v4652_v16 = vsel %vm4648_vm1, 0.0, %v4644_v31 }
 0x211   : > { %4475 = vmatpush1.bf16.msra.mxu1 %v6799_v26  ;;  %4415 = vmatprep.subr.bf16.mxu0 %v6804_v27  ;;  %v6852_v25 = vld [vmem:[#allocation8 + $0xcec] ss:$16 sps:$4 sm:$0xff]   ;;  %v6853_v26 = vld [vmem:[#allocation8 + $0xee8] ss:$16 sps:$4 sm:$0xff]   ;;  %v4651_v27 = vsel %vm4647_vm0, 0.0, %v4643_v19 }
 0x212   : > { %4476 = vmatprep.subr.bf16.mxu1 %v6807_v62  ;;  %v6855_v33 = vld [vmem:[#allocation8 + $0xeec] ss:$16 sps:$4 sm:$0xff]   ;;  %v4655_v10 = vmul.f32 0.3, %v4651_v27 }
 0x213   : > { %v6858_v62 = vld [vmem:[#allocation8 + $0xccc] ss:$16 sps:$4 sm:$0xff]  }
 0x214   : > { %4416 = vmatpush2.bf16.msra.mxu0 %v6802_v43  ;;  %v6861_v43 = vld [vmem:[#allocation8 + $0xecc] ss:$16 sps:$4 sm:$0xff]  }
 0x215   : > { %4477 = vmatpush2.bf16.msra.mxu1 %v6805_v44  ;;  %4417 = vmatprep.subr.bf16.mxu0 %v6810_v46  ;;  %v4007_v44 = vadd.f32 %v7696_v3, %v3946_v61  ;;  %v6864_v3 = vld [vmem:[#allocation8 + $0xcac] ss:$16 sps:$4 sm:$0xff]  }
 0x216   : > { %4478 = vmatprep.subr.bf16.mxu1 %v6813_v17 }
 0x218   : > { %4418 = vmatpush2.bf16.msra.mxu0 %v6808_v15  ;;  %v6856_v15 = vld [vmem:[#allocation8 + $0xcc8] ss:$16 sps:$4 sm:$0xff]  }
 0x219   : > { %4479 = vmatpush2.bf16.msra.mxu1 %v6811_v39  ;;  %4419 = vmatprep.subr.bf16.mxu0 %v6816_v52  ;;  %v6859_v39 = vld [vmem:[#allocation8 + $0xec8] ss:$16 sps:$4 sm:$0xff]  }
 0x21a   : > { %4480 = vmatprep.subr.bf16.mxu1 %v6819_v40 }
 0x21c   : > { %4420 = vmatpush2.bf16.msra.mxu0 %v6814_v2  ;;  %v6867_v2 = vld [vmem:[#allocation8 + $0xeac] ss:$16 sps:$4 sm:$0xff]  }
 0x21d   : > { %4481 = vmatpush2.bf16.msra.mxu1 %v6817_v14  ;;  %4421 = vmatprep.subr.bf16.mxu0 %v6822_v45 }
 0x21e   : > { %4482 = vmatprep.subr.bf16.mxu1 %v6825_v59 }
 0x220   : > { %4422 = vmatpush2.bf16.msra.mxu0 %v6820_v60 }
 0x221   : > { %4483 = vmatpush2.bf16.msra.mxu1 %v6823_v4  ;;  %4423 = vmatprep.subr.bf16.mxu0 %v6828_v30  ;;  %v6862_v30 = vld [vmem:[#allocation8 + $0xca8] ss:$16 sps:$4 sm:$0xff]  }
 0x222   : > { %4484 = vmatprep.subr.bf16.mxu1 %v6831_v11  ;;  %v6865_v11 = vld [vmem:[#allocation8 + $0xea8] ss:$16 sps:$4 sm:$0xff]  }
 0x224   : > { %4424 = vmatpush2.bf16.msra.mxu0 %v6826_v32 }
 0x225   : > { %4485 = vmatpush2.bf16.msra.mxu1 %v6829_v7  ;;  %4425 = vmatprep.subr.bf16.mxu0 %v6834_v8  ;;  %v6870_v8 = vld [vmem:[#allocation8 + $0xc8c] ss:$16 sps:$4 sm:$0xff]  }
 0x226   : > { %4486 = vmatprep.subr.bf16.mxu1 %v6837_v12  ;;  %v6873_v12 = vld [vmem:[#allocation8 + $0xe8c] ss:$16 sps:$4 sm:$0xff]  }
 0x228   : > { %4426 = vmatpush2.bf16.msra.mxu0 %v6832_v9 }
 0x229   : > { %4487 = vmatpush2.bf16.msra.mxu1 %v6835_v41  ;;  %4427 = vmatprep.subr.bf16.mxu0 %v6840_v42  ;;  %v6868_v42 = vld [vmem:[#allocation8 + $0xc88] ss:$16 sps:$4 sm:$0xff]  }
 0x22a   : > { %4488 = vmatprep.subr.bf16.mxu1 %v6843_v36 }
 0x22c   : > { %4428 = vmatpush2.bf16.msra.mxu0 %v6838_v47 }
 0x22d   : > { %4489 = vmatpush2.bf16.msra.mxu1 %v6841_v55  ;;  %4429 = vmatprep.subr.bf16.mxu0 %v6846_v48  ;;  %v6871_v55 = vld [vmem:[#allocation8 + $0xe88] ss:$16 sps:$4 sm:$0xff]  }
 0x22e   : > { %4490 = vmatprep.subr.bf16.mxu1 %v6849_v53 }
 0x230   : > { %4430 = vmatpush2.bf16.msra.mxu0 %v6844_v21  ;;  %v6879_v21 = vld [vmem:[#allocation8 + $0xe6c] ss:$16 sps:$4 sm:$0xff]  }
 0x231   : > { %4491 = vmatpush2.bf16.msra.mxu1 %v6847_v24  ;;  %4521 = vmatprep.subr.bf16.mxu0 %v6852_v25 }
 0x232   : > { %4582 = vmatprep.subr.bf16.mxu1 %v6855_v33 }
 0x233   : > { %v4067_v46 = vpop.f32.mrf.mxu0  ;;  %4432 = vmatmul.mubr.bf16.vlgmr.msra.gmra.mxu0 %v7514_v50  ;;  %v4656_v50 = vmul.f32 0.3, %v4652_v16 }
 0x234   : > { %v4128_v17 = vpop.f32.mrf.mxu1  ;;  %4493 = vmatmul.mubr.bf16.vlgmr.msra.gmra.mxu1 %v7518_v51  ;;  %v4068_v49 = vadd.f32 %v4067_v46, %v4007_v44  ;;  %4522 = vmatpush1.bf16.msra.mxu0 %v6850_v20  ;;  %v6874_v20 = vld [vmem:[#allocation8 + $0xc68] ss:$16 sps:$4 sm:$0xff]  }
 0x235   : > { %4583 = vmatpush1.bf16.msra.mxu1 %v6853_v26  ;;  %v4069_v52 = vpop.f32.mrf.mxu0  ;;  %4523 = vmatprep.subr.bf16.mxu0 %v6858_v62  ;;  %v6877_v26 = vld [vmem:[#allocation8 + $0xe68] ss:$16 sps:$4 sm:$0xff]  }
 0x236   : > { %v4130_v40 = vpop.f32.mrf.mxu1  ;;  %4584 = vmatprep.subr.bf16.mxu1 %v6861_v43  ;;  %v4129_v14 = vadd.f32 %v4128_v17, %v4068_v49  ;;  %v4070_v45 = vadd.f32 %v4069_v52, %v4009_v34  ;;  %4441 = vmatprep.mubr.bf16.mxu0 %v7522_v63  ;;  %v6885_v43 = vld [vmem:[#allocation8 + $0xe4c] ss:$16 sps:$4 sm:$0xff]   ;;  %v6880_v52 = vld [vmem:[#allocation8 + $0xc48] ss:$16 sps:$4 sm:$0xff]  }
 0x237   : > { %4502 = vmatprep.mubr.bf16.mxu1 %v7524_v1  ;;  %v4071_v51 = vpop.f32.mrf.mxu0  ;;  %v6962_v34 = vld [vmem:[#allocation11 + $0xf8] sm:$0xff]  }
 0x238   : > { %v4132_v58 = vpop.f32.mrf.mxu1  ;;  %v4659_v59 = vadd.f32 %v4655_v10, %v4129_v14  ;;  %v4131_v60 = vadd.f32 %v4130_v40, %v4070_v45  ;;  %v4072_v4 = vadd.f32 %v4071_v51, %v7707_v56  ;;  %4524 = vmatpush1.bf16.msra.mxu0 %v6856_v15  ;;  %v6883_v40 = vld [vmem:[#allocation8 + $0xe48] ss:$16 sps:$4 sm:$0xff]  }
 0x239   : > { %4585 = vmatpush1.bf16.msra.mxu1 %v6859_v39  ;;  %v4073_v32 = vpop.f32.mrf.mxu0  ;;  %4525 = vmatprep.subr.bf16.mxu0 %v6864_v3  ;;  %v7997_v51 = vld [vmem:[#allocation20_spill] sm:$0xff] }
 0x23a   : > { %v4134_v7 = vpop.f32.mrf.mxu1  ;;  %4586 = vmatprep.subr.bf16.mxu1 %v6867_v2  ;;  %vm4663_vm2 = vcmp.gt.f32.partialorder %v4659_v59, 0.3  ;;  %v4660_v63 = vadd.f32 %v4656_v50, %v4131_v60  ;;  %v4074_v1 = vadd.f32 %v4073_v32, %v7712_v54  ;;  %v4133_v36 = vadd.f32 %v4132_v58, %v4072_v4  ;;  %v6876_v54 = vld [vmem:[#allocation8 + $0xc6c] ss:$16 sps:$4 sm:$0xff]   ;;  %v6886_v58 = vld [vmem:[#allocation8 + $0xc28] ss:$16 sps:$4 sm:$0xff]  }
 0x23b   : > { %v4675_v9 = vsel %vm4663_vm2, 0.0, %v4659_v59  ;;  %v4077_v41 = vpop.f32.mrf.mxu0  ;;  %4442 = vmatmul.mubr.bf16.gmra.mxu0 %v7531_v5  ;;  %v7996_v50 = vld [vmem:[#allocation19_spill] sm:$0xff] }
 0x23c   : > { %v4138_v56 = vpop.f32.mrf.mxu1  ;;  %4503 = vmatmul.mubr.bf16.gmra.mxu1 %v7533_v6  ;;  %vm4664_vm3 = vcmp.gt.f32.partialorder %v4660_v63, 0.3  ;;  %v4679_v47 = vmul.f32 0.3, %v4675_v9  ;;  %4526 = vmatpush1.bf16.msra.mxu0 %v6862_v30  ;;  %v4135_v5 = vadd.f32 %v4134_v7, %v4074_v1  ;;  %v4078_v6 = vadd.f32 %v4077_v41, %v7716_v0  ;;  %v6897_v7 = vld [vmem:[#allocation8 + $0xe0c] ss:$16 sps:$4 sm:$0xff]  }
 0x23d   : > { %4587 = vmatpush1.bf16.msra.mxu1 %v6865_v11  ;;  %v4676_v48 = vsel %vm4664_vm3, 0.0, %v4660_v63  ;;  %v4079_v53 = vpop.f32.mrf.mxu0  ;;  %4527 = vmatprep.subr.bf16.mxu0 %v6870_v8  ;;  %v6889_v11 = vld [vmem:[#allocation8 + $0xe28] ss:$16 sps:$4 sm:$0xff]  }
 0x23e   : > { %v4140_v19 = vpop.f32.mrf.mxu1  ;;  %4588 = vmatprep.subr.bf16.mxu1 %v6873_v12  ;;  %v4683_v24 = vadd.f32 %v4679_v47, %v4133_v36  ;;  %v4680_v25 = vmul.f32 0.3, %v4676_v48  ;;  %4451 = vmatprep.mubr.bf16.mxu0 %v7536_v22  ;;  %v4080_v13 = vadd.f32 %v4079_v53, %v7721_v28  ;;  %v4139_v44 = vadd.f32 %v4138_v56, %v4078_v6  ;;  %v6892_v36 = vld [vmem:[#allocation8 + $0xc08] ss:$16 sps:$4 sm:$0xff]   ;;  %v6900_v48 = vld [vmem:[#allocation8 + $0xdec] ss:$16 sps:$4 sm:$0xff]  }
 0x23f   : > { %4512 = vmatprep.mubr.bf16.mxu1 %v7538_v23  ;;  %v4081_v33 = vpop.f32.mrf.mxu0  ;;  %v6882_v23 = vld [vmem:[#allocation8 + $0xc4c] ss:$16 sps:$4 sm:$0xff]   ;;  %v6895_v47 = vld [vmem:[#allocation8 + $0xe08] ss:$16 sps:$4 sm:$0xff]  }
 0x240   : > { %v4142_v31 = vpop.f32.mrf.mxu1  ;;  %vm4687_vm4 = vcmp.gt.f32.partialorder %v4683_v24, 0.3  ;;  %v4684_v61 = vadd.f32 %v4680_v25, %v4135_v5  ;;  %4528 = vmatpush1.bf16.msra.mxu0 %v6868_v42  ;;  %v4082_v10 = vadd.f32 %v4081_v33, %v7724_v35  ;;  %v4141_v15 = vadd.f32 %v4140_v19, %v4080_v13  ;;  %v6903_v53 = vld [vmem:[#allocation8 + $0xfec] ss:$16 sps:$4 sm:$0xff]   ;;  %v6898_v6 = vld [vmem:[#allocation8 + $0xde8] ss:$16 sps:$4 sm:$0xff]  }
 0x241   : > { %4589 = vmatpush1.bf16.msra.mxu1 %v6871_v55  ;;  %v4699_v27 = vsel %vm4687_vm4, 0.0, %v4683_v24  ;;  %vm7759_vm5 = vmpackc.low %vm4687_vm4, %vm4663_vm2  ;;  %v4083_v0 = vpop.f32.mrf.mxu0  ;;  %4529 = vmatprep.subr.bf16.mxu0 %v6876_v54  ;;  %v6901_v33 = vld [vmem:[#allocation8 + $0xfe8] ss:$16 sps:$4 sm:$0xff]  }
 0x242   : > { %v4144_v22 = vpop.f32.mrf.mxu1  ;;  %4590 = vmatprep.subr.bf16.mxu1 %v6879_v21  ;;  %vm4688_vm6 = vcmp.gt.f32.partialorder %v4684_v61, 0.3  ;;  %v4703_v46 = vmul.f32 0.3, %v4699_v27  ;;  %v4084_v45 = vadd.f32 %v4083_v0, %v7729_v57  ;;  %v4143_v4 = vadd.f32 %v4142_v31, %v4082_v10  ;;  %v6894_v57 = vld [vmem:[#allocation8 + $0xc0c] ss:$16 sps:$4 sm:$0xff]  }
 0x243   : > { %v4700_v28 = vsel %vm4688_vm6, 0.0, %v4684_v61  ;;  %v4087_v17 = vpop.f32.mrf.mxu0  ;;  %4452 = vmatmul.mubr.bf16.gmra.mxu0 %v7553_v37  ;;  %vm7766_vm7 = vmpackc.low %vm4688_vm6, %vm4664_vm3  ;;  %v6888_v37 = vld [vmem:[#allocation8 + $0xc2c] ss:$16 sps:$4 sm:$0xff]   ;;  %v6925_v10 = vld [vmem:[#allocation8 + $0xf68] ss:$16 sps:$4 sm:$0xff]  }
 0x244   : > { %v4148_v16 = vpop.f32.mrf.mxu1  ;;  %4513 = vmatmul.mubr.bf16.gmra.mxu1 %v7555_v38  ;;  %v4707_v49 = vadd.f32 %v4703_v46, %v4139_v44  ;;  %v4704_v39 = vmul.f32 0.3, %v4700_v28  ;;  %4530 = vmatpush1.bf16.msra.mxu0 %v6874_v20  ;;  %v6891_v38 = vld [vmem:[#allocation8 + $0xe2c] ss:$16 sps:$4 sm:$0xff]   ;;  %v4088_v1 = vadd.f32 %v4087_v17, %v7732_v18  ;;  %v4145_v9 = vadd.f32 %v4144_v22, %v4084_v45  ;;  %v6904_v20 = vld [vmem:[#allocation8 + $0xdc8] ss:$16 sps:$4 sm:$0xff]  }
 0x245   : > { %4591 = vmatpush1.bf16.msra.mxu1 %v6877_v26  ;;  %v4089_v3 = vpop.f32.mrf.mxu0  ;;  %4531 = vmatprep.subr.bf16.mxu0 %v6882_v23  ;;  %v6906_v31 = vld [vmem:[#allocation8 + $0xdcc] ss:$16 sps:$4 sm:$0xff]   ;;  %v6907_v26 = vld [vmem:[#allocation8 + $0xfc8] ss:$16 sps:$4 sm:$0xff]  }
 0x246   : > { %v4150_v2 = vpop.f32.mrf.mxu1  ;;  %4592 = vmatprep.subr.bf16.mxu1 %v6885_v43  ;;  %vm4711_vm8 = vcmp.gt.f32.partialorder %v4707_v49, 0.3  ;;  %v4708_v14 = vadd.f32 %v4704_v39, %v4141_v15  ;;  %4553 = vmatprep.mubr.bf16.mxu0 %v7996_v50  ;;  %v4090_v42 = vadd.f32 %v4089_v3, %v7736_v29  ;;  %v4149_v18 = vadd.f32 %v4148_v16, %v4088_v1  ;;  %v6909_v61 = vld [vmem:[#allocation8 + $0xfcc] ss:$16 sps:$4 sm:$0xff]   ;;  %v6910_v22 = vld [vmem:[#allocation8 + $0xda8] ss:$16 sps:$4 sm:$0xff]  }
 0x247   : > { %4614 = vmatprep.mubr.bf16.mxu1 %v7997_v51  ;;  %v4723_v35 = vsel %vm4711_vm8, 0.0, %v4707_v49  ;;  %v4091_v59 = vpop.f32.mrf.mxu0  ;;  %v6912_v27 = vld [vmem:[#allocation8 + $0xdac] ss:$16 sps:$4 sm:$0xff]   ;;  %v6913_v23 = vld [vmem:[#allocation8 + $0xfa8] ss:$16 sps:$4 sm:$0xff]  }
 0x248   : > { %v4152_v60 = vpop.f32.mrf.mxu1  ;;  %vm4712_vm9 = vcmp.gt.f32.partialorder %v4708_v14, 0.3  ;;  %v4727_v30 = vmul.f32 0.3, %v4723_v35  ;;  %4532 = vmatpush1.bf16.msra.mxu0 %v6880_v52  ;;  %v4151_v5 = vadd.f32 %v4150_v2, %v4090_v42  ;;  %v6915_v0 = vld [vmem:[#allocation8 + $0xfac] ss:$16 sps:$4 sm:$0xff]  }
 0x249   : > { %4593 = vmatpush1.bf16.msra.mxu1 %v6883_v40  ;;  %v4724_v32 = vsel %vm4712_vm9, 0.0, %v4708_v14  ;;  %4533 = vmatprep.subr.bf16.mxu0 %v6888_v37  ;;  %v4092_v8 = vpop.f32.mrf.mxu0  ;;  %v6918_v43 = vld [vmem:[#allocation8 + $0xd8c] ss:$16 sps:$4 sm:$0xff]   ;;  %v6916_v46 = vld [vmem:[#allocation8 + $0xd88] ss:$16 sps:$4 sm:$0xff]  }
 0x24a   : > { %4594 = vmatprep.subr.bf16.mxu1 %v6891_v38  ;;  %v4153_v12 = vpop.f32.mrf.mxu1  ;;  %v4731_v63 = vadd.f32 %v4727_v30, %v4143_v4  ;;  %v4728_v41 = vmul.f32 0.3, %v4724_v32  ;;  %v6921_v44 = vld [vmem:[#allocation8 + $0xf8c] ss:$16 sps:$4 sm:$0xff]   ;;  %v6919_v28 = vld [vmem:[#allocation8 + $0xf88] ss:$16 sps:$4 sm:$0xff]  }
 0x24b   : > { %v6924_v17 = vld [vmem:[#allocation8 + $0xd6c] ss:$16 sps:$4 sm:$0xff]   ;;  %v6922_v49 = vld [vmem:[#allocation8 + $0xd68] ss:$16 sps:$4 sm:$0xff]   ;;  %v6978_v4 = vld [vmem:[#allocation10] sm:$0xf] }
 0x24c   : > { %vm4735_vm10 = vcmp.gt.f32.partialorder %v4731_v63, 0.3  ;;  %v4732_v56 = vadd.f32 %v4728_v41, %v4145_v9  ;;  %4534 = vmatpush1.bf16.msra.mxu0 %v6886_v58  ;;  %v6927_v16 = vld [vmem:[#allocation8 + $0xf6c] ss:$16 sps:$4 sm:$0xff]   ;;  %v6928_v52 = vld [vmem:[#allocation8 + $0xd48] ss:$16 sps:$4 sm:$0xff]  }
 0x24d   : > { %4595 = vmatpush1.bf16.msra.mxu1 %v6889_v11  ;;  %v4747_v55 = vsel %vm4735_vm10, 0.0, %v4731_v63  ;;  %4535 = vmatprep.subr.bf16.mxu0 %v6894_v57  ;;  %vm7779_vm11 = vmpackc.low %vm4735_vm10, %vm4711_vm8  ;;  %v6930_v15 = vld [vmem:[#allocation8 + $0xd4c] ss:$16 sps:$4 sm:$0xff]   ;;  %v6931_v40 = vld [vmem:[#allocation8 + $0xf48] ss:$16 sps:$4 sm:$0xff]  }
 0x24e   : > { %4596 = vmatprep.subr.bf16.mxu1 %v6897_v7  ;;  %vm4736_vm12 = vcmp.gt.f32.partialorder %v4732_v56, 0.3  ;;  %v4751_v54 = vmul.f32 0.3, %v4747_v55  ;;  %v6933_v39 = vld [vmem:[#allocation8 + $0xf4c] ss:$16 sps:$4 sm:$0xff]  }
 0x24f   : > { %v4748_v21 = vsel %vm4736_vm12, 0.0, %v4732_v56  ;;  %vm7784_vm13 = vmpackc.low %vm4736_vm12, %vm4712_vm9  ;;  %v6936_v3 = vld [vmem:[#allocation8 + $0xd2c] ss:$16 sps:$4 sm:$0xff]   ;;  %v6934_v37 = vld [vmem:[#allocation8 + $0xd28] ss:$16 sps:$4 sm:$0xff]  }
 0x250   : > { %v7788_v24 = vadd.f32 %v4751_v54, %v4149_v18  ;;  %v4752_v25 = vmul.f32 0.3, %v4748_v21  ;;  %4536 = vmatpush1.bf16.msra.mxu0 %v6892_v36  ;;  %v6939_v2 = vld [vmem:[#allocation8 + $0xf2c] ss:$16 sps:$4 sm:$0xff]   ;;  %v6937_v38 = vld [vmem:[#allocation8 + $0xf28] ss:$16 sps:$4 sm:$0xff]  }
 0x251   : > { %4597 = vmatpush1.bf16.msra.mxu1 %v6895_v47  ;;  %4537 = vmatprep.subr.bf16.mxu0 %v6900_v48  ;;  %v6942_v14 = vld [vmem:[#allocation8 + $0xd0c] ss:$16 sps:$4 sm:$0xff]   ;;  %v6940_v50 = vld [vmem:[#allocation8 + $0xd08] ss:$16 sps:$4 sm:$0xff]  }
 0x252   : > { %4598 = vmatprep.subr.bf16.mxu1 %v6903_v53  ;;  %4771 = vst [vmem:[#allocation2 + $0x10] sm:$0xff] %v7788_v24  ;;  %v7791_v13 = vadd.f32 %v4752_v25, %v4151_v5  ;;  %v6945_v45 = vld [vmem:[#allocation8 + $0xf0c] ss:$16 sps:$4 sm:$0xff]   ;;  %v6943_v51 = vld [vmem:[#allocation8 + $0xf08] ss:$16 sps:$4 sm:$0xff]  }
 0x253   : > { %v8002_v35 = vld [vmem:[#allocation21_spill] sm:$0xff]  ;;  %v6948_v32 = vld [vmem:[#allocation11 + $0x70] sm:$0xff]   ;;  %v8003_v12 = vld [vmem:[#allocation22_spill] sm:$0xff]  ;;  %vm4759_vm0 = vcmp.gt.f32.partialorder %v7788_v24, 0.3 }
 0x254   : > { %4772 = vst [vmem:[#allocation2] sm:$0xff] %v7791_v13  ;;  %4538 = vmatpush2.bf16.msra.mxu0 %v6898_v6  ;;  %v881_v58 = vsub.s32 2, %v8002_v35  ;;  %v6946_v59 = vld [vmem:[#allocation11 + $0x78] sm:$0xff]   ;;  %v885_v60 = vsub.s32 3, %v8002_v35  ;;  %v8004_v63 = vld [vmem:[#allocation23_spill] sm:$0xff]  ;;  %vm5956_vm1 = vmpackc.low %vm4759_vm0, %vm4759_vm0 }
 0x255   : > { %4599 = vmatpush2.bf16.msra.mxu1 %v6901_v33  ;;  %4539 = vmatprep.subr.bf16.mxu0 %v6906_v31  ;;  %v6947_v11 = vld [vmem:[#allocation11 + $0x38] sm:$0xff]   ;;  %v6949_v9 = vld [vmem:[#allocation11 + $0x30] sm:$0xff]   ;;  %v6950_v47 = vld [vmem:[#allocation11 + $0x68] sm:$0xff]   ;;  %vm4760_vm14 = vcmp.gt.f32.partialorder %v7791_v13, 0.3 }
 0x256   : > { %4600 = vmatprep.subr.bf16.mxu1 %v6909_v61  ;;  %v7796_v30 = vrot.slane %v6978_v4, %v881_v58  ;;  %v7798_v57 = vrot.slane %v6978_v4, %v885_v60  ;;  %v8005_v41 = vld [vmem:[#allocation24_spill] sm:$0xff]  ;;  %v8006_v36 = vld [vmem:[#allocation25_spill] sm:$0xff]  ;;  %v6951_v5 = vld [vmem:[#allocation11 + $0x28] sm:$0xff]  }
 0x257   : > { %v6952_v33 = vld [vmem:[#allocation11 + $0x60] sm:$0xff]   ;;  %v6957_v60 = vld [vmem:[#allocation11 + $0x10] sm:$0xff]   ;;  %vm5954_vm15 = vmpackc.low %vm4760_vm14, %vm4760_vm14 }
 0x258   : > { %4540 = vmatpush2.bf16.msra.mxu0 %v6904_v20  ;;  %v8007_v20 = vld [vmem:[#allocation26_spill] sm:$0xff]  ;;  %v6970_v29 = vld [vmem:[#allocation11 + $0xd8] sm:$0xff]   ;;  %v6972_v24 = vld [vmem:[#allocation11 + $0xd0] sm:$0xff]  }
 0x259   : > { %4601 = vmatpush2.bf16.msra.mxu1 %v6907_v26  ;;  %4541 = vmatprep.subr.bf16.mxu0 %v6912_v27  ;;  %v8008_v26 = vld [vmem:[#allocation27_spill] sm:$0xff] }
 0x25a   : > { %4602 = vmatprep.subr.bf16.mxu1 %v6915_v0 }
 0x25c   : > { %4542 = vmatpush2.bf16.msra.mxu0 %v6910_v22 }
 0x25d   : > { %4603 = vmatpush2.bf16.msra.mxu1 %v6913_v23  ;;  %4543 = vmatprep.subr.bf16.mxu0 %v6918_v43  ;;  %v6953_v23 = vld [vmem:[#allocation11 + $0x20] sm:$0xff]   ;;  %v8009_v43 = vld [vmem:[#allocation28_spill] sm:$0xff] }
 0x25e   : > { %4604 = vmatprep.subr.bf16.mxu1 %v6921_v44 }
 0x260   : > { %4544 = vmatpush2.bf16.msra.mxu0 %v6916_v46  ;;  %v6954_v46 = vld [vmem:[#allocation11 + $0x58] sm:$0xff]  }
 0x261   : > { %4605 = vmatpush2.bf16.msra.mxu1 %v6919_v28  ;;  %4545 = vmatprep.subr.bf16.mxu0 %v6924_v17  ;;  %v8010_v28 = vld [vmem:[#allocation29_spill] sm:$0xff] }
 0x262   : > { %4606 = vmatprep.subr.bf16.mxu1 %v6927_v16 }
 0x264   : > { %4546 = vmatpush2.bf16.msra.mxu0 %v6922_v49 }
 0x265   : > { %4607 = vmatpush2.bf16.msra.mxu1 %v6925_v10  ;;  %4547 = vmatprep.subr.bf16.mxu0 %v6930_v15 }
 0x266   : > { %4608 = vmatprep.subr.bf16.mxu1 %v6933_v39 }
 0x268   : > { %4548 = vmatpush2.bf16.msra.mxu0 %v6928_v52  ;;  %v6955_v52 = vld [vmem:[#allocation11 + $0x18] sm:$0xff]  }
 0x269   : > { %4609 = vmatpush2.bf16.msra.mxu1 %v6931_v40  ;;  %4549 = vmatprep.subr.bf16.mxu0 %v6936_v3 }
 0x26a   : > { %4610 = vmatprep.subr.bf16.mxu1 %v6939_v2  ;;  %v6956_v2 = vld [vmem:[#allocation11 + $0x50] sm:$0xff]  }
 0x26c   : > { %4550 = vmatpush2.bf16.msra.mxu0 %v6934_v37 }
 0x26d   : > { %4611 = vmatpush2.bf16.msra.mxu1 %v6937_v38  ;;  %4551 = vmatprep.subr.bf16.mxu0 %v6942_v14 }
 0x26e   : > { %4612 = vmatprep.subr.bf16.mxu1 %v6945_v45 }
 0x270   : > { %4552 = vmatpush2.bf16.msra.mxu0 %v6940_v50  ;;  %v8011_v50 = vld [vmem:[#allocation30_spill] sm:$0xff] }
 0x271   : > { %4613 = vmatpush2.bf16.msra.mxu1 %v6943_v51  ;;  %5980 = vmatprep.subr.bf16.mxu0 %v6946_v59  ;;  %v8012_v51 = vld [vmem:[#allocation31_spill] sm:$0xff]  ;;  %v7210_v59 = vmov 1.0|1.0  }
 0x272   : > { %6014 = vmatprep.subr.bf16.mxu1 %v6962_v34 }
 0x273   : > { %v4189_v7 = vpop.f32.mrf.mxu0  ;;  %4554 = vmatmul.mubr.bf16.vlgmr.msra.gmra.mxu0 %v8003_v12 }
 0x274   : > { %v4250_v8 = vpop.f32.mrf.mxu1  ;;  %4615 = vmatmul.mubr.bf16.vlgmr.msra.gmra.mxu1 %v8004_v63  ;;  %v4190_v1 = vadd.f32 %v4189_v7, %v7796_v30  ;;  %5981 = vmatpush3.bf16.msra.mxu0 %v6947_v11 }
 0x275   : > { %4563 = vmatprep.mubr.bf16.mxu0 %v8005_v41  ;;  %v4191_v56 = vpop.f32.mrf.mxu0  ;;  %5982 = vmatprep.subr.bf16.mxu0 %v6948_v32  ;;  %v6958_v32 = vld [vmem:[#allocation11 + $0x48] sm:$0xff]  }
 0x276   : > { %v4252_v42 = vpop.f32.mrf.mxu1  ;;  %4624 = vmatprep.mubr.bf16.mxu1 %v8006_v36  ;;  %v7805_v55 = vadd.f32 %v4250_v8, %v4190_v1  ;;  %v4192_v48 = vadd.f32 %v4191_v56, %v7798_v57  ;;  %v6959_v1 = vld [vmem:[#allocation11 + $0x8] sm:$0xff]   ;;  %v6964_v36 = vld [vmem:[#allocation11 + $0xf0] sm:$0xff]  }
 0x277   : > { %v4193_v53 = vpop.f32.mrf.mxu0 }
 0x278   : > { %v4254_v18 = vpop.f32.mrf.mxu1  ;;  %v7808_v54 = vadd.f32 %v4252_v42, %v4192_v48  ;;  %v4194_v21 = vadd.f32 %v4193_v53, %v7796_v30  ;;  %5983 = vmatpush3.bf16.msra.mxu0 %v6949_v9  ;;  %v6963_v42 = vld [vmem:[#allocation11 + $0xb8] sm:$0xff]   ;;  %v6965_v53 = vld [vmem:[#allocation11 + $0xb0] sm:$0xff]  }
 0x279   : > { %v4195_v25 = vpop.f32.mrf.mxu0  ;;  %5984 = vmatprep.subr.bf16.mxu0 %v6950_v47  ;;  %6015 = vmatpush3.bf16.msra.mxu1 %v6963_v42 }
 0x27a   : > { %v4256_v6 = vpop.f32.mrf.mxu1  ;;  %v7811_v31 = vadd.f32 %v4254_v18, %v4194_v21  ;;  %v4196_v61 = vadd.f32 %v4195_v25, %v7798_v57  ;;  %6016 = vmatprep.subr.bf16.mxu1 %v6964_v36  ;;  %v6966_v18 = vld [vmem:[#allocation11 + $0xe8] sm:$0xff]   ;;  %v6969_v25 = vld [vmem:[#allocation11 + $0xa0] sm:$0xff]  }
 0x27b   : > { %4564 = vmatmul.mubr.bf16.gmra.mxu0 %v8007_v20  ;;  %v4199_v27 = vpop.f32.mrf.mxu0  ;;  %v6967_v21 = vld [vmem:[#allocation11 + $0xa8] sm:$0xff]  }
 0x27c   : > { %4625 = vmatmul.mubr.bf16.gmra.mxu1 %v8008_v26  ;;  %v4260_v0 = vpop.f32.mrf.mxu1  ;;  %v7816_v22 = vadd.f32 %v4256_v6, %v4196_v61  ;;  %5985 = vmatpush3.bf16.msra.mxu0 %v6951_v5  ;;  %v4200_v44 = vadd.f32 %v4199_v27, %v7796_v30  ;;  %v6968_v5 = vld [vmem:[#allocation11 + $0xe0] sm:$0xff]   ;;  %v6971_v61 = vld [vmem:[#allocation11 + $0x98] sm:$0xff]  }
 0x27d   : > { %4573 = vmatprep.mubr.bf16.mxu0 %v8009_v43  ;;  %5986 = vmatprep.subr.bf16.mxu0 %v6952_v33  ;;  %v4201_v17 = vpop.f32.mrf.mxu0 }
 0x27e   : > { %4634 = vmatprep.mubr.bf16.mxu1 %v8010_v28  ;;  %v4262_v16 = vpop.f32.mrf.mxu1  ;;  %v4202_v49 = vadd.f32 %v4201_v17, %v7798_v57  ;;  %v7822_v10 = vadd.f32 %v4260_v0, %v4200_v44  ;;  %6017 = vmatpush3.bf16.msra.mxu1 %v6965_v53  ;;  %v6973_v44 = vld [vmem:[#allocation11 + $0x90] sm:$0xff]  }
 0x27f   : > { %v4203_v15 = vpop.f32.mrf.mxu0  ;;  %6018 = vmatprep.subr.bf16.mxu1 %v6966_v18 }
 0x280   : > { %v4264_v39 = vpop.f32.mrf.mxu1  ;;  %5987 = vmatpush3.bf16.msra.mxu0 %v6953_v23  ;;  %v4204_v40 = vadd.f32 %v4203_v15, %v7796_v30  ;;  %v7825_v3 = vadd.f32 %v4262_v16, %v4202_v49  ;;  %v6974_v15 = vld [vmem:[#allocation11 + $0xc8] sm:$0xff]  }
 0x281   : > { %5988 = vmatprep.subr.bf16.mxu0 %v6954_v46  ;;  %v4205_v37 = vpop.f32.mrf.mxu0 }
 0x282   : > { %v4266_v38 = vpop.f32.mrf.mxu1  ;;  %v4206_v14 = vadd.f32 %v4205_v37, %v7798_v57  ;;  %v7828_v45 = vadd.f32 %v4264_v39, %v4204_v40  ;;  %6019 = vmatpush3.bf16.msra.mxu1 %v6967_v21 }
 0x283   : > { %4574 = vmatmul.mubr.bf16.gmra.mxu0 %v8011_v50  ;;  %v4209_v35 = vpop.f32.mrf.mxu0  ;;  %6020 = vmatprep.subr.bf16.mxu1 %v6968_v5  ;;  %v6976_v50 = vld [vmem:[#allocation11 + $0xc0] sm:$0xff]  }
 0x284   : > { %4635 = vmatmul.mubr.bf16.gmra.mxu1 %v8012_v51  ;;  %v4270_v58 = vpop.f32.mrf.mxu1  ;;  %5989 = vmatpush3.bf16.msra.mxu0 %v6955_v52  ;;  %v4210_v4 = vadd.f32 %v4209_v35, %v7796_v30  ;;  %v7836_v11 = vadd.f32 %v4266_v38, %v4206_v14  ;;  %v6960_v30 = vld [vmem:[#allocation11 + $0x40] sm:$0xff]   ;;  %v6975_v52 = vld [vmem:[#allocation11 + $0x88] sm:$0xff]  }
 0x285   : > { %5947 = vmatprep.mubr.msk.bf16.mxu0 %vm7766_vm7, %v7210_v59  ;;  %5990 = vmatprep.subr.bf16.mxu0 %v6956_v2  ;;  %v4211_v7 = vpop.f32.mrf.mxu0  ;;  %v6977_v35 = vld [vmem:[#allocation11 + $0x80] sm:$0xff]  }
 0x286   : > { %v4272_v8 = vpop.f32.mrf.mxu1  ;;  %v4212_v12 = vadd.f32 %v4211_v7, %v7798_v57  ;;  %v7839_v63 = vadd.f32 %v4270_v58, %v4210_v4  ;;  %v6961_v57 = vld [vmem:[#allocation11] sm:$0xff]   ;;  %6021 = vmatpush3.bf16.msra.mxu1 %v6969_v25 }
 0x287   : > { %v4213_v9 = vpop.f32.mrf.mxu0  ;;  %6022 = vmatprep.subr.bf16.mxu1 %v6970_v29 }
 0x288   : > { %v4274_v41 = vpop.f32.mrf.mxu1  ;;  %5991 = vmatpush3.bf16.msra.mxu0 %v6957_v60  ;;  %v7841_v56 = vadd.f32 %v4272_v8, %v4212_v12 }
 0x289   : > { %5992 = vmatprep.subr.bf16.mxu0 %v6958_v32  ;;  %v4214_v47 = vpop.f32.mrf.mxu0 }
 0x28a   : > { %v4275_v48 = vpop.f32.mrf.mxu1  ;;  %6023 = vmatpush3.bf16.msra.mxu1 %v6971_v61 }
 0x28b   : > { %6024 = vmatprep.subr.bf16.mxu1 %v6972_v24 }
 0x28c   : > { %5993 = vmatpush3.bf16.msra.mxu0 %v6959_v1 }
 0x28d   : > { %5994 = vmatprep.subr.bf16.mxu0 %v6960_v30 }
 0x28e   : > { %6025 = vmatpush3.bf16.msra.mxu1 %v6973_v44 }
 0x28f   : > { %6026 = vmatprep.subr.bf16.mxu1 %v6974_v15 }
 0x290   : > { %5995 = vmatpush3.bf16.msra.mxu0 %v6961_v57 }
 0x292   : > { %6027 = vmatpush3.bf16.msra.mxu1 %v6975_v52 }
 0x293   : > { %5949 = vmatmul.mubr.msk.bf16.vlgmr.msra.gmra.mxu0 %vm7759_vm5, %v7210_v59  ;;  %6028 = vmatprep.subr.bf16.mxu1 %v6976_v50  ;;  %v4645_v50 = vld [vmem:[#allocation2 + $0x18] sm:$0xff] }
 0x294   : > { %5951 = vmatprep.mubr.msk.bf16.mxu0 %vm7784_vm13, %v7210_v59  ;;  %vm4649_vm2 = vcmp.gt.f32.partialorder %v4645_v50, 0.3 }
 0x296   : > { %6029 = vmatpush3.bf16.msra.mxu1 %v6977_v35 }
 0x29b   : > { %5953 = vmatmul.mubr.msk.bf16.gmra.mxu0 %vm7779_vm11, %v7210_v59 }
 0x29c   : > { %5955 = vmatprep.mubr.msk.bf16.mxu0 %vm5954_vm15, %v7210_v59 }
 0x2a3   : > { %5957 = vmatmul.mubr.msk.bf16.gmra.mxu0 %vm5956_vm1, %v7210_v59 }
 0x2b3   : > { %v4311_v62 = vpop.f32.mrf.mxu0 }
 0x2b4   : > { %v4372_v6 = vpop.f32.mrf.mxu1  ;;  %v4312_v33 = vadd.f32 %v4311_v62, %v7805_v55 }
 0x2b5   : > { %v4313_v20 = vpop.f32.mrf.mxu0 }
 0x2b6   : > { %v4374_v13 = vpop.f32.mrf.mxu1  ;;  %v7857_v26 = vadd.f32 %v4372_v6, %v4312_v33  ;;  %v4314_v19 = vadd.f32 %v4313_v20, %v7808_v54 }
 0x2b7   : > { %v4315_v27 = vpop.f32.mrf.mxu0 }
 0x2b8   : > { %v4376_v0 = vpop.f32.mrf.mxu1  ;;  %v7860_v23 = vadd.f32 %v4374_v13, %v4314_v19  ;;  %v4316_v43 = vadd.f32 %v4315_v27, %v7811_v31 }
 0x2b9   : > { %v4317_v46 = vpop.f32.mrf.mxu0 }
 0x2ba   : > { %v4378_v28 = vpop.f32.mrf.mxu1  ;;  %v4377_v55 = vadd.f32 %v4376_v0, %v4316_v43  ;;  %v4318_v17 = vadd.f32 %v4317_v46, %v7816_v22 }
 0x2bb   : > { %v4321_v16 = vpop.f32.mrf.mxu0 }
 0x2bc   : > { %v4382_v49 = vpop.f32.mrf.mxu1  ;;  %v4379_v54 = vadd.f32 %v4378_v28, %v4318_v17  ;;  %v4322_v39 = vadd.f32 %v4321_v16, %v7822_v10 }
 0x2bd   : > { %v4323_v40 = vpop.f32.mrf.mxu0 }
 0x2be   : > { %v4384_v2 = vpop.f32.mrf.mxu1  ;;  %v4324_v31 = vadd.f32 %v4323_v40, %v7825_v3  ;;  %v4383_v37 = vadd.f32 %v4382_v49, %v4322_v39 }
 0x2bf   : > { %v4325_v38 = vpop.f32.mrf.mxu0 }
 0x2c0   : > { %v4386_v14 = vpop.f32.mrf.mxu1  ;;  %v4326_v22 = vadd.f32 %v4325_v38, %v7828_v45  ;;  %v4385_v51 = vadd.f32 %v4384_v2, %v4324_v31 }
 0x2c1   : > { %v4327_v58 = vpop.f32.mrf.mxu0 }
 0x2c2   : > { %v4388_v60 = vpop.f32.mrf.mxu1  ;;  %v4328_v10 = vadd.f32 %v4327_v58, %v7836_v11  ;;  %v4387_v4 = vadd.f32 %v4386_v14, %v4326_v22  ;;  %v4646_v22 = vld [vmem:[#allocation2 + $0x8] sm:$0xff]  ;;  %v4653_v58 = vsel %vm4649_vm2, 0.0, %v4645_v50 }
 0x2c3   : > { %v4331_v32 = vpop.f32.mrf.mxu0  ;;  %vm4650_vm3 = vcmp.gt.f32.partialorder %v4646_v22, 0.3 }
 0x2c4   : > { %v4392_v7 = vpop.f32.mrf.mxu1  ;;  %v4332_v3 = vadd.f32 %v4331_v32, %v7839_v63  ;;  %v4389_v8 = vadd.f32 %v4388_v60, %v4328_v10  ;;  %v4654_v32 = vsel %vm4650_vm3, 0.0, %v4646_v22 }
 0x2c5   : > { %v4333_v12 = vpop.f32.mrf.mxu0 }
 0x2c6   : > { %v4394_v1 = vpop.f32.mrf.mxu1  ;;  %v4334_v9 = vadd.f32 %v4333_v12, %v7841_v56  ;;  %v4393_v41 = vadd.f32 %v4392_v7, %v4332_v3 }
 0x2c7   : > { %v4335_v45 = vpop.f32.mrf.mxu0 }
 0x2c8   : > { %v4396_v34 = vpop.f32.mrf.mxu1  ;;  %v4395_v42 = vadd.f32 %v4394_v1, %v4334_v9  ;;  %v4658_v45 = vmul.f32 0.3, %v4654_v32 }
 0x2c9   : > { %v4336_v36 = vpop.f32.mrf.mxu0 }
 0x2ca   : > { %v4397_v30 = vpop.f32.mrf.mxu1 }
 0x2f3   : > { %v4433_v47 = vpop.f32.mrf.mxu0 }
 0x2f4   : > { %v4494_v48 = vpop.f32.mrf.mxu1 }
 0x2f5   : > { %v4435_v11 = vpop.f32.mrf.mxu0 }
 0x2f6   : > { %v4496_v53 = vpop.f32.mrf.mxu1  ;;  %v4436_v35 = vadd.f32 %v4435_v11, %v7860_v23 }
 0x2f7   : > { %v4437_v57 = vpop.f32.mrf.mxu0 }
 0x2f8   : > { %v4498_v18 = vpop.f32.mrf.mxu1  ;;  %v4438_v21 = vadd.f32 %v4437_v57, %v4377_v55  ;;  %v4497_v7 = vadd.f32 %v4496_v53, %v4436_v35 }
 0x2f9   : > { %v4439_v5 = vpop.f32.mrf.mxu0 }
 0x2fa   : > { %v4500_v63 = vpop.f32.mrf.mxu1  ;;  %v4499_v25 = vadd.f32 %v4498_v18, %v4438_v21  ;;  %v4440_v62 = vadd.f32 %v4439_v5, %v4379_v54 }
 0x2fb   : > { %v4443_v6 = vpop.f32.mrf.mxu0 }
 0x2fc   : > { %v4504_v29 = vpop.f32.mrf.mxu1  ;;  %v4501_v56 = vadd.f32 %v4500_v63, %v4440_v62  ;;  %v4444_v33 = vadd.f32 %v4443_v6, %v4383_v37 }
 0x2fd   : > { %v4445_v61 = vpop.f32.mrf.mxu0 }
 0x2fe   : > { %v4506_v20 = vpop.f32.mrf.mxu1  ;;  %v4446_v13 = vadd.f32 %v4445_v61, %v4385_v51  ;;  %v7870_v19 = vadd.f32 %v4504_v29, %v4444_v33  ;;  %v4434_v51 = vadd.f32 %v4433_v47, %v7857_v26 }
 0x2ff   : > { %v4447_v27 = vpop.f32.mrf.mxu0 }
 0x300   : > { %v4508_v0 = vpop.f32.mrf.mxu1  ;;  %v4448_v24 = vadd.f32 %v4447_v27, %v4387_v4  ;;  %v7872_v43 = vadd.f32 %v4506_v20, %v4446_v13  ;;  %v4495_v60 = vadd.f32 %v4494_v48, %v4434_v51 }
 0x301   : > { %v4449_v44 = vpop.f32.mrf.mxu0 }
 0x302   : > { %v4510_v46 = vpop.f32.mrf.mxu1  ;;  %v4450_v28 = vadd.f32 %v4449_v44, %v4389_v8  ;;  %v7874_v55 = vadd.f32 %v4508_v0, %v4448_v24  ;;  %v4657_v8 = vmul.f32 0.3, %v4653_v58 }
 0x303   : > { %v4453_v17 = vpop.f32.mrf.mxu0 }
 0x304   : > { %v4514_v16 = vpop.f32.mrf.mxu1  ;;  %v4454_v49 = vadd.f32 %v4453_v17, %v4393_v41  ;;  %v7876_v15 = vadd.f32 %v4510_v46, %v4450_v28 }
 0x305   : > { %v4455_v54 = vpop.f32.mrf.mxu0 }
 0x306   : > { %v4516_v39 = vpop.f32.mrf.mxu1  ;;  %v4456_v52 = vadd.f32 %v4455_v54, %v4395_v42  ;;  %v7878_v40 = vadd.f32 %v4514_v16, %v4454_v49 }
 0x307   : > { %v4457_v2 = vpop.f32.mrf.mxu0 }
 0x308   : > { %v4518_v31 = vpop.f32.mrf.mxu1  ;;  %v7880_v37 = vadd.f32 %v4516_v39, %v4456_v52 }
 0x309   : > { %v4458_v38 = vpop.f32.mrf.mxu0 }
 0x30a   : > { %v4519_v14 = vpop.f32.mrf.mxu1 }
 0x333   : > { %v4555_v10 = vpop.f32.mrf.mxu0 }
 0x334   : > { %v4616_v4 = vpop.f32.mrf.mxu1  ;;  %v4556_v3 = vadd.f32 %v4555_v10, %v4495_v60 }
 0x335   : > { %v4557_v12 = vpop.f32.mrf.mxu0 }
 0x336   : > { %v4618_v1 = vpop.f32.mrf.mxu1  ;;  %v4617_v9 = vadd.f32 %v4616_v4, %v4556_v3  ;;  %v4558_v41 = vadd.f32 %v4557_v12, %v4497_v7 }
 0x337   : > { %v4559_v34 = vpop.f32.mrf.mxu0 }
 0x338   : > { %v4620_v42 = vpop.f32.mrf.mxu1  ;;  %v4661_v26 = vadd.f32 %v4657_v8, %v4617_v9  ;;  %v4619_v36 = vadd.f32 %v4618_v1, %v4558_v41  ;;  %v4560_v30 = vadd.f32 %v4559_v34, %v4499_v25 }
 0x339   : > { %v4561_v23 = vpop.f32.mrf.mxu0 }
 0x33a   : > { %v4622_v47 = vpop.f32.mrf.mxu1  ;;  %vm4665_vm4 = vcmp.gt.f32.partialorder %v4661_v26, 0.3  ;;  %v4662_v48 = vadd.f32 %v4658_v45, %v4619_v36  ;;  %v4562_v11 = vadd.f32 %v4561_v23, %v4501_v56  ;;  %v4621_v21 = vadd.f32 %v4620_v42, %v4560_v30 }
 0x33b   : > { %v4677_v57 = vsel %vm4665_vm4, 0.0, %v4661_v26  ;;  %v4565_v53 = vpop.f32.mrf.mxu0 }
 0x33c   : > { %v4626_v18 = vpop.f32.mrf.mxu1  ;;  %vm4666_vm5 = vcmp.gt.f32.partialorder %v4662_v48, 0.3  ;;  %v4681_v5 = vmul.f32 0.3, %v4677_v57  ;;  %v4623_v33 = vadd.f32 %v4622_v47, %v4562_v11  ;;  %v4566_v25 = vadd.f32 %v4565_v53, %v7870_v19 }
 0x33d   : > { %v4678_v63 = vsel %vm4666_vm5, 0.0, %v4662_v48  ;;  %v4567_v62 = vpop.f32.mrf.mxu0 }
 0x33e   : > { %v4628_v6 = vpop.f32.mrf.mxu1  ;;  %v4685_v29 = vadd.f32 %v4681_v5, %v4621_v21  ;;  %v4682_v61 = vmul.f32 0.3, %v4678_v63  ;;  %v4568_v27 = vadd.f32 %v4567_v62, %v7872_v43  ;;  %v4627_v28 = vadd.f32 %v4626_v18, %v4566_v25 }
 0x33f   : > { %v4569_v20 = vpop.f32.mrf.mxu0 }
 0x340   : > { %v4630_v13 = vpop.f32.mrf.mxu1  ;;  %vm4689_vm6 = vcmp.gt.f32.partialorder %v4685_v29, 0.3  ;;  %v4686_v56 = vadd.f32 %v4682_v61, %v4623_v33  ;;  %v4629_v39 = vadd.f32 %v4628_v6, %v4568_v27  ;;  %v4570_v43 = vadd.f32 %v4569_v20, %v7874_v55  ;;  %v5162_v33 = vld [vmem:[#allocation3] sm:$0xff]  ;;  %v5913_v61 = vld [vmem:[#allocation13] ss:$0 sm:$0xff] }
 0x341   : > { %v4701_v0 = vsel %vm4689_vm6, 0.0, %v4685_v29  ;;  %vm7889_vm7 = vmpackc.low %vm4689_vm6, %vm4665_vm4  ;;  %v4571_v44 = vpop.f32.mrf.mxu0  ;;  %vm5164_vm4 = vcmp.gt.f32.partialorder %v5162_v33, 0.3 }
 0x342   : > { %v4632_v46 = vpop.f32.mrf.mxu1  ;;  %vm4690_vm8 = vcmp.gt.f32.partialorder %v4686_v56, 0.3  ;;  %v4705_v17 = vmul.f32 0.3, %v4701_v0  ;;  %v4572_v14 = vadd.f32 %v4571_v44, %v7876_v15  ;;  %v4631_v35 = vadd.f32 %v4630_v13, %v4570_v43 }
 0x343   : > { %v4702_v16 = vsel %vm4690_vm8, 0.0, %v4686_v56  ;;  %v4575_v49 = vpop.f32.mrf.mxu0  ;;  %vm5958_vm9 = vmpackc.low %vm4690_vm8, %vm4666_vm5  ;;  %v5165_v20 = vsel %vm5164_vm4, 0.0, %v5162_v33 }
 0x344   : > { %v4636_v19 = vpop.f32.mrf.mxu1  ;;  %v4709_v54 = vadd.f32 %v4705_v17, %v4627_v28  ;;  %v4706_v52 = vmul.f32 0.3, %v4702_v16  ;;  %5959 = vmatprep.mubr.msk.bf16.mxu1 %vm5958_vm9, %v7210_v59  ;;  %v4633_v32 = vadd.f32 %v4632_v46, %v4572_v14  ;;  %v4576_v3 = vadd.f32 %v4575_v49, %v7878_v40 }
 0x345   : > { %v4577_v2 = vpop.f32.mrf.mxu0  ;;  %5961 = vmatmul.mubr.msk.bf16.vlgmr.msra.gmra.mxu1 %vm7889_vm7, %v7210_v59  ;;  %v5166_v27 = vmul.f32 0.3, %v5165_v20 }
 0x346   : > { %v4638_v31 = vpop.f32.mrf.mxu1  ;;  %vm4713_vm10 = vcmp.gt.f32.partialorder %v4709_v54, 0.3  ;;  %v4710_v38 = vadd.f32 %v4706_v52, %v4629_v39  ;;  %v4578_v15 = vadd.f32 %v4577_v2, %v7880_v37  ;;  %v4637_v1 = vadd.f32 %v4636_v19, %v4576_v3 }
 0x347   : > { %v4725_v50 = vsel %vm4713_vm10, 0.0, %v4709_v54  ;;  %v4579_v22 = vpop.f32.mrf.mxu0  ;;  %v5163_v54 = vld [vmem:[#allocation4] sm:$0xff]  ;;  %v7211_v39 = vmov 0.0  }
 0x348   : > { %v4640_v51 = vpop.f32.mrf.mxu1  ;;  %vm4714_vm11 = vcmp.gt.f32.partialorder %v4710_v38, 0.3  ;;  %v4729_v58 = vmul.f32 0.3, %v4725_v50  ;;  %v4639_v34 = vadd.f32 %v4638_v31, %v4578_v15 }
 0x349   : > { %v4726_v55 = vsel %vm4714_vm11, 0.0, %v4710_v38  ;;  %v4580_v60 = vpop.f32.mrf.mxu0 }
 0x34a   : > { %v4641_v10 = vpop.f32.mrf.mxu1  ;;  %v4733_v4 = vadd.f32 %v4729_v58, %v4631_v35  ;;  %v4730_v7 = vmul.f32 0.3, %v4726_v55 }
 0x34c   : > { %vm4737_vm12 = vcmp.gt.f32.partialorder %v4733_v4, 0.3  ;;  %v4734_v8 = vadd.f32 %v4730_v7, %v4633_v32 }
 0x34d   : > { %v4749_v12 = vsel %vm4737_vm12, 0.0, %v4733_v4  ;;  %vm5964_vm13 = vmpackc.low %vm4737_vm12, %vm4713_vm10 }
 0x34e   : > { %vm4738_vm14 = vcmp.gt.f32.partialorder %v4734_v8, 0.3  ;;  %v4753_v9 = vmul.f32 0.3, %v4749_v12 }
 0x34f   : > { %v4750_v41 = vsel %vm4738_vm14, 0.0, %v4734_v8  ;;  %vm5962_vm15 = vmpackc.low %vm4738_vm14, %vm4714_vm11 }
 0x350   : > { %v4757_v45 = vadd.f32 %v4753_v9, %v4637_v1  ;;  %v4754_v42 = vmul.f32 0.3, %v4750_v41  ;;  %5963 = vmatprep.mubr.msk.bf16.mxu1 %vm5962_vm15, %v7210_v59 }
 0x351   : > { %5965 = vmatmul.mubr.msk.bf16.gmra.mxu1 %vm5964_vm13, %v7210_v59 }
 0x352   : > { %4773 = vst [vmem:[#allocation2 + $0x18] sm:$0xff] %v4757_v45  ;;  %v4758_v40 = vadd.f32 %v4754_v42, %v4639_v34  ;;  %vm4761_vm2 = vcmp.gt.f32.partialorder %v4757_v45, 0.3 }
 0x353   : > { %v5996_v26 = vpop.f32.mrf.mxu0  ;;  %vm5968_vm3 = vmpackc.low %vm4761_vm2, %vm4761_vm2 }
 0x354   : > { %4774 = vst [vmem:[#allocation2 + $0x8] sm:$0xff] %v4758_v40  ;;  %vm4762_vm0 = vcmp.gt.f32.partialorder %v4758_v40, 0.3 }
 0x355   : > { %v5997_v37 = vpop.f32.mrf.mxu0  ;;  %vm5966_vm1 = vmpackc.low %vm4762_vm0, %vm4762_vm0 }
 0x356   : > { %v5998_v36 = vadd.f32 %v5997_v37, %v5996_v26  ;;  %5967 = vmatprep.mubr.msk.bf16.mxu1 %vm5966_vm1, %v7210_v59 }
 0x357   : > { %v5999_v30 = vpop.f32.mrf.mxu0 }
 0x358   : > { %v5085_v56 = vadd.f32 %v5998_v36, %v5913_v61 }
 0x359   : > { %v6000_v23 = vpop.f32.mrf.mxu0  ;;  %5969 = vmatmul.mubr.msk.bf16.gmra.mxu1 %vm5968_vm3, %v7210_v59 }
 0x35a   : > { %v6001_v47 = vadd.f32 %v6000_v23, %v5999_v30 }
 0x35b   : > { %v6002_v48 = vpop.f32.mrf.mxu0 }
 0x35c   : > { %v5088_v17 = vadd.f32 %v6001_v47, %v5913_v61 }
 0x35d   : > { %v6003_v11 = vpop.f32.mrf.mxu0 }
 0x35e   : > { %v6004_v57 = vadd.f32 %v6003_v11, %v6002_v48 }
 0x35f   : > { %v6005_v53 = vpop.f32.mrf.mxu0 }
 0x360   : > { %v5093_v38 = vadd.f32 %v6004_v57, %v5913_v61 }
 0x361   : > { %v6006_v18 = vpop.f32.mrf.mxu0 }
 0x362   : > { %v6007_v21 = vadd.f32 %v6006_v18, %v6005_v53 }
 0x363   : > { %v6008_v5 = vpop.f32.mrf.mxu0 }
 0x364   : > { %v5096_v3 = vadd.f32 %v6007_v21, %v5913_v61 }
 0x365   : > { %v6009_v63 = vpop.f32.mrf.mxu0 }
 0x366   : > { %v6010_v62 = vadd.f32 %v6009_v63, %v6008_v5 }
 0x367   : > { %v6011_v6 = vpop.f32.mrf.mxu0 }
 0x368   : > { %v5101_v26 = vadd.f32 %v6010_v62, %v5913_v61 }
 0x369   : > { %v6012_v29 = vpop.f32.mrf.mxu0 }
 0x405   : > { %v6030_v25 = vpop.f32.mrf.mxu1 }
 0x407   : > { %v6031_v13 = vpop.f32.mrf.mxu1 }
 0x408   : > { %v6032_v59 = vadd.f32 %v6031_v13, %v6030_v25 }
 0x409   : > { %v6033_v0 = vpop.f32.mrf.mxu1 }
 0x40a   : > { %v5141_v24 = vadd.f32 %v6032_v59, %v5085_v56 }
 0x40b   : > { %v6034_v44 = vpop.f32.mrf.mxu1 }
 0x40c   : > { %v5167_v46 = vadd.f32 %v5166_v27, %v5141_v24  ;;  %v6035_v28 = vadd.f32 %v6034_v44, %v6033_v0 }
 0x40e   : > { %vm5168_vm5 = vcmp.gt.f32.partialorder %v5167_v46, 0.3  ;;  %v5144_v49 = vadd.f32 %v6035_v28, %v5088_v17 }
 0x40f   : > { %v5172_v16 = vsel %vm5168_vm5, 0.0, %v5167_v46  ;;  %v5970_v52 = vsel %vm5168_vm5, 1.0, %v7211_v39 }
 0x410   : > { %v5173_v19 = vmul.f32 0.3, %v5172_v16  ;;  %v5171_v14 = vadd.f32 %v5970_v52, %v5163_v54 }
 0x411   : > { %v6036_v43 = vpop.f32.mrf.mxu1 }
 0x412   : > { %v5174_v2 = vadd.f32 %v5173_v19, %v5144_v49 }
 0x413   : > { %v6037_v31 = vpop.f32.mrf.mxu1 }
 0x414   : > { %vm5175_vm6 = vcmp.gt.f32.partialorder %v5174_v2, 0.3  ;;  %v6038_v50 = vadd.f32 %v6037_v31, %v6036_v43 }
 0x415   : > { %v5971_v22 = vsel %vm5175_vm6, 1.0, %v7211_v39  ;;  %v5179_v51 = vsel %vm5175_vm6, 0.0, %v5174_v2  ;;  %v6039_v35 = vpop.f32.mrf.mxu1 }
 0x416   : > { %v5178_v58 = vadd.f32 %v5971_v22, %v5171_v14  ;;  %v5149_v55 = vadd.f32 %v6038_v50, %v5093_v38  ;;  %v5180_v60 = vmul.f32 0.3, %v5179_v51 }
 0x417   : > { %v6040_v10 = vpop.f32.mrf.mxu1 }
 0x418   : > { %v5181_v4 = vadd.f32 %v5180_v60, %v5149_v55  ;;  %v6041_v32 = vadd.f32 %v6040_v10, %v6039_v35 }
 0x419   : > { %v6042_v7 = vpop.f32.mrf.mxu1 }
 0x41a   : > { %vm5182_vm7 = vcmp.gt.f32.partialorder %v5181_v4, 0.3  ;;  %v5152_v9 = vadd.f32 %v6041_v32, %v5096_v3 }
 0x41b   : > { %v5972_v8 = vsel %vm5182_vm7, 1.0, %v7211_v39  ;;  %v5186_v15 = vsel %vm5182_vm7, 0.0, %v5181_v4  ;;  %v6043_v12 = vpop.f32.mrf.mxu1 }
 0x41c   : > { %v5185_v1 = vadd.f32 %v5972_v8, %v5178_v58  ;;  %v5187_v41 = vmul.f32 0.3, %v5186_v15  ;;  %v6044_v42 = vadd.f32 %v6043_v12, %v6042_v7 }
 0x41d   : > { %v6045_v45 = vpop.f32.mrf.mxu1 }
 0x41e   : > { %v5188_v34 = vadd.f32 %v5187_v41, %v5152_v9  ;;  %v5157_v23 = vadd.f32 %v6044_v42, %v5101_v26 }
 0x41f   : > { %v6046_v40 = vpop.f32.mrf.mxu1 }
 0x420   : > { %vm5189_vm8 = vcmp.gt.f32.partialorder %v5188_v34, 0.3 }
 0x421   : > { %v5973_v37 = vsel %vm5189_vm8, 1.0, %v7211_v39  ;;  %v5193_v36 = vsel %vm5189_vm8, 0.0, %v5188_v34 }
 0x422   : > { %v5192_v30 = vadd.f32 %v5973_v37, %v5185_v1  ;;  %v5194_v47 = vmul.f32 0.3, %v5193_v36 }
 0x424   : > { %v5195_v48 = vadd.f32 %v5194_v47, %v5157_v23 }
 0x426   : > { %vm5196_vm9 = vcmp.gt.f32.partialorder %v5195_v48, 0.3  ;;  %5200 = vst [vmem:[#allocation3] sm:$0xff] %v5195_v48  ;;  %5205 = sbr.rel (%p5975_p6) target bundleno = 1070 (0x42e), region = 68 }
 0x427   : > { %v5974_v11 = vsel %vm5196_vm9, 1.0, %v7211_v39 }
 0x428   : > { %v5199_v57 = vadd.f32 %v5974_v11, %v5192_v30 }
 0x42a   : > { %5201 = vst [vmem:[#allocation4] sm:$0xff] %v5199_v57 }
 0x42b   : > { %v5206_v53 = vmul.f32 0.06666667, %v5199_v57 }
 0x42d   : > { %5207 = vst [vmem:[#allocation14] sm:$0xff] %v5206_v53 }
 0x42e PF: > { %s8015_s24 = sadd.s32 4294967295, %s7197_s23   ;;  %s7212_s26 = smov [#allocation14]  }
 0x42f   : > { %p7913_p9 = scmp.eq.s32.totalorder %s8015_s24, 2  ;;  %s5217_s27 = sshll.u32 %s7212_s26, 4  ;;  %s5218_s27 = int_to_ptr.vmem [resolvable:$true] %s5217_s27 }
 0x430   : > { %s7111_s14 = scalar_lea.vmem %s5218_s27, 128  ;;  %p7118_p11 = scmp.lt.s32.totalorder %s5218_s27, %s5218_s27 }
 0x431   : > { %p7112_p10 = scmp.ne.s32.totalorder %s5218_s27, %s7111_s14  ;;  %p7119_p1 = scmp.lt.s32.totalorder %s7111_s14, %s7111_s14 }
 0x433   : > { %p7113_p7 = pnand %p7112_p10, %p7913_p9  ;;  %p7120_p13 = por %p7119_p1, %p7118_p11 }
 0x435   : > { %p7114_p12 = pneg %p7113_p7 }
 0x437   : > { %p7121_p2 = pnand %p7120_p13, %p7114_p12 }
 0x439   : > { %7124 = shalt.err (!%p7121_p2)
}
 0x43a   : > { %6070 = dma.vmem_to_hbm [thread:$0]  (%p7913_p9), %s5218_s27, 128, %s7951_s5, [#allocation7]  }
 0x43b   : > { %7172 = dma.done.wait (%p7913_p9), [#allocation7], 128  }
 0x43c   : > { %7174 = vsyncadd (%p7913_p9), [#allocation7], 4294967168 }
 0x43d PF: > { %s21_s23 = sadd.s32 1, %s7197_s23   ;;  %s8017_s18 = smov %s7181_s19 }
 0x43e   : > { %p18_p4 = scmp.ge.s32.totalorder %s21_s23, 5   ;;  %s8018_s19 = smov %s7185_s20 }
 0x43f   : > { %s8019_s20 = smov %s7352_s6  ;;  %s8020_s21 = smov %s7193_s22 }
 0x440   : > { %s8021_s22 = smov %s8023_s15  ;;  %20 = sbr.rel (!%p18_p4) target bundleno = 7 (0x7), region = 102 }
 0x445   :  { %5230 = vsyncpa [#allocation6], 1 }
 0x446   :  { %5232 = vsyncpa [#allocation6 + $0x1], 1 }
 0x447   :  { %5233 = vsyncpa [#allocation9], 1 }
 0x448   :  { %5234 = vsyncpa [#allocation12], 1 }
 0x449   :  { %5235 = vsyncpa [#allocation7], 1 }
 0x44a   :  { %5237 = vsyncpa [#allocation7 + $0x1], 1 }

</bundles_post_ra>
